<compile_context>
chip_gen: v7x
topology: tpu7x:2x2x1
jax: 0.10.0
libtpu: 0.0.40
codegen_flags: <defaults>
</compile_context>

<pallas_src>
import jax
import jax.numpy as jnp
from jax.experimental import pallas as pl
from jax.experimental.pallas import tpu as pltpu

TEMP = 0.1            # temperature in _softmax_clause_weights
INV_TEMP = 1.0 / TEMP
GAMMA = 0.01          # softor smoothing parameter (NEUMANN default)
INV_GAMMA = 1.0 / GAMMA
INFER_STEPS = 4       # infer_step=4 in forward_reasoning
THRESHOLD = 0.2       # target-atom score threshold
BATCH_BLOCK = 128     # MXU-filling LHS rows per grid step


def _softor(x, axis):
    """softor(x, dim) = gamma * logsumexp(x / gamma) (stable form)."""
    m = jnp.max(x, axis=axis, keepdims=True)
    return m + GAMMA * jnp.log(
        jnp.sum(jnp.exp((x - m) * INV_GAMMA), axis=axis, keepdims=True))


def _softor_pair(a, b):
    """Elementwise soft-or of two arrays."""
    m = jnp.maximum(a, b)
    return m + GAMMA * jnp.log(
        jnp.exp((a - m) * INV_GAMMA) + jnp.exp((b - m) * INV_GAMMA))


def softmax_clause_weights(rule_weights):
    """_softmax_clause_weights: softmax(w / 0.1, dim=1), softor over dim=0.

    Plain JAX: exact, differentiable; the dim=0 softor is the identity when
    program_size == 1 but is kept for fidelity with the module.
    """
    sm = jax.nn.softmax(rule_weights * INV_TEMP, axis=1)
    return _softor(sm, axis=0)                       # (1, R)


def prepare_transition_matrix(rule_transitions):
    """One-time packing of (R, A, A) f32 transitions into a lane-dense
    (A, R*A) bf16 slab. Call OUTSIDE the jitted hot path: grounded clauses are
    fixed per program, so the f32 read + bf16 write round trip is not paid
    on every forward."""
    R, A, _ = rule_transitions.shape
    w_cat = jnp.transpose(rule_transitions, (1, 0, 2)).reshape(A, R * A)
    return w_cat.astype(jnp.bfloat16)


def deisam_reasoning_kernel(cw_ref, v0_ref, wcat_ref, tmask_ref,
                            vt_ref, score_ref, best_ref, idx_ref):
    BB, A = v0_ref.shape
    R = cw_ref.shape[1]

    # Clause weights as SMEM scalars (hoisted; scalar-vector mul on the VPU,
    # no (BB, A) broadcast vregs live across the 4-step unroll).
    cw = [cw_ref[0, r] for r in range(R)]

    wcat = wcat_ref[...]                              # (A, R*A) bf16, resident
    v = v0_ref[...]                                   # (BB, A) f32

    # ---- NEUMANN-style differentiable forward chaining (static 4x unroll) ---
    for _t in range(INFER_STEPS):
        # One wide MXU call per step instead of R small ones.
        c = jnp.dot(v.astype(jnp.bfloat16), wcat,
                    preferred_element_type=jnp.float32)       # (BB, R*A) f32
        acc = cw[0] * jnp.clip(c[:, 0:A], 0.0, 1.0)
        for r in range(1, R):                         # static, 128-aligned slices
            acc = acc + cw[r] * jnp.clip(c[:, r * A:(r + 1) * A], 0.0, 1.0)
        v = jnp.clip(_softor_pair(v, acc), 0.0, 1.0)  # V_{t+1} = softor(V_t, new)
    vt_ref[...] = v

    # ---- _get_target_atoms_with_scores (threshold + argmax fallback) --------
    tmask = jnp.broadcast_to(tmask_ref[...] > 0.0, (BB, A))   # per-atom mask row
    scores = jnp.where(tmask & (v > THRESHOLD), v, 0.0)
    score_ref[...] = scores

    # Fallback (spec: highest_score_index = v_T.argmax() over ALL atoms when
    # no target atom exceeds the threshold).
    ids = jax.lax.broadcasted_iota(jnp.int32, (BB, A), 1)
    max_v = jnp.max(v, axis=1, keepdims=True)                           # (BB,1)
    idx_v = jnp.min(jnp.where(v >= max_v, ids, A), axis=1, keepdims=True)
    max_s = jnp.max(scores, axis=1, keepdims=True)                      # (BB,1)
    idx_s = jnp.min(jnp.where(scores >= max_s, ids, A), axis=1, keepdims=True)
    has_target = max_s > 0.0
    best = jnp.where(has_target, max_s, max_v)                          # (BB,1)
    idx = jnp.where(has_target, idx_s, idx_v)                           # (BB,1)
    # Lane-dense stores (full vst, no masked vst.msk); wrapper reads lane 0.
    best_ref[...] = jnp.broadcast_to(best, (BB, 128))
    idx_ref[...] = jnp.broadcast_to(idx, (BB, 128))


@jax.jit
def trainable_deisam_forward(rule_weights, v0, w_cat, target_mask_row):
    """Pallas-backed forward of the differentiable core of TrainableDeiSAM.

    rule_weights:    (1, R) f32  — the nn.Parameter
    v0:              (B, A) f32  — initial atom valuations V_0
    w_cat:           (A, R*A) bf16 — pre-packed transition slab (see
                     prepare_transition_matrix)
    target_mask_row: (1, A) f32  — 1.0 where atom.pred.name == 'target'
    """
    B, A = v0.shape
    RA = w_cat.shape[1]
    R = RA // A
    assert A % 128 == 0, "atom axis must be lane-aligned (pad atoms to 128)"

    # _softmax_clause_weights — exact, differentiable, outside the kernel.
    cw = softmax_clause_weights(rule_weights)                  # (1, R)

    # Pad batch so every MXU pass has a full 128-row LHS; on v7x the
    # "parallel" batch grid axis is split across the two TensorCores.
    Bp = max(BATCH_BLOCK, ((B + BATCH_BLOCK - 1) // BATCH_BLOCK) * BATCH_BLOCK)
    v0_p = jnp.pad(v0, ((0, Bp - B), (0, 0)))
    nb = Bp // BATCH_BLOCK

    # Explicit VMEM budget: resident W_cat + double-buffered I/O blocks.
    wcat_bytes = A * RA * 2
    io_bytes = 3 * BATCH_BLOCK * A * 4 + A * 4 + 2 * BATCH_BLOCK * 128 * 4
    vmem_limit = int(min(max(2 * (wcat_bytes + io_bytes) + (8 << 20), 32 << 20),
                         64 << 20))

    vt, scores, best, idx = pl.pallas_call(
        deisam_reasoning_kernel,
        out_shape=(
            jax.ShapeDtypeStruct((Bp, A), jnp.float32),    # V_T valuations
            jax.ShapeDtypeStruct((Bp, A), jnp.float32),    # thresholded scores
            jax.ShapeDtypeStruct((Bp, 128), jnp.float32),  # best score (lane-dense)
            jax.ShapeDtypeStruct((Bp, 128), jnp.int32),    # best atom index
        ),
        grid_spec=pltpu.PrefetchScalarGridSpec(
            num_scalar_prefetch=0,
            grid=(nb,),
            in_specs=[
                pl.BlockSpec(memory_space=pltpu.MemorySpace.SMEM),   # cw (1,R)
                pl.BlockSpec((BATCH_BLOCK, A), lambda b: (b, 0)),    # V_0 block
                pl.BlockSpec((A, RA), lambda b: (0, 0)),             # W_cat
                pl.BlockSpec((1, A), lambda b: (0, 0)),              # target mask
            ],
            out_specs=(
                pl.BlockSpec((BATCH_BLOCK, A), lambda b: (b, 0)),
                pl.BlockSpec((BATCH_BLOCK, A), lambda b: (b, 0)),
                pl.BlockSpec((BATCH_BLOCK, 128), lambda b: (b, 0)),
                pl.BlockSpec((BATCH_BLOCK, 128), lambda b: (b, 0)),
            ),
        ),
        compiler_params=pltpu.CompilerParams(
            dimension_semantics=("parallel",),
            vmem_limit_bytes=vmem_limit),
    )(cw, v0_p, w_cat, target_mask_row)

    return vt[:B], scores[:B], cw, idx[:B, 0], best[:B, 0]


def _reference_forward(rule_weights, v0, rule_transitions, target_mask_row):
    """Pure-JAX reference for correctness checking (f32 everywhere)."""
    sm = jax.nn.softmax(rule_weights / TEMP, axis=1)
    m0 = jnp.max(sm, axis=0, keepdims=True)
    cw = m0 + GAMMA * jnp.log(jnp.sum(jnp.exp((sm - m0) / GAMMA),
                                      axis=0, keepdims=True))
    v = v0
    for _ in range(INFER_STEPS):
        acc = jnp.zeros_like(v)
        for r in range(rule_weights.shape[1]):
            c_r = jnp.clip(v @ rule_transitions[r], 0.0, 1.0)
            acc = acc + cw[0, r] * c_r
        m = jnp.maximum(v, acc)
        so = m + GAMMA * jnp.log(jnp.exp((v - m) / GAMMA) + jnp.exp((acc - m) / GAMMA))
        v = jnp.clip(so, 0.0, 1.0)
    tmask = jnp.broadcast_to(target_mask_row > 0.0, v.shape)
    scores = jnp.where(tmask & (v > THRESHOLD), v, 0.0)
    has_target = jnp.any(scores > 0.0, axis=1)
    best_idx = jnp.where(has_target, jnp.argmax(scores, axis=1), jnp.argmax(v, axis=1))
    best_score = jnp.take_along_axis(v, best_idx[:, None], axis=1)[:, 0]
    return v, scores, cw, best_idx, best_score


if __name__ == "__main__":
    B, A, R = 8, 128, 2   # batch of valuations, num atoms, num SGG rule sources

    key = jax.random.PRNGKey(0)
    k_rw, k_v0, k_w = jax.random.split(key, 3)

    # self.rule_weights = Parameter(np.random.rand(1, len(vg_utils_list)))
    rule_weights = jax.random.uniform(k_rw, (1, R), dtype=jnp.float32)
    # initial atom valuations V_0 in [0, 1]
    v0 = jax.random.uniform(k_v0, (B, A), dtype=jnp.float32)
    # synthetic per-rule atom-transition matrices (stand-in for grounded clauses)
    rule_transitions = jax.random.uniform(
        k_w, (R, A, A), dtype=jnp.float32) * (2.0 / A)
    # last 16 atoms are the 'target(...)' atoms (per-atom mask, shared over batch)
    target_mask_row = (jnp.arange(A) >= A - 16).astype(jnp.float32).reshape(1, A)

    # One-time packing of the transition slab — NOT on the per-call hot path.
    w_cat = prepare_transition_matrix(rule_transitions)
    jax.block_until_ready(w_cat)

    vt, scores, cw, best_idx, best_score = trainable_deisam_forward(
        rule_weights, v0, w_cat, target_mask_row)
    jax.block_until_ready((vt, scores, cw, best_idx, best_score))

    vt_ref, scores_ref, cw_ref, bi_ref, bs_ref = _reference_forward(
        rule_weights, v0, rule_transitions, target_mask_row)

    assert vt.shape == (B, A) and scores.shape == (B, A)
    assert jnp.allclose(vt, vt_ref, atol=1e-2, rtol=1e-2)
    assert jnp.allclose(scores, scores_ref, atol=1e-2, rtol=1e-2)
    assert jnp.allclose(cw, cw_ref, atol=1e-5, rtol=1e-5)
    # best_idx may differ only under near-ties perturbed by bf16; assert scores.
    assert jnp.allclose(best_score, bs_ref, atol=1e-2, rtol=1e-2)

    print("KERNEL_OK")
</pallas_src>

<mosaic_0001>
module attributes {stable_mosaic.version = 11 : i64} {
  func.func @deisam_reasoning_kernel(%arg0: i32, %arg1: memref<1x2xf32, #tpu.memory_space<smem>>, %arg2: memref<128x128xf32, #tpu.memory_space<vmem>>, %arg3: memref<128x256xbf16, #tpu.memory_space<vmem>>, %arg4: memref<1x128xf32, #tpu.memory_space<vmem>>, %arg5: memref<128x128xf32, #tpu.memory_space<vmem>>, %arg6: memref<128x128xf32, #tpu.memory_space<vmem>>, %arg7: memref<128x128xf32, #tpu.memory_space<vmem>>, %arg8: memref<128x128xi32, #tpu.memory_space<vmem>>) attributes {dimension_semantics = [#tpu.dimension_semantics<parallel>], iteration_bounds = array<i64: 1>, scalar_prefetch = 0 : i64, scratch_operands = 0 : i64, tpu.core_type = #tpu.core_type<tc>, window_params = [{transform_indices = @transform_0, window_bounds = array<i64: 1, 2>}, {transform_indices = @transform_1, window_bounds = array<i64: 128, 128>}, {pipeline_mode = #tpu.pipeline_mode<synchronous>, transform_indices = @transform_2, window_bounds = array<i64: 128, 256>}, {pipeline_mode = #tpu.pipeline_mode<synchronous>, transform_indices = @transform_3, window_bounds = array<i64: 1, 128>}, {transform_indices = @transform_4, window_bounds = array<i64: 128, 128>}, {transform_indices = @transform_5, window_bounds = array<i64: 128, 128>}, {transform_indices = @transform_6, window_bounds = array<i64: 128, 128>}, {transform_indices = @transform_7, window_bounds = array<i64: 128, 128>}]} {
    %c0 = arith.constant 0 : index
    %c0_0 = arith.constant 0 : index
    %0 = memref.load %arg1[%c0, %c0_0] : memref<1x2xf32, #tpu.memory_space<smem>>
    %c0_1 = arith.constant 0 : index
    %c1 = arith.constant 1 : index
    %1 = memref.load %arg1[%c0_1, %c1] : memref<1x2xf32, #tpu.memory_space<smem>>
    %c0_2 = arith.constant 0 : index
    %c0_3 = arith.constant 0 : index
    %2 = vector.load %arg3[%c0_2, %c0_3] : memref<128x256xbf16, #tpu.memory_space<vmem>>, vector<128x256xbf16>
    %c0_4 = arith.constant 0 : index
    %c0_5 = arith.constant 0 : index
    %3 = vector.load %arg2[%c0_4, %c0_5] : memref<128x128xf32, #tpu.memory_space<vmem>>, vector<128x128xf32>
    %4 = arith.truncf %3 : vector<128x128xf32> to vector<128x128xbf16>
    %cst = arith.constant dense<0.000000e+00> : vector<128x256xf32>
    %5 = tpu.matmul %4, %2, %cst {dimension_numbers = #tpu.dot_dimension_numbers<[1], [0], [0], [1], [0, 0, 1, 1], [], []>} : vector<128x128xbf16>, vector<128x256xbf16>, vector<128x256xf32> -> vector<128x256xf32>
    %6 = vector.extract_strided_slice %5 {offsets = [0, 0], sizes = [128, 128], strides = [1, 1]} : vector<128x256xf32> to vector<128x128xf32>
    %cst_6 = arith.constant 0.000000e+00 : f32
    %cst_7 = arith.constant 1.000000e+00 : f32
    %7 = vector.broadcast %cst_6 : f32 to vector<128x128xf32>
    %8 = arith.maximumf %7, %6 : vector<128x128xf32>
    %9 = vector.broadcast %cst_7 : f32 to vector<128x128xf32>
    %10 = arith.minimumf %9, %8 : vector<128x128xf32>
    %11 = vector.broadcast %0 : f32 to vector<128x128xf32>
    %12 = arith.mulf %11, %10 : vector<128x128xf32>
    %13 = vector.extract_strided_slice %5 {offsets = [0, 128], sizes = [128, 128], strides = [1, 1]} : vector<128x256xf32> to vector<128x128xf32>
    %cst_8 = arith.constant 0.000000e+00 : f32
    %cst_9 = arith.constant 1.000000e+00 : f32
    %14 = vector.broadcast %cst_8 : f32 to vector<128x128xf32>
    %15 = arith.maximumf %14, %13 : vector<128x128xf32>
    %16 = vector.broadcast %cst_9 : f32 to vector<128x128xf32>
    %17 = arith.minimumf %16, %15 : vector<128x128xf32>
    %18 = vector.broadcast %1 : f32 to vector<128x128xf32>
    %19 = arith.mulf %18, %17 : vector<128x128xf32>
    %20 = arith.addf %12, %19 : vector<128x128xf32>
    %21 = arith.maximumf %3, %20 : vector<128x128xf32>
    %22 = arith.subf %3, %21 : vector<128x128xf32>
    %cst_10 = arith.constant 1.000000e+02 : f32
    %23 = vector.broadcast %cst_10 : f32 to vector<128x128xf32>
    %24 = arith.mulf %22, %23 : vector<128x128xf32>
    %25 = math.exp %24 : vector<128x128xf32>
    %26 = arith.subf %20, %21 : vector<128x128xf32>
    %cst_11 = arith.constant 1.000000e+02 : f32
    %27 = vector.broadcast %cst_11 : f32 to vector<128x128xf32>
    %28 = arith.mulf %26, %27 : vector<128x128xf32>
    %29 = math.exp %28 : vector<128x128xf32>
    %30 = arith.addf %25, %29 : vector<128x128xf32>
    %31 = math.log %30 : vector<128x128xf32>
    %cst_12 = arith.constant 0.00999999977 : f32
    %32 = vector.broadcast %cst_12 : f32 to vector<128x128xf32>
    %33 = arith.mulf %32, %31 : vector<128x128xf32>
    %34 = arith.addf %21, %33 : vector<128x128xf32>
    %cst_13 = arith.constant 0.000000e+00 : f32
    %cst_14 = arith.constant 1.000000e+00 : f32
    %35 = vector.broadcast %cst_13 : f32 to vector<128x128xf32>
    %36 = arith.maximumf %35, %34 : vector<128x128xf32>
    %37 = vector.broadcast %cst_14 : f32 to vector<128x128xf32>
    %38 = arith.minimumf %37, %36 : vector<128x128xf32>
    %39 = arith.truncf %38 : vector<128x128xf32> to vector<128x128xbf16>
    %cst_15 = arith.constant dense<0.000000e+00> : vector<128x256xf32>
    %40 = tpu.matmul %39, %2, %cst_15 {dimension_numbers = #tpu.dot_dimension_numbers<[1], [0], [0], [1], [0, 0, 1, 1], [], []>} : vector<128x128xbf16>, vector<128x256xbf16>, vector<128x256xf32> -> vector<128x256xf32>
    %41 = vector.extract_strided_slice %40 {offsets = [0, 0], sizes = [128, 128], strides = [1, 1]} : vector<128x256xf32> to vector<128x128xf32>
    %cst_16 = arith.constant 0.000000e+00 : f32
    %cst_17 = arith.constant 1.000000e+00 : f32
    %42 = vector.broadcast %cst_16 : f32 to vector<128x128xf32>
    %43 = arith.maximumf %42, %41 : vector<128x128xf32>
    %44 = vector.broadcast %cst_17 : f32 to vector<128x128xf32>
    %45 = arith.minimumf %44, %43 : vector<128x128xf32>
    %46 = vector.broadcast %0 : f32 to vector<128x128xf32>
    %47 = arith.mulf %46, %45 : vector<128x128xf32>
    %48 = vector.extract_strided_slice %40 {offsets = [0, 128], sizes = [128, 128], strides = [1, 1]} : vector<128x256xf32> to vector<128x128xf32>
    %cst_18 = arith.constant 0.000000e+00 : f32
    %cst_19 = arith.constant 1.000000e+00 : f32
    %49 = vector.broadcast %cst_18 : f32 to vector<128x128xf32>
    %50 = arith.maximumf %49, %48 : vector<128x128xf32>
    %51 = vector.broadcast %cst_19 : f32 to vector<128x128xf32>
    %52 = arith.minimumf %51, %50 : vector<128x128xf32>
    %53 = vector.broadcast %1 : f32 to vector<128x128xf32>
    %54 = arith.mulf %53, %52 : vector<128x128xf32>
    %55 = arith.addf %47, %54 : vector<128x128xf32>
    %56 = arith.maximumf %38, %55 : vector<128x128xf32>
    %57 = arith.subf %38, %56 : vector<128x128xf32>
    %cst_20 = arith.constant 1.000000e+02 : f32
    %58 = vector.broadcast %cst_20 : f32 to vector<128x128xf32>
    %59 = arith.mulf %57, %58 : vector<128x128xf32>
    %60 = math.exp %59 : vector<128x128xf32>
    %61 = arith.subf %55, %56 : vector<128x128xf32>
    %cst_21 = arith.constant 1.000000e+02 : f32
    %62 = vector.broadcast %cst_21 : f32 to vector<128x128xf32>
    %63 = arith.mulf %61, %62 : vector<128x128xf32>
    %64 = math.exp %63 : vector<128x128xf32>
    %65 = arith.addf %60, %64 : vector<128x128xf32>
    %66 = math.log %65 : vector<128x128xf32>
    %cst_22 = arith.constant 0.00999999977 : f32
    %67 = vector.broadcast %cst_22 : f32 to vector<128x128xf32>
    %68 = arith.mulf %67, %66 : vector<128x128xf32>
    %69 = arith.addf %56, %68 : vector<128x128xf32>
    %cst_23 = arith.constant 0.000000e+00 : f32
    %cst_24 = arith.constant 1.000000e+00 : f32
    %70 = vector.broadcast %cst_23 : f32 to vector<128x128xf32>
    %71 = arith.maximumf %70, %69 : vector<128x128xf32>
    %72 = vector.broadcast %cst_24 : f32 to vector<128x128xf32>
    %73 = arith.minimumf %72, %71 : vector<128x128xf32>
    %74 = arith.truncf %73 : vector<128x128xf32> to vector<128x128xbf16>
    %cst_25 = arith.constant dense<0.000000e+00> : vector<128x256xf32>
    %75 = tpu.matmul %74, %2, %cst_25 {dimension_numbers = #tpu.dot_dimension_numbers<[1], [0], [0], [1], [0, 0, 1, 1], [], []>} : vector<128x128xbf16>, vector<128x256xbf16>, vector<128x256xf32> -> vector<128x256xf32>
    %76 = vector.extract_strided_slice %75 {offsets = [0, 0], sizes = [128, 128], strides = [1, 1]} : vector<128x256xf32> to vector<128x128xf32>
    %cst_26 = arith.constant 0.000000e+00 : f32
    %cst_27 = arith.constant 1.000000e+00 : f32
    %77 = vector.broadcast %cst_26 : f32 to vector<128x128xf32>
    %78 = arith.maximumf %77, %76 : vector<128x128xf32>
    %79 = vector.broadcast %cst_27 : f32 to vector<128x128xf32>
    %80 = arith.minimumf %79, %78 : vector<128x128xf32>
    %81 = vector.broadcast %0 : f32 to vector<128x128xf32>
    %82 = arith.mulf %81, %80 : vector<128x128xf32>
    %83 = vector.extract_strided_slice %75 {offsets = [0, 128], sizes = [128, 128], strides = [1, 1]} : vector<128x256xf32> to vector<128x128xf32>
    %cst_28 = arith.constant 0.000000e+00 : f32
    %cst_29 = arith.constant 1.000000e+00 : f32
    %84 = vector.broadcast %cst_28 : f32 to vector<128x128xf32>
    %85 = arith.maximumf %84, %83 : vector<128x128xf32>
    %86 = vector.broadcast %cst_29 : f32 to vector<128x128xf32>
    %87 = arith.minimumf %86, %85 : vector<128x128xf32>
    %88 = vector.broadcast %1 : f32 to vector<128x128xf32>
    %89 = arith.mulf %88, %87 : vector<128x128xf32>
    %90 = arith.addf %82, %89 : vector<128x128xf32>
    %91 = arith.maximumf %73, %90 : vector<128x128xf32>
    %92 = arith.subf %73, %91 : vector<128x128xf32>
    %cst_30 = arith.constant 1.000000e+02 : f32
    %93 = vector.broadcast %cst_30 : f32 to vector<128x128xf32>
    %94 = arith.mulf %92, %93 : vector<128x128xf32>
    %95 = math.exp %94 : vector<128x128xf32>
    %96 = arith.subf %90, %91 : vector<128x128xf32>
    %cst_31 = arith.constant 1.000000e+02 : f32
    %97 = vector.broadcast %cst_31 : f32 to vector<128x128xf32>
    %98 = arith.mulf %96, %97 : vector<128x128xf32>
    %99 = math.exp %98 : vector<128x128xf32>
    %100 = arith.addf %95, %99 : vector<128x128xf32>
    %101 = math.log %100 : vector<128x128xf32>
    %cst_32 = arith.constant 0.00999999977 : f32
    %102 = vector.broadcast %cst_32 : f32 to vector<128x128xf32>
    %103 = arith.mulf %102, %101 : vector<128x128xf32>
    %104 = arith.addf %91, %103 : vector<128x128xf32>
    %cst_33 = arith.constant 0.000000e+00 : f32
    %cst_34 = arith.constant 1.000000e+00 : f32
    %105 = vector.broadcast %cst_33 : f32 to vector<128x128xf32>
    %106 = arith.maximumf %105, %104 : vector<128x128xf32>
    %107 = vector.broadcast %cst_34 : f32 to vector<128x128xf32>
    %108 = arith.minimumf %107, %106 : vector<128x128xf32>
    %109 = arith.truncf %108 : vector<128x128xf32> to vector<128x128xbf16>
    %cst_35 = arith.constant dense<0.000000e+00> : vector<128x256xf32>
    %110 = tpu.matmul %109, %2, %cst_35 {dimension_numbers = #tpu.dot_dimension_numbers<[1], [0], [0], [1], [0, 0, 1, 1], [], []>} : vector<128x128xbf16>, vector<128x256xbf16>, vector<128x256xf32> -> vector<128x256xf32>
    %111 = vector.extract_strided_slice %110 {offsets = [0, 0], sizes = [128, 128], strides = [1, 1]} : vector<128x256xf32> to vector<128x128xf32>
    %cst_36 = arith.constant 0.000000e+00 : f32
    %cst_37 = arith.constant 1.000000e+00 : f32
    %112 = vector.broadcast %cst_36 : f32 to vector<128x128xf32>
    %113 = arith.maximumf %112, %111 : vector<128x128xf32>
    %114 = vector.broadcast %cst_37 : f32 to vector<128x128xf32>
    %115 = arith.minimumf %114, %113 : vector<128x128xf32>
    %116 = vector.broadcast %0 : f32 to vector<128x128xf32>
    %117 = arith.mulf %116, %115 : vector<128x128xf32>
    %118 = vector.extract_strided_slice %110 {offsets = [0, 128], sizes = [128, 128], strides = [1, 1]} : vector<128x256xf32> to vector<128x128xf32>
    %cst_38 = arith.constant 0.000000e+00 : f32
    %cst_39 = arith.constant 1.000000e+00 : f32
    %119 = vector.broadcast %cst_38 : f32 to vector<128x128xf32>
    %120 = arith.maximumf %119, %118 : vector<128x128xf32>
    %121 = vector.broadcast %cst_39 : f32 to vector<128x128xf32>
    %122 = arith.minimumf %121, %120 : vector<128x128xf32>
    %123 = vector.broadcast %1 : f32 to vector<128x128xf32>
    %124 = arith.mulf %123, %122 : vector<128x128xf32>
    %125 = arith.addf %117, %124 : vector<128x128xf32>
    %126 = arith.maximumf %108, %125 : vector<128x128xf32>
    %127 = arith.subf %108, %126 : vector<128x128xf32>
    %cst_40 = arith.constant 1.000000e+02 : f32
    %128 = vector.broadcast %cst_40 : f32 to vector<128x128xf32>
    %129 = arith.mulf %127, %128 : vector<128x128xf32>
    %130 = math.exp %129 : vector<128x128xf32>
    %131 = arith.subf %125, %126 : vector<128x128xf32>
    %cst_41 = arith.constant 1.000000e+02 : f32
    %132 = vector.broadcast %cst_41 : f32 to vector<128x128xf32>
    %133 = arith.mulf %131, %132 : vector<128x128xf32>
    %134 = math.exp %133 : vector<128x128xf32>
    %135 = arith.addf %130, %134 : vector<128x128xf32>
    %136 = math.log %135 : vector<128x128xf32>
    %cst_42 = arith.constant 0.00999999977 : f32
    %137 = vector.broadcast %cst_42 : f32 to vector<128x128xf32>
    %138 = arith.mulf %137, %136 : vector<128x128xf32>
    %139 = arith.addf %126, %138 : vector<128x128xf32>
    %cst_43 = arith.constant 0.000000e+00 : f32
    %cst_44 = arith.constant 1.000000e+00 : f32
    %140 = vector.broadcast %cst_43 : f32 to vector<128x128xf32>
    %141 = arith.maximumf %140, %139 : vector<128x128xf32>
    %142 = vector.broadcast %cst_44 : f32 to vector<128x128xf32>
    %143 = arith.minimumf %142, %141 : vector<128x128xf32>
    %c0_45 = arith.constant 0 : index
    %c0_46 = arith.constant 0 : index
    %144 = vector.load %arg5[%c0_45, %c0_46] : memref<128x128xf32, #tpu.memory_space<vmem>>, vector<128x128xf32>
    tpu.vector_store %arg5[%c0_45, %c0_46], %143 {strides = array<i32>} : memref<128x128xf32, #tpu.memory_space<vmem>>, vector<128x128xf32>,
    %c0_47 = arith.constant 0 : index
    %c0_48 = arith.constant 0 : index
    %145 = vector.load %arg4[%c0_47, %c0_48] : memref<1x128xf32, #tpu.memory_space<vmem>>, vector<1x128xf32>
    %cst_49 = arith.constant 0.000000e+00 : f32
    %146 = vector.broadcast %cst_49 : f32 to vector<1x128xf32>
    %147 = arith.cmpf ogt, %145, %146 : vector<1x128xf32>
    %148 = vector.shape_cast %147 : vector<1x128xi1> to vector<1x128xi1>
    %149 = vector.broadcast %148 : vector<1x128xi1> to vector<128x128xi1>
    %cst_50 = arith.constant 2.000000e-01 : f32
    %150 = vector.broadcast %cst_50 : f32 to vector<128x128xf32>
    %151 = arith.cmpf ogt, %143, %150 : vector<128x128xf32>
    %152 = arith.andi %149, %151 : vector<128x128xi1>
    %cst_51 = arith.constant 0.000000e+00 : f32
    %153 = vector.broadcast %cst_51 : f32 to vector<128x128xf32>
    %154 = arith.select %152, %143, %153 : vector<128x128xi1>, vector<128x128xf32>
    %c0_52 = arith.constant 0 : index
    %c0_53 = arith.constant 0 : index
    %155 = vector.load %arg6[%c0_52, %c0_53] : memref<128x128xf32, #tpu.memory_space<vmem>>, vector<128x128xf32>
    tpu.vector_store %arg6[%c0_52, %c0_53], %154 {strides = array<i32>} : memref<128x128xf32, #tpu.memory_space<vmem>>, vector<128x128xf32>,
    %156 = tpu.iota {dimensions = array<i32: 1>} : vector<128x128xi32>
    %cst_54 = arith.constant dense<0xFF800000> : vector<128xf32>
    %157 = vector.multi_reduction <maximumf>, %143, %cst_54 [1] : vector<128x128xf32> to vector<128xf32>
    %158 = vector.shape_cast %157 : vector<128xf32> to vector<128x1xf32>
    %159 = vector.broadcast %158 : vector<128x1xf32> to vector<128x128xf32>
    %160 = arith.cmpf oge, %143, %159 : vector<128x128xf32>
    %c128_i32 = arith.constant 128 : i32
    %161 = vector.broadcast %c128_i32 : i32 to vector<128x128xi32>
    %162 = arith.select %160, %156, %161 : vector<128x128xi1>, vector<128x128xi32>
    %cst_55 = arith.constant dense<2147483647> : vector<128xi32>
    %163 = vector.multi_reduction <minsi>, %162, %cst_55 [1] : vector<128x128xi32> to vector<128xi32>
    %164 = vector.shape_cast %163 : vector<128xi32> to vector<128x1xi32>
    %cst_56 = arith.constant dense<0xFF800000> : vector<128xf32>
    %165 = vector.multi_reduction <maximumf>, %154, %cst_56 [1] : vector<128x128xf32> to vector<128xf32>
    %166 = vector.shape_cast %165 : vector<128xf32> to vector<128x1xf32>
    %167 = vector.broadcast %166 : vector<128x1xf32> to vector<128x128xf32>
    %168 = arith.cmpf oge, %154, %167 : vector<128x128xf32>
    %c128_i32_57 = arith.constant 128 : i32
    %169 = vector.broadcast %c128_i32_57 : i32 to vector<128x128xi32>
    %170 = arith.select %168, %156, %169 : vector<128x128xi1>, vector<128x128xi32>
    %cst_58 = arith.constant dense<2147483647> : vector<128xi32>
    %171 = vector.multi_reduction <minsi>, %170, %cst_58 [1] : vector<128x128xi32> to vector<128xi32>
    %172 = vector.shape_cast %171 : vector<128xi32> to vector<128x1xi32>
    %cst_59 = arith.constant 0.000000e+00 : f32
    %173 = vector.broadcast %cst_59 : f32 to vector<128x1xf32>
    %174 = arith.cmpf ogt, %166, %173 : vector<128x1xf32>
    %175 = arith.select %174, %166, %158 : vector<128x1xi1>, vector<128x1xf32>
    %176 = arith.select %174, %172, %164 : vector<128x1xi1>, vector<128x1xi32>
    %177 = vector.shape_cast %175 : vector<128x1xf32> to vector<128x1xf32>
    %178 = vector.broadcast %177 : vector<128x1xf32> to vector<128x128xf32>
    %c0_60 = arith.constant 0 : index
    %c0_61 = arith.constant 0 : index
    %179 = vector.load %arg7[%c0_60, %c0_61] : memref<128x128xf32, #tpu.memory_space<vmem>>, vector<128x128xf32>
    tpu.vector_store %arg7[%c0_60, %c0_61], %178 {strides = array<i32>} : memref<128x128xf32, #tpu.memory_space<vmem>>, vector<128x128xf32>,
    %180 = vector.shape_cast %176 : vector<128x1xi32> to vector<128x1xi32>
    %181 = vector.broadcast %180 : vector<128x1xi32> to vector<128x128xi32>
    %c0_62 = arith.constant 0 : index
    %c0_63 = arith.constant 0 : index
    %182 = vector.load %arg8[%c0_62, %c0_63] : memref<128x128xi32, #tpu.memory_space<vmem>>, vector<128x128xi32>
    tpu.vector_store %arg8[%c0_62, %c0_63], %181 {strides = array<i32>} : memref<128x128xi32, #tpu.memory_space<vmem>>, vector<128x128xi32>,
    return
  }
  func.func @transform_0(%arg0: i32) -> (i32, i32) {
    %c0_i32 = arith.constant 0 : i32
    %c0_i32_0 = arith.constant 0 : i32
    %c0_i32_1 = arith.constant 0 : i32
    return %c0_i32, %c0_i32_0 : i32, i32
  }
  func.func @transform_1(%arg0: i32) -> (i32, i32) {
    %c0_i32 = arith.constant 0 : i32
    %c0_i32_0 = arith.constant 0 : i32
    return %arg0, %c0_i32 : i32, i32
  }
  func.func @transform_2(%arg0: i32) -> (i32, i32) {
    %c0_i32 = arith.constant 0 : i32
    %c0_i32_0 = arith.constant 0 : i32
    %c0_i32_1 = arith.constant 0 : i32
    return %c0_i32, %c0_i32_0 : i32, i32
  }
  func.func @transform_3(%arg0: i32) -> (i32, i32) {
    %c0_i32 = arith.constant 0 : i32
    %c0_i32_0 = arith.constant 0 : i32
    %c0_i32_1 = arith.constant 0 : i32
    return %c0_i32, %c0_i32_0 : i32, i32
  }
  func.func @transform_4(%arg0: i32) -> (i32, i32) {
    %c0_i32 = arith.constant 0 : i32
    %c0_i32_0 = arith.constant 0 : i32
    return %arg0, %c0_i32 : i32, i32
  }
  func.func @transform_5(%arg0: i32) -> (i32, i32) {
    %c0_i32 = arith.constant 0 : i32
    %c0_i32_0 = arith.constant 0 : i32
    return %arg0, %c0_i32 : i32, i32
  }
  func.func @transform_6(%arg0: i32) -> (i32, i32) {
    %c0_i32 = arith.constant 0 : i32
    %c0_i32_0 = arith.constant 0 : i32
    return %arg0, %c0_i32 : i32, i32
  }
  func.func @transform_7(%arg0: i32) -> (i32, i32) {
    %c0_i32 = arith.constant 0 : i32
    %c0_i32_0 = arith.constant 0 : i32
    return %arg0, %c0_i32 : i32, i32
  }
}

</mosaic_0001>

<bundles_post_ra>
// kernel: trainable_deisam_forward.1
= control target key start
LH: loop header
LB: loop body
LE: loop exit
PB: predicated region body
PF: predicated region fallthrough
CT: control target
= control target key end

     0   :  { %13 = vsyncpa [#allocation3], 0  ;;  %s5454_s0 = inlined_call_operand.vmem [shape: f32[1,2], index: 0, kind: input, shape index: {}]   ;;  %s5455_s1 = inlined_call_operand.vmem [shape: f32[128,128], index: 1, kind: input, shape index: {}]   ;;  %s5456_s2 = inlined_call_operand.vmem [shape: bf16[128,256], index: 2, kind: input, shape index: {}]   ;;  %s5457_s3 = inlined_call_operand.vmem [shape: f32[1,128], index: 3, kind: input, shape index: {}]   ;;  %s5458_s4 = inlined_call_operand.vmem [shape: f32[128,128], index: 4, kind: output, shape index: {0}]   ;;  %s5459_s5 = inlined_call_operand.vmem [shape: f32[128,128], index: 5, kind: output, shape index: {1}]   ;;  %s5460_s6 = inlined_call_operand.vmem [shape: f32[128,128], index: 6, kind: output, shape index: {2}]   ;;  %s5461_s7 = inlined_call_operand.vmem [shape: s32[128,128], index: 7, kind: output, shape index: {3}]  }
   0x1   :  { %s20_s26 = sshll.u32 %s5454_s0, 4  ;;  %s21_s26 = int_to_ptr.vmem [resolvable:$true] %s20_s26 }
   0x2   :  { %s3301_s27 = scalar_lea.vmem %s21_s26, 16  ;;  %p3306_p1 = scmp.lt.s32.totalorder %s21_s26, %s21_s26 }
   0x3   :  { %p3302_p0 = scmp.ne.s32.totalorder %s21_s26, %s3301_s27  ;;  %p3307_p2 = scmp.lt.s32.totalorder %s3301_s27, %s3301_s27 }
   0x5   :  { %p3308_p3 = por %p3307_p2, %p3306_p1 }
   0x7   :  { %p3309_p4 = pnand %p3308_p3, %p3302_p0 }
   0x9   :  { %3312 = shalt.err (!%p3309_p4)
}
   0xa   :  { %s3315_s28 = smov [#allocation2]  }
   0xb   :  { %23 = dma.vmem_to_smem %s21_s26, 16, %s3315_s28, [#allocation3]  }
   0xc   :  { %3313 = dma.done.wait [#allocation3], 16  }
   0xd   :  { %3314 = vsyncadd [#allocation3], 4294967280 }
   0xe   :  { %33 = sfence }
   0xf   :  { %v2889_v0 = vld [vmem:[%s5456_s2 + $0x4] ss:$8 sps:$4 sm:$0xff]   ;;  %v3366_v1 = vld [vmem:[%s5456_s2] ss:$8 sps:$4 sm:$0xff]   ;;  %v5462_v2 = vmov 0   ;;  %v3474_v20 = vld [vmem:[%s5455_s1 + $0x10] sm:$0xff] }
  0x10   :  { %189 = vmatprep.mubr.bf16.mxu0 %v5462_v2  ;;  %680 = vmatprep.mubr.bf16.mxu1 %v5462_v2  ;;  %v3373_v3 = vld [vmem:[%s5456_s2 + $0x14] ss:$8 sps:$4 sm:$0xff]   ;;  %v3379_v4 = vld [vmem:[%s5456_s2 + $0x10] ss:$8 sps:$4 sm:$0xff]   ;;  %v3386_v5 = vld [vmem:[%s5456_s2 + $0x24] ss:$8 sps:$4 sm:$0xff]  }
  0x11   :  { %157 = vmatprep.subr.bf16.mxu0 %v2889_v0  ;;  %648 = vmatprep.subr.bf16.mxu1 %v2889_v0  ;;  %v3393_v6 = vld [vmem:[%s5456_s2 + $0x20] ss:$8 sps:$4 sm:$0xff]   ;;  %v3400_v7 = vld [vmem:[%s5456_s2 + $0x34] ss:$8 sps:$4 sm:$0xff]   ;;  %v3407_v8 = vld [vmem:[%s5456_s2 + $0x30] ss:$8 sps:$4 sm:$0xff]  }
  0x12   :  { %158 = vmatpush1.bf16.msra.mxu0 %v3366_v1  ;;  %649 = vmatpush1.bf16.msra.mxu1 %v3366_v1  ;;  %v3414_v9 = vld [vmem:[%s5456_s2 + $0x44] ss:$8 sps:$4 sm:$0xff]   ;;  %v3421_v10 = vld [vmem:[%s5456_s2 + $0x40] ss:$8 sps:$4 sm:$0xff]   ;;  %v3428_v11 = vld [vmem:[%s5456_s2 + $0x54] ss:$8 sps:$4 sm:$0xff]  }
  0x13   :  { %159 = vmatprep.subr.bf16.mxu0 %v3373_v3  ;;  %650 = vmatprep.subr.bf16.mxu1 %v3373_v3  ;;  %v3435_v12 = vld [vmem:[%s5456_s2 + $0x50] ss:$8 sps:$4 sm:$0xff]   ;;  %v3442_v13 = vld [vmem:[%s5456_s2 + $0x64] ss:$8 sps:$4 sm:$0xff]   ;;  %v2909_v14 = vld [vmem:[%s5456_s2 + $0x60] ss:$8 sps:$4 sm:$0xff]  }
  0x14   :  { %5498 = vst [vmem:[#allocation5_spill] sm:$0xff] %v3435_v12  ;;  %5499 = vst [vmem:[#allocation6_spill] sm:$0xff] %v3442_v13  ;;  %v2910_v15 = vld [vmem:[%s5456_s2 + $0x74] ss:$8 sps:$4 sm:$0xff]   ;;  %v2912_v16 = vld [vmem:[%s5456_s2 + $0x70] ss:$8 sps:$4 sm:$0xff]  }
  0x15   :  { %v3461_v17 = vld [vmem:[%s5455_s1] sm:$0xff]  ;;  %v3466_v18 = vld [vmem:[%s5455_s1 + $0x8] sm:$0xff]  ;;  %v3479_v21 = vld [vmem:[%s5455_s1 + $0x18] sm:$0xff]  ;;  %s35_s21 = sld [smem:[#allocation2]]  ;;  %s2870_s22 = sld [smem:[#allocation2 + $0x1]] }
  0x16   :  { %160 = vmatpush1.bf16.msra.mxu0 %v3379_v4  ;;  %651 = vmatpush1.bf16.msra.mxu1 %v3379_v4  ;;  %v69_v19 = vpack.c.bf16 %v3466_v18, %v3461_v17  ;;  %v70_v22 = vpack.c.bf16 %v3479_v21, %v3474_v20  ;;  %v3491_v23 = vld [vmem:[%s5455_s1 + $0x20] sm:$0xff]  ;;  %v3496_v24 = vld [vmem:[%s5455_s1 + $0x28] sm:$0xff]  ;;  %v3508_v26 = vld [vmem:[%s5455_s1 + $0x30] sm:$0xff] }
  0x17   :  { %161 = vmatprep.subr.bf16.mxu0 %v3386_v5  ;;  %652 = vmatprep.subr.bf16.mxu1 %v3386_v5  ;;  %v71_v25 = vpack.c.bf16 %v3496_v24, %v3491_v23  ;;  %v3513_v27 = vld [vmem:[%s5455_s1 + $0x38] sm:$0xff]  ;;  %v3525_v29 = vld [vmem:[%s5455_s1 + $0x40] sm:$0xff]  ;;  %v3530_v30 = vld [vmem:[%s5455_s1 + $0x48] sm:$0xff] }
  0x18   :  { %v72_v28 = vpack.c.bf16 %v3513_v27, %v3508_v26  ;;  %v73_v31 = vpack.c.bf16 %v3530_v30, %v3525_v29  ;;  %v3538_v32 = vld [vmem:[%s5455_s1 + $0x50] sm:$0xff]  ;;  %v3543_v33 = vld [vmem:[%s5455_s1 + $0x58] sm:$0xff]  ;;  %v3551_v35 = vld [vmem:[%s5455_s1 + $0x60] sm:$0xff] }
  0x19   :  { %v74_v34 = vpack.c.bf16 %v3543_v33, %v3538_v32  ;;  %v3556_v36 = vld [vmem:[%s5455_s1 + $0x68] sm:$0xff]  ;;  %v3564_v38 = vld [vmem:[%s5455_s1 + $0x70] sm:$0xff]  ;;  %v3569_v39 = vld [vmem:[%s5455_s1 + $0x78] sm:$0xff] }
  0x1a   :  { %162 = vmatpush1.bf16.msra.mxu0 %v3393_v6  ;;  %653 = vmatpush1.bf16.msra.mxu1 %v3393_v6  ;;  %v75_v37 = vpack.c.bf16 %v3556_v36, %v3551_v35  ;;  %v76_v40 = vpack.c.bf16 %v3569_v39, %v3564_v38 }
  0x1b   :  { %163 = vmatprep.subr.bf16.mxu0 %v3400_v7  ;;  %654 = vmatprep.subr.bf16.mxu1 %v3400_v7  ;;  %v3574_v44 = vstv %s35_s21  ;;  %v3576_v48 = vstv %s2870_s22 }
  0x1e   :  { %164 = vmatpush1.bf16.msra.mxu0 %v3407_v8  ;;  %655 = vmatpush1.bf16.msra.mxu1 %v3407_v8 }
  0x1f   :  { %165 = vmatprep.subr.bf16.mxu0 %v3414_v9  ;;  %656 = vmatprep.subr.bf16.mxu1 %v3414_v9 }
  0x22   :  { %166 = vmatpush1.bf16.msra.mxu0 %v3421_v10  ;;  %657 = vmatpush1.bf16.msra.mxu1 %v3421_v10 }
  0x23   :  { %167 = vmatprep.subr.bf16.mxu0 %v3428_v11  ;;  %658 = vmatprep.subr.bf16.mxu1 %v3428_v11 }
  0x26   :  { %168 = vmatpush1.bf16.msra.mxu0 %v3435_v12  ;;  %659 = vmatpush1.bf16.msra.mxu1 %v3435_v12 }
  0x27   :  { %169 = vmatprep.subr.bf16.mxu0 %v3442_v13  ;;  %660 = vmatprep.subr.bf16.mxu1 %v3442_v13 }
  0x2a   :  { %170 = vmatpush1.bf16.msra.mxu0 %v2909_v14  ;;  %661 = vmatpush1.bf16.msra.mxu1 %v2909_v14 }
  0x2b   :  { %171 = vmatprep.subr.bf16.mxu0 %v2910_v15  ;;  %662 = vmatprep.subr.bf16.mxu1 %v2910_v15 }
  0x2e   :  { %172 = vmatpush1.bf16.msra.mxu0 %v2912_v16  ;;  %663 = vmatpush1.bf16.msra.mxu1 %v2912_v16 }
  0x2f   :  { %1137 = vmatprep.subr.bf16.mxu0 %v2889_v0  ;;  %1626 = vmatprep.subr.bf16.mxu1 %v2889_v0 }
  0x31   :  { %190 = vmatmul.mubr.bf16.vlgmr.msra.gmra.mrb[0].mxu0 %v69_v19 }
  0x32   :  { %199 = vmatprep.mubr.bf16.mxu0 %v5462_v2  ;;  %1138 = vmatpush1.bf16.msra.mxu0 %v3366_v1 }
  0x33   :  { %1139 = vmatprep.subr.bf16.mxu0 %v3373_v3 }
  0x36   :  { %1140 = vmatpush1.bf16.msra.mxu0 %v3379_v4 }
  0x37   :  { %1141 = vmatprep.subr.bf16.mxu0 %v3386_v5 }
  0x39   :  { %200 = vmatmul.mubr.bf16.gmra.mrb[4].mxu0 %v70_v22 }
  0x3a   :  { %209 = vmatprep.mubr.bf16.mxu0 %v5462_v2  ;;  %1142 = vmatpush1.bf16.msra.mxu0 %v3393_v6 }
  0x3b   :  { %1143 = vmatprep.subr.bf16.mxu0 %v3400_v7 }
  0x3e   :  { %1144 = vmatpush1.bf16.msra.mxu0 %v3407_v8 }
  0x3f   :  { %1145 = vmatprep.subr.bf16.mxu0 %v3414_v9 }
  0x41   :  { %210 = vmatmul.mubr.bf16.gmra.mrb[8].mxu0 %v71_v25 }
  0x42   :  { %219 = vmatprep.mubr.bf16.mxu0 %v5462_v2  ;;  %1146 = vmatpush1.bf16.msra.mxu0 %v3421_v10 }
  0x43   :  { %1147 = vmatprep.subr.bf16.mxu0 %v3428_v11 }
  0x46   :  { %1148 = vmatpush1.bf16.msra.mxu0 %v3435_v12 }
  0x47   :  { %1149 = vmatprep.subr.bf16.mxu0 %v3442_v13 }
  0x49   :  { %220 = vmatmul.mubr.bf16.gmra.mrb[12].mxu0 %v72_v28 }
  0x4a   :  { %229 = vmatprep.mubr.bf16.mxu0 %v5462_v2  ;;  %1150 = vmatpush1.bf16.msra.mxu0 %v2909_v14 }
  0x4b   :  { %1151 = vmatprep.subr.bf16.mxu0 %v2910_v15 }
  0x4e   :  { %1152 = vmatpush1.bf16.msra.mxu0 %v2912_v16 }
  0x51   :  { %230 = vmatmul.mubr.bf16.gmra.mrb[16].mxu0 %v73_v31 }
  0x52   :  { %239 = vmatprep.mubr.bf16.mxu0 %v5462_v2 }
  0x59   :  { %240 = vmatmul.mubr.bf16.gmra.mrb[20].mxu0 %v74_v34 }
  0x5a   :  { %249 = vmatprep.mubr.bf16.mxu0 %v5462_v2 }
  0x61   :  { %250 = vmatmul.mubr.bf16.gmra.mrb[24].mxu0 %v75_v37 }
  0x62   :  { %259 = vmatprep.mubr.bf16.mxu0 %v5462_v2 }
  0x69   :  { %260 = vmatmul.mubr.bf16.gmra.mrb[28].mxu0 %v76_v40 }
  0x6a   :  { %1169 = vmatprep.mubr.bf16.mxu0 %v5462_v2 }
 0x104   :  { %v191_v41 = vpop.f32.mrb[0].mxu0 }
 0x105   :  { %v270_v42 = vmax.f32 %v191_v41, 0.0  ;;  %v193_v43 = vpop.f32.mrb[1].mxu0 }
 0x106   :  { %v319_v45 = vmax.f32 %v193_v43, 0.0  ;;  %v195_v46 = vpop.f32.mrb[2].mxu0 }
 0x107   :  { %v286_v47 = vmin.f32 %v270_v42, 1.0  ;;  %v271_v49 = vmax.f32 %v195_v46, 0.0  ;;  %v197_v50 = vpop.f32.mrb[3].mxu0 }
 0x108   :  { %v335_v51 = vmin.f32 %v319_v45, 1.0  ;;  %v320_v52 = vmax.f32 %v197_v50, 0.0 }
 0x109   :  { %v303_v53 = vmul.f32 %v3574_v44, %v286_v47  ;;  %v287_v54 = vmin.f32 %v271_v49, 1.0 }
 0x10a   :  { %v352_v55 = vmul.f32 %v3576_v48, %v335_v51  ;;  %v336_v56 = vmin.f32 %v320_v52, 1.0 }
 0x10b   :  { %v304_v57 = vmul.f32 %v3574_v44, %v287_v54 }
 0x10c   :  { %v368_v58 = vadd.f32 %v352_v55, %v303_v53  ;;  %v353_v59 = vmul.f32 %v3576_v48, %v336_v56  ;;  %v201_v60 = vpop.f32.mrb[4].mxu0 }
 0x10d   :  { %v272_v61 = vmax.f32 %v201_v60, 0.0  ;;  %v203_v62 = vpop.f32.mrb[5].mxu0 }
 0x10e   :  { %v3583_v63 = vmax.f32 %v3461_v17, %v368_v58  ;;  %v369_v0 = vadd.f32 %v353_v59, %v304_v57  ;;  %v321_v14 = vmax.f32 %v203_v62, 0.0  ;;  %v205_v15 = vpop.f32.mrb[6].mxu0 }
 0x10f   :  { %v288_v16 = vmin.f32 %v272_v61, 1.0  ;;  %v273_v19 = vmax.f32 %v205_v15, 0.0  ;;  %v207_v22 = vpop.f32.mrb[7].mxu0 }
 0x110   :  { %v400_v25 = vsub.f32 %v3461_v17, %v3583_v63  ;;  %v464_v28 = vsub.f32 %v368_v58, %v3583_v63  ;;  %v3589_v31 = vmax.f32 %v3466_v18, %v369_v0  ;;  %v337_v34 = vmin.f32 %v321_v14, 1.0 }
 0x111   :  { %v305_v37 = vmul.f32 %v3574_v44, %v288_v16  ;;  %v289_v40 = vmin.f32 %v273_v19, 1.0  ;;  %v322_v41 = vmax.f32 %v207_v22, 0.0 }
 0x112   :  { %v416_v42 = vmul.f32 100.0, %v400_v25  ;;  %v401_v43 = vsub.f32 %v3466_v18, %v3589_v31  ;;  %v465_v45 = vsub.f32 %v369_v0, %v3589_v31  ;;  %v480_v46 = vmul.f32 100.0, %v464_v28 }
 0x113   :  { %v354_v47 = vmul.f32 %v3576_v48, %v337_v34  ;;  %v306_v17 = vmul.f32 %v3574_v44, %v289_v40  ;;  %v338_v49 = vmin.f32 %v322_v41, 1.0 }
 0x114   :  { %v432_v50 = vmul.f32 1.442695, %v416_v42  ;;  %v417_v51 = vmul.f32 100.0, %v401_v43  ;;  %v481_v52 = vmul.f32 100.0, %v465_v45  ;;  %v211_v55 = vpop.f32.mrb[8].mxu0 }
 0x115   :  { %v370_v53 = vadd.f32 %v354_v47, %v305_v37  ;;  %v355_v54 = vmul.f32 %v3576_v48, %v338_v49  ;;  %v274_v56 = vmax.f32 %v211_v55, 0.0  ;;  %v213_v57 = vpop.f32.mrb[9].mxu0  ;;  %v496_v58 = vmul.f32 1.442695, %v480_v46 }
 0x116   :  { %v323_v60 = vmax.f32 %v213_v57, 0.0  ;;  %v215_v61 = vpop.f32.mrb[10].mxu0  ;;  %2913 = vpow2.f32 %v432_v50  ;;  %v434_v62 = vmul.f32 1.442695, %v417_v51  ;;  %v498_v16 = vmul.f32 1.442695, %v481_v52 }
 0x117   :  { %v3599_v18 = vmax.f32 %v3474_v20, %v370_v53  ;;  %v371_v59 = vadd.f32 %v355_v54, %v306_v17  ;;  %v290_v0 = vmin.f32 %v274_v56, 1.0  ;;  %v275_v14 = vmax.f32 %v215_v61, 0.0  ;;  %v217_v15 = vpop.f32.mrb[11].mxu0 }
 0x118   :  { %v339_v34 = vmin.f32 %v323_v60, 1.0  ;;  %v324_v40 = vmax.f32 %v217_v15, 0.0  ;;  %2915 = vpow2.f32 %v496_v58 }
 0x119   :  { %v402_v19 = vsub.f32 %v3474_v20, %v3599_v18  ;;  %v466_v22 = vsub.f32 %v370_v53, %v3599_v18  ;;  %v3605_v25 = vmax.f32 %v3479_v21, %v371_v59  ;;  %v307_v28 = vmul.f32 %v3574_v44, %v290_v0 }
 0x11a   :  { %v291_v37 = vmin.f32 %v275_v14, 1.0  ;;  %v356_v20 = vmul.f32 %v3576_v48, %v339_v34  ;;  %v340_v47 = vmin.f32 %v324_v40, 1.0  ;;  %2917 = vpow2.f32 %v434_v62 }
 0x11b   :  { %v418_v41 = vmul.f32 100.0, %v402_v19  ;;  %v482_v42 = vmul.f32 100.0, %v466_v22  ;;  %v403_v43 = vsub.f32 %v3479_v21, %v3605_v25  ;;  %v467_v45 = vsub.f32 %v371_v59, %v3605_v25 }
 0x11c   :  { %v308_v46 = vmul.f32 %v3574_v44, %v291_v37  ;;  %v221_v17 = vpop.f32.mrb[12].mxu0  ;;  %v372_v51 = vadd.f32 %v356_v20, %v307_v28  ;;  %v357_v52 = vmul.f32 %v3576_v48, %v340_v47  ;;  %2919 = vpow2.f32 %v498_v16 }
 0x11d   :  { %v436_v49 = vmul.f32 1.442695, %v418_v41  ;;  %v419_v50 = vmul.f32 100.0, %v403_v43  ;;  %v276_v53 = vmax.f32 %v221_v17, 0.0  ;;  %v223_v54 = vpop.f32.mrb[13].mxu0  ;;  %v483_v57 = vmul.f32 100.0, %v467_v45 }
 0x11e   :  { %v500_v55 = vmul.f32 1.442695, %v482_v42  ;;  %v325_v56 = vmax.f32 %v223_v54, 0.0  ;;  %v225_v21 = vpop.f32.mrb[14].mxu0  ;;  %v3615_v58 = vmax.f32 %v3491_v23, %v372_v51  ;;  %v373_v59 = vadd.f32 %v357_v52, %v308_v46 }
 0x11f   :  { %v292_v60 = vmin.f32 %v276_v53, 1.0  ;;  %v227_v61 = vpop.f32.mrb[15].mxu0  ;;  %2921 = vpow2.f32 %v436_v49  ;;  %v277_v0 = vmax.f32 %v225_v21, 0.0  ;;  %v438_v19 = vmul.f32 1.442695, %v419_v50 }
 0x120   :  { %v341_v62 = vmin.f32 %v325_v56, 1.0  ;;  %v326_v14 = vmax.f32 %v227_v61, 0.0  ;;  %v3617_v15 = vpop.eup %2913  ;;  %v404_v16 = vsub.f32 %v3491_v23, %v3615_v58  ;;  %v468_v22 = vsub.f32 %v372_v51, %v3615_v58 }
 0x121   :  { %v3623_v28 = vmax.f32 %v3496_v24, %v373_v59  ;;  %v309_v34 = vmul.f32 %v3574_v44, %v292_v60  ;;  %v293_v40 = vmin.f32 %v277_v0, 1.0  ;;  %v502_v52 = vmul.f32 1.442695, %v483_v57 }
 0x122   :  { %v358_v37 = vmul.f32 %v3576_v48, %v341_v62  ;;  %v342_v41 = vmin.f32 %v326_v14, 1.0  ;;  %v420_v42 = vmul.f32 100.0, %v404_v16  ;;  %v484_v43 = vmul.f32 100.0, %v468_v22  ;;  %v2916_v23 = vpop.eup %2915 }
 0x123   :  { %v405_v45 = vsub.f32 %v3496_v24, %v3623_v28  ;;  %v469_v20 = vsub.f32 %v373_v59, %v3623_v28  ;;  %v310_v17 = vmul.f32 %v3574_v44, %v293_v40  ;;  %2923 = vpow2.f32 %v500_v55 }
 0x124   :  { %v231_v46 = vpop.f32.mrb[16].mxu0  ;;  %v374_v47 = vadd.f32 %v358_v37, %v309_v34  ;;  %v359_v49 = vmul.f32 %v3576_v48, %v342_v41  ;;  %v440_v53 = vmul.f32 1.442695, %v420_v42  ;;  %v3632_v21 = vpop.eup %2917  ;;  %v504_v0 = vmul.f32 1.442695, %v484_v43 }
 0x125   :  { %v278_v50 = vmax.f32 %v231_v46, 0.0  ;;  %v233_v51 = vpop.f32.mrb[17].mxu0  ;;  %v421_v54 = vmul.f32 100.0, %v405_v45  ;;  %v485_v56 = vmul.f32 100.0, %v469_v20  ;;  %2925 = vpow2.f32 %v438_v19 }
 0x126   :  { %v3635_v60 = vmax.f32 %v3508_v26, %v374_v47  ;;  %v375_v24 = vadd.f32 %v359_v49, %v310_v17  ;;  %v327_v61 = vmax.f32 %v233_v51, 0.0  ;;  %v235_v62 = vpop.f32.mrb[18].mxu0  ;;  %v3637_v22 = vpop.eup %2919  ;;  %2927 = vpow2.f32 %v502_v52 }
 0x127   :  { %v294_v59 = vmin.f32 %v278_v50, 1.0  ;;  %v279_v14 = vmax.f32 %v235_v62, 0.0  ;;  %v237_v16 = vpop.f32.mrb[19].mxu0  ;;  %v442_v57 = vmul.f32 1.442695, %v421_v54  ;;  %2929 = vpow2.f32 %v440_v53 }
 0x128   :  { %v406_v34 = vsub.f32 %v3508_v26, %v3635_v60  ;;  %v3642_v37 = vmax.f32 %v3513_v27, %v375_v24  ;;  %v343_v41 = vmin.f32 %v327_v61, 1.0  ;;  %v506_v55 = vmul.f32 1.442695, %v485_v56 }
 0x129   :  { %v311_v40 = vmul.f32 %v3574_v44, %v294_v59  ;;  %v295_v42 = vmin.f32 %v279_v14, 1.0  ;;  %v3645_v45 = vpop.eup %2921  ;;  %v470_v43 = vsub.f32 %v374_v47, %v3635_v60  ;;  %2931 = vpow2.f32 %v504_v0 }
 0x12a   :  { %v407_v19 = vsub.f32 %v3513_v27, %v3642_v37  ;;  %v360_v26 = vmul.f32 %v3576_v48, %v343_v41  ;;  %v328_v20 = vmax.f32 %v237_v16, 0.0  ;;  %2933 = vpow2.f32 %v442_v57 }
 0x12b   :  { %v422_v17 = vmul.f32 100.0, %v406_v34  ;;  %v471_v50 = vsub.f32 %v375_v24, %v3642_v37  ;;  %v312_v52 = vmul.f32 %v3574_v44, %v295_v42  ;;  %2935 = vpow2.f32 %v506_v55 }
 0x12c   :  { %v241_v46 = vpop.f32.mrb[20].mxu0  ;;  %v376_v51 = vadd.f32 %v360_v26, %v311_v40  ;;  %v344_v53 = vmin.f32 %v328_v20, 1.0  ;;  %v486_v47 = vmul.f32 100.0, %v470_v43  ;;  %v423_v27 = vmul.f32 100.0, %v407_v19 }
 0x12d   :  { %v280_v49 = vmax.f32 %v241_v46, 0.0  ;;  %v243_v54 = vpop.f32.mrb[21].mxu0  ;;  %v528_v16 = vadd.f32 %v2916_v23, %v3617_v15  ;;  %v444_v24 = vmul.f32 1.442695, %v422_v17  ;;  %v3659_v41 = vpop.eup %2923  ;;  %v487_v42 = vmul.f32 100.0, %v471_v50 }
 0x12e   :  { %v329_v59 = vmax.f32 %v243_v54, 0.0  ;;  %v245_v61 = vpop.f32.mrb[22].mxu0  ;;  %v3654_v62 = vmax.f32 %v3525_v29, %v376_v51  ;;  %v361_v0 = vmul.f32 %v3576_v48, %v344_v53  ;;  %v508_v20 = vmul.f32 1.442695, %v486_v47 }
 0x12f   :  { %v296_v56 = vmin.f32 %v280_v49, 1.0  ;;  %v247_v14 = vpop.f32.mrb[23].mxu0  ;;  %v281_v40 = vmax.f32 %v245_v61, 0.0  ;;  %v3664_v26 = vpop.eup %2925  ;;  %v446_v49 = vmul.f32 1.442695, %v423_v27  ;;  %2937 = vlog2.f32 %v528_v16 }
 0x130   :  { %v345_v34 = vmin.f32 %v329_v59, 1.0  ;;  %v408_v55 = vsub.f32 %v3525_v29, %v3654_v62  ;;  %v472_v43 = vsub.f32 %v376_v51, %v3654_v62  ;;  %v377_v19 = vadd.f32 %v361_v0, %v312_v52  ;;  %v3667_v17 = vpop.eup %2927 }
 0x131   :  { %v313_v57 = vmul.f32 %v3574_v44, %v296_v56  ;;  %v297_v15 = vmin.f32 %v281_v40, 1.0  ;;  %v330_v23 = vmax.f32 %v247_v14, 0.0  ;;  %v3672_v29 = vpop.eup %2929  ;;  %2939 = vpow2.f32 %v444_v24 }
 0x132   :  { %v362_v46 = vmul.f32 %v3576_v48, %v345_v34  ;;  %v424_v53 = vmul.f32 100.0, %v408_v55  ;;  %v3670_v54 = vmax.f32 %v3530_v30, %v377_v19  ;;  %v510_v0 = vmul.f32 1.442695, %v487_v42 }
 0x133   :  { %v314_v52 = vmul.f32 %v3574_v44, %v297_v15  ;;  %v346_v56 = vmin.f32 %v330_v23, 1.0  ;;  %v3675_v61 = vpop.eup %2931  ;;  %v488_v14 = vmul.f32 100.0, %v472_v43  ;;  %2941 = vpow2.f32 %v508_v20 }
 0x134   :  { %v251_v50 = vpop.f32.mrb[24].mxu0  ;;  %v378_v51 = vadd.f32 %v362_v46, %v313_v57  ;;  %v409_v27 = vsub.f32 %v3530_v30, %v3670_v54  ;;  %v3679_v40 = vpop.eup %2933  ;;  %v473_v23 = vsub.f32 %v377_v19, %v3670_v54  ;;  %2943 = vpow2.f32 %v446_v49 }
 0x135   :  { %v282_v47 = vmax.f32 %v251_v50, 0.0  ;;  %v253_v59 = vpop.f32.mrb[25].mxu0  ;;  %v363_v57 = vmul.f32 %v3576_v48, %v346_v56  ;;  %v3686_v42 = vpop.eup %2935  ;;  %v448_v43 = vmul.f32 1.442695, %v424_v53  ;;  %2945 = vpow2.f32 %v510_v0 }
 0x136   :  { %v255_v34 = vpop.f32.mrb[26].mxu0  ;;  %v3682_v16 = vmax.f32 %v3538_v32, %v378_v51  ;;  %v331_v46 = vmax.f32 %v253_v59, 0.0  ;;  %v512_v56 = vmul.f32 1.442695, %v488_v14  ;;  %v489_v19 = vmul.f32 100.0, %v473_v23 }
 0x137   :  { %v298_v55 = vmin.f32 %v282_v47, 1.0  ;;  %v257_v15 = vpop.f32.mrb[27].mxu0  ;;  %v283_v24 = vmax.f32 %v255_v34, 0.0  ;;  %v379_v50 = vadd.f32 %v363_v57, %v314_v52  ;;  %v425_v47 = vmul.f32 100.0, %v409_v27 }
 0x138   :  { %5500 = vst [vmem:[#allocation7_spill] sm:$0xff] %v3682_v16  ;;  %v410_v30 = vsub.f32 %v3538_v32, %v3682_v16  ;;  %v347_v13 = vmin.f32 %v331_v46, 1.0  ;;  %v332_v12 = vmax.f32 %v257_v15, 0.0  ;;  %v529_v53 = vadd.f32 %v3637_v22, %v3632_v21 }
 0x139   :  { %v315_v2 = vmul.f32 %v3574_v44, %v298_v55  ;;  %v3692_v59 = vmax.f32 %v3543_v33, %v379_v50  ;;  %v299_v20 = vmin.f32 %v283_v24, 1.0  ;;  %2947 = vpow2.f32 %v448_v43  ;;  %v2938_v27 = vpop.eup %2937 }
 0x13a   :  { %v364_v34 = vmul.f32 %v3576_v48, %v347_v13  ;;  %v426_v32 = vmul.f32 100.0, %v410_v30  ;;  %v474_v52 = vsub.f32 %v378_v51, %v3682_v16  ;;  %v348_v46 = vmin.f32 %v332_v12, 1.0 }
 0x13b   :  { %5501 = vst [vmem:[#allocation8_spill] sm:$0xff] %v3692_v59  ;;  %v411_v0 = vsub.f32 %v3543_v33, %v3692_v59  ;;  %v475_v57 = vsub.f32 %v379_v50, %v3692_v59  ;;  %v316_v13 = vmul.f32 %v3574_v44, %v299_v20  ;;  %2949 = vpow2.f32 %v512_v56  ;;  %v3704_v24 = vpop.eup %2939 }
 0x13c   :  { %v261_v49 = vpop.f32.mrb[28].mxu0  ;;  %v3701_v55 = vadd.f32 %v364_v34, %v315_v2  ;;  %v450_v23 = vmul.f32 1.442695, %v425_v47  ;;  %v514_v51 = vmul.f32 1.442695, %v489_v19  ;;  %v365_v30 = vmul.f32 %v3576_v48, %v348_v46 }
 0x13d   :  { %v263_v14 = vpop.f32.mrb[29].mxu0  ;;  %v284_v21 = vmax.f32 %v261_v49, 0.0  ;;  %v427_v43 = vmul.f32 100.0, %v411_v0  ;;  %v490_v2 = vmul.f32 100.0, %v474_v52  ;;  %2951 = vlog2.f32 %v529_v53  ;;  %v2942_v20 = vpop.eup %2941 }
 0x13e   :  { %v265_v15 = vpop.f32.mrb[30].mxu0  ;;  %v3708_v33 = vmax.f32 %v3551_v35, %v3701_v55  ;;  %v452_v12 = vmul.f32 1.442695, %v426_v32  ;;  %v491_v34 = vmul.f32 100.0, %v475_v57  ;;  %v381_v56 = vadd.f32 %v365_v30, %v316_v13  ;;  %v3711_v49 = vpop.eup %2943 }
 0x13f   :  { %v267_v22 = vpop.f32.mrb[31].mxu0  ;;  %v300_v50 = vmin.f32 %v284_v21, 1.0  ;;  %v545_v47 = vmul.f32 0.6931472, %v2938_v27  ;;  %2953 = vpow2.f32 %v450_v23  ;;  %v333_v16 = vmax.f32 %v263_v14, 0.0  ;;  %v3715_v0 = vpop.eup %2945 }
 0x140   :  { %v530_v19 = vadd.f32 %v3659_v41, %v3645_v45  ;;  %2955 = vpow2.f32 %v514_v51  ;;  %v454_v59 = vmul.f32 1.442695, %v427_v43  ;;  %v412_v52 = vsub.f32 %v3551_v35, %v3708_v33 }
 0x141   :  { %v3720_v53 = vmax.f32 %v3556_v36, %v381_v56  ;;  %v317_v32 = vmul.f32 %v3574_v44, %v300_v50  ;;  %v349_v27 = vmin.f32 %v333_v16, 1.0  ;;  %v285_v57 = vmax.f32 %v265_v15, 0.0 }
 0x142   :  { %v334_v13 = vmax.f32 %v267_v22, 0.0  ;;  %2957 = vpow2.f32 %v452_v12  ;;  %v516_v14 = vmul.f32 1.442695, %v490_v2  ;;  %v518_v46 = vmul.f32 1.442695, %v491_v34 }
 0x143   :  { %v576_v23 = vmul.f32 0.01, %v545_v47  ;;  %v2948_v45 = vpop.eup %2947  ;;  %v413_v41 = vsub.f32 %v3556_v36, %v3720_v53  ;;  %v366_v21 = vmul.f32 %v3576_v48, %v349_v27  ;;  %v301_v51 = vmin.f32 %v285_v57, 1.0 }
 0x144   :  { %v350_v35 = vmin.f32 %v334_v13, 1.0  ;;  %2959 = vpow2.f32 %v454_v59  ;;  %v476_v43 = vsub.f32 %v3701_v55, %v3708_v33  ;;  %v477_v16 = vsub.f32 %v381_v56, %v3720_v53 }
 0x145   :  { %v531_v15 = vadd.f32 %v3667_v17, %v3664_v26  ;;  %v2950_v22 = vpop.eup %2949  ;;  %v428_v30 = vmul.f32 100.0, %v412_v52  ;;  %v382_v2 = vadd.f32 %v366_v21, %v317_v32  ;;  %v318_v50 = vmul.f32 %v3574_v44, %v301_v51 }
 0x146   :  { %v367_v36 = vmul.f32 %v3576_v48, %v350_v35  ;;  %v592_v12 = vadd.f32 %v576_v23, %v3583_v63  ;;  %2961 = vlog2.f32 %v530_v19  ;;  %v532_v59 = vadd.f32 %v3675_v61, %v3672_v29 }
 0x147   :  { %v2952_v34 = vpop.eup %2951  ;;  %v429_v55 = vmul.f32 100.0, %v413_v41  ;;  %v3737_v56 = vmax.f32 %v3564_v38, %v382_v2  ;;  %2963 = vlog2.f32 %v531_v15  ;;  %v493_v26 = vmul.f32 100.0, %v477_v16 }
 0x148   :  { %v383_v47 = vadd.f32 %v367_v36, %v318_v50  ;;  %2965 = vpow2.f32 %v518_v46  ;;  %v547_v17 = vmul.f32 0.6931472, %v2952_v34  ;;  %v533_v52 = vadd.f32 %v3686_v42, %v3679_v40 }
 0x149   :  { %v2954_v32 = vpop.eup %2953  ;;  %2967 = vpow2.f32 %v516_v14  ;;  %v456_v63 = vmul.f32 1.442695, %v428_v30  ;;  %v492_v19 = vmul.f32 100.0, %v476_v43  ;;  %v414_v57 = vsub.f32 %v3564_v38, %v3737_v56 }
 0x14a   :  { %v3742_v27 = vmax.f32 %v3569_v39, %v383_v47  ;;  %v2956_v29 = vpop.eup %2955  ;;  %v577_v61 = vmul.f32 0.01, %v547_v17  ;;  %2969 = vlog2.f32 %v532_v59  ;;  %v534_v13 = vadd.f32 %v2942_v20, %v3704_v24 }
 0x14b   :  { %v458_v46 = vmul.f32 1.442695, %v429_v55  ;;  %v608_v23 = vmax.f32 %v592_v12, 0.0  ;;  %v522_v14 = vmul.f32 1.442695, %v493_v26  ;;  %2971 = vlog2.f32 %v533_v52 }
 0x14c   :  { %v415_v40 = vsub.f32 %v3569_v39, %v3742_v27  ;;  %v2958_v42 = vpop.eup %2957  ;;  %v593_v41 = vadd.f32 %v577_v61, %v3589_v31  ;;  %v479_v21 = vsub.f32 %v383_v47, %v3742_v27  ;;  %2973 = vpow2.f32 %v456_v63 }
 0x14d   :  { %v520_v51 = vmul.f32 1.442695, %v492_v19  ;;  %v430_v38 = vmul.f32 100.0, %v414_v57  ;;  %v478_v16 = vsub.f32 %v382_v2, %v3737_v56  ;;  %2975 = vlog2.f32 %v534_v13 }
 0x14e   :  { %v2960_v35 = vpop.eup %2959  ;;  %v609_v43 = vmax.f32 %v593_v41, 0.0  ;;  %2977 = vpow2.f32 %v458_v46  ;;  %v3752_v24 = vmin.f32 %v608_v23, 1.0  ;;  %v431_v20 = vmul.f32 100.0, %v415_v40 }
 0x14f   :  { %v535_v39 = vadd.f32 %v3715_v0, %v3711_v49  ;;  %2979 = vpow2.f32 %v522_v14  ;;  %v495_v30 = vmul.f32 100.0, %v479_v21  ;;  %v536_v50 = vadd.f32 %v2950_v22, %v2948_v45 }
 0x150   :  { %v2962_v15 = vpop.eup %2961  ;;  %v3756_v31 = vmin.f32 %v609_v43, 1.0  ;;  %2981 = vpow2.f32 %v520_v51  ;;  %v537_v59 = vadd.f32 %v2956_v29, %v2954_v32  ;;  %v460_v55 = vmul.f32 1.442695, %v430_v38 }
 0x151   :  { %v2964_v36 = vpop.eup %2963  ;;  %v549_v12 = vmul.f32 0.6931472, %v2962_v15  ;;  %v494_v47 = vmul.f32 100.0, %v478_v16  ;;  %v462_v52 = vmul.f32 1.442695, %v431_v20  ;;  %2983 = vlog2.f32 %v535_v39 }
 0x152   :  { %v2966_v34 = vpop.eup %2965  ;;  %v640_v2 = vpack.c.bf16 %v3756_v31, %v3752_v24  ;;  %v551_v26 = vmul.f32 0.6931472, %v2964_v36  ;;  %v526_v63 = vmul.f32 1.442695, %v495_v30  ;;  %2985 = vlog2.f32 %v536_v50 }
 0x153   :  { %v2968_v17 = vpop.eup %2967  ;;  %v578_v49 = vmul.f32 0.01, %v549_v12  ;;  %v5502_v45 = vmov 0   ;;  %2987 = vlog2.f32 %v537_v59  ;;  %v539_v29 = vadd.f32 %v2966_v34, %v2960_v35 }
 0x154   :  { %v2970_v0 = vpop.eup %2969  ;;  %681 = vmatmul.mubr.bf16.vlgmr.msra.gmra.mrb[0].mxu1 %v640_v2  ;;  %v579_v19 = vmul.f32 0.01, %v551_v26  ;;  %2989 = vpow2.f32 %v460_v55  ;;  %v524_v57 = vmul.f32 1.442695, %v494_v47  ;;  %v538_v46 = vadd.f32 %v2968_v17, %v2958_v42 }
 0x155   :  { %690 = vmatprep.mubr.bf16.mxu1 %v5502_v45  ;;  %v594_v22 = vadd.f32 %v578_v49, %v3599_v18  ;;  %v553_v32 = vmul.f32 0.6931472, %v2970_v0  ;;  %1627 = vmatpush1.bf16.msra.mxu1 %v3366_v1  ;;  %v2972_v61 = vpop.eup %2971  ;;  %2991 = vpow2.f32 %v462_v52 }
 0x156   :  { %v595_v13 = vadd.f32 %v579_v19, %v3605_v25  ;;  %1628 = vmatprep.subr.bf16.mxu1 %v3373_v3  ;;  %v2974_v23 = vpop.eup %2973  ;;  %v555_v14 = vmul.f32 0.6931472, %v2972_v61  ;;  %2993 = vpow2.f32 %v526_v63 }
 0x157   :  { %v610_v40 = vmax.f32 %v594_v22, 0.0  ;;  %v580_v41 = vmul.f32 0.01, %v553_v32  ;;  %v2976_v21 = vpop.eup %2975  ;;  %2995 = vlog2.f32 %v539_v29 }
 0x158   :  { %v611_v18 = vmax.f32 %v595_v13, 0.0  ;;  %v2978_v51 = vpop.eup %2977  ;;  %v581_v35 = vmul.f32 0.01, %v555_v14  ;;  %v557_v43 = vmul.f32 0.6931472, %v2976_v21  ;;  %2997 = vpow2.f32 %v524_v57 }
 0x159   :  { %v596_v1 = vadd.f32 %v580_v41, %v3615_v58  ;;  %1629 = vmatpush1.bf16.msra.mxu1 %v3379_v4  ;;  %v2980_v25 = vpop.eup %2979  ;;  %v3767_v42 = vmin.f32 %v610_v40, 1.0  ;;  %2999 = vlog2.f32 %v538_v46 }
 0x15a   :  { %v3769_v3 = vmin.f32 %v611_v18, 1.0  ;;  %1630 = vmatprep.subr.bf16.mxu1 %v3386_v5  ;;  %v2982_v38 = vpop.eup %2981  ;;  %v597_v16 = vadd.f32 %v581_v35, %v3623_v28  ;;  %v582_v39 = vmul.f32 0.01, %v557_v43  ;;  %v541_v4 = vadd.f32 %v2980_v25, %v2978_v51  ;;  %v5505_v35 = vld [vmem:[#allocation8_spill] sm:$0xff] }
 0x15b   :  { %v612_v20 = vmax.f32 %v596_v1, 0.0  ;;  %v2984_v15 = vpop.eup %2983  ;;  %v540_v59 = vadd.f32 %v2982_v38, %v2974_v23  ;;  %v5503_v23 = vld [vmem:[#allocation5_spill] sm:$0xff]  ;;  %v3298_v25 = vld [vmem:[%s5456_s2 + $0x74] ss:$8 sps:$4 sm:$0xff]  }
 0x15c   :  { %v641_v58 = vpack.c.bf16 %v3769_v3, %v3767_v42  ;;  %v613_v30 = vmax.f32 %v597_v16, 0.0  ;;  %v2986_v50 = vpop.eup %2985  ;;  %v559_v36 = vmul.f32 0.6931472, %v2984_v15  ;;  %v598_v55 = vadd.f32 %v582_v39, %v3635_v60  ;;  %v5506_v16 = vld [vmem:[#allocation7_spill] sm:$0xff] }
 0x15d   :  { %1631 = vmatpush1.bf16.msra.mxu1 %v3393_v6  ;;  %v2988_v5 = vpop.eup %2987  ;;  %v3778_v28 = vmin.f32 %v612_v20, 1.0  ;;  %v561_v47 = vmul.f32 0.6931472, %v2986_v50  ;;  %3001 = vlog2.f32 %v541_v4  ;;  %v3299_v39 = vld [vmem:[%s5456_s2 + $0x70] ss:$8 sps:$4 sm:$0xff]  }
 0x15e   :  { %691 = vmatmul.mubr.bf16.gmra.mrb[4].mxu1 %v641_v58  ;;  %1632 = vmatprep.subr.bf16.mxu1 %v3400_v7  ;;  %v3780_v12 = vmin.f32 %v613_v30, 1.0  ;;  %v2990_v34 = vpop.eup %2989  ;;  %v583_v2 = vmul.f32 0.01, %v559_v36  ;;  %v563_v26 = vmul.f32 0.6931472, %v2988_v5  ;;  %3003 = vlog2.f32 %v540_v59 }
 0x15f   :  { %700 = vmatprep.mubr.bf16.mxu1 %v5502_v45  ;;  %v2992_v6 = vpop.eup %2991  ;;  %v614_v19 = vmax.f32 %v598_v55, 0.0  ;;  %v584_v22 = vmul.f32 0.01, %v561_v47 }
 0x160   :  { %v2994_v17 = vpop.eup %2993  ;;  %v642_v7 = vpack.c.bf16 %v3780_v12, %v3778_v28  ;;  %v599_v52 = vadd.f32 %v583_v2, %v3642_v37  ;;  %v585_v49 = vmul.f32 0.01, %v563_v26 }
 0x161   :  { %1633 = vmatpush1.bf16.msra.mxu1 %v3407_v8  ;;  %v2996_v0 = vpop.eup %2995  ;;  %v543_v29 = vadd.f32 %v2994_v17, %v2992_v6  ;;  %v3794_v37 = vmin.f32 %v614_v19, 1.0  ;;  %v600_v13 = vadd.f32 %v584_v22, %v3654_v62  ;;  %v3297_v62 = vld [vmem:[%s5456_s2 + $0x60] ss:$8 sps:$4 sm:$0xff]  }
 0x162   :  { %1634 = vmatprep.subr.bf16.mxu1 %v3414_v9  ;;  %v2998_v63 = vpop.eup %2997  ;;  %v615_v60 = vmax.f32 %v599_v52, 0.0  ;;  %v601_v61 = vadd.f32 %v585_v49, %v3670_v54  ;;  %v567_v57 = vmul.f32 0.6931472, %v2996_v0  ;;  %v5504_v54 = vld [vmem:[#allocation6_spill] sm:$0xff] }
 0x163   :  { %v3000_v32 = vpop.eup %2999  ;;  %v542_v9 = vadd.f32 %v2998_v63, %v2990_v34  ;;  %3005 = vlog2.f32 %v543_v29 }
 0x164   :  { %v3789_v8 = vmin.f32 %v615_v60, 1.0  ;;  %v565_v46 = vmul.f32 0.6931472, %v3000_v32  ;;  %v617_v40 = vmax.f32 %v601_v61, 0.0  ;;  %v587_v14 = vmul.f32 0.01, %v567_v57 }
 0x165   :  { %1635 = vmatpush1.bf16.msra.mxu1 %v3421_v10  ;;  %3007 = vlog2.f32 %v542_v9 }
 0x166   :  { %701 = vmatmul.mubr.bf16.gmra.mrb[8].mxu1 %v642_v7  ;;  %1636 = vmatprep.subr.bf16.mxu1 %v3428_v11  ;;  %v643_v10 = vpack.c.bf16 %v3789_v8, %v3794_v37  ;;  %v616_v11 = vmax.f32 %v600_v13, 0.0  ;;  %v586_v21 = vmul.f32 0.01, %v565_v46  ;;  %v3804_v51 = vmin.f32 %v617_v40, 1.0 }
 0x167   :  { %710 = vmatprep.mubr.bf16.mxu1 %v5502_v45  ;;  %v3002_v41 = vpop.eup %3001  ;;  %v603_v1 = vadd.f32 %v587_v14, %v5505_v35 }
 0x168   :  { %v3004_v18 = vpop.eup %3003  ;;  %v571_v43 = vmul.f32 0.6931472, %v3002_v41  ;;  %v3811_v38 = vmin.f32 %v616_v11, 1.0  ;;  %v602_v20 = vadd.f32 %v586_v21, %v5506_v16 }
 0x169   :  { %1637 = vmatpush1.bf16.msra.mxu1 %v5503_v23  ;;  %v569_v58 = vmul.f32 0.6931472, %v3004_v18  ;;  %v619_v30 = vmax.f32 %v603_v1, 0.0 }
 0x16a   :  { %1638 = vmatprep.subr.bf16.mxu1 %v5504_v54  ;;  %v644_v15 = vpack.c.bf16 %v3804_v51, %v3811_v38  ;;  %v589_v4 = vmul.f32 0.01, %v571_v43  ;;  %v618_v36 = vmax.f32 %v602_v20, 0.0 }
 0x16b   :  { %v588_v5 = vmul.f32 0.01, %v569_v58  ;;  %v3819_v34 = vmin.f32 %v619_v30, 1.0 }
 0x16c   :  { %v605_v2 = vadd.f32 %v589_v4, %v3720_v53  ;;  %v3823_v47 = vmin.f32 %v618_v36, 1.0 }
 0x16d   :  { %1639 = vmatpush1.bf16.msra.mxu1 %v3297_v62  ;;  %v3006_v50 = vpop.eup %3005  ;;  %v604_v26 = vadd.f32 %v588_v5, %v3708_v33 }
 0x16e   :  { %711 = vmatmul.mubr.bf16.gmra.mrb[12].mxu1 %v643_v10  ;;  %1640 = vmatprep.subr.bf16.mxu1 %v3298_v25  ;;  %v575_v55 = vmul.f32 0.6931472, %v3006_v50  ;;  %v645_v17 = vpack.c.bf16 %v3819_v34, %v3823_v47  ;;  %v621_v7 = vmax.f32 %v605_v2, 0.0 }
 0x16f   :  { %720 = vmatprep.mubr.bf16.mxu1 %v5502_v45  ;;  %v3008_v59 = vpop.eup %3007  ;;  %v620_v49 = vmax.f32 %v604_v26, 0.0 }
 0x170   :  { %v573_v6 = vmul.f32 0.6931472, %v3008_v59  ;;  %v591_v52 = vmul.f32 0.01, %v575_v55  ;;  %v3828_v63 = vmin.f32 %v621_v7, 1.0 }
 0x171   :  { %1641 = vmatpush1.bf16.msra.mxu1 %v3299_v39  ;;  %v3832_v19 = vmin.f32 %v620_v49, 1.0 }
 0x172   :  { %v590_v0 = vmul.f32 0.01, %v573_v6  ;;  %v607_v53 = vadd.f32 %v591_v52, %v3742_v27 }
 0x173   :  { %v646_v33 = vpack.c.bf16 %v3828_v63, %v3832_v19 }
 0x174   :  { %v606_v60 = vadd.f32 %v590_v0, %v3737_v56  ;;  %v623_v22 = vmax.f32 %v607_v53, 0.0 }
 0x176   :  { %721 = vmatmul.mubr.bf16.gmra.mrb[16].mxu1 %v644_v15  ;;  %v622_v32 = vmax.f32 %v606_v60, 0.0  ;;  %v3837_v29 = vmin.f32 %v623_v22, 1.0 }
 0x177   :  { %730 = vmatprep.mubr.bf16.mxu1 %v5502_v45 }
 0x178   :  { %v3840_v61 = vmin.f32 %v622_v32, 1.0 }
 0x17a   :  { %v647_v27 = vpack.c.bf16 %v3837_v29, %v3840_v61 }
 0x17e   :  { %731 = vmatmul.mubr.bf16.gmra.mrb[20].mxu1 %v645_v17 }
 0x17f   :  { %740 = vmatprep.mubr.bf16.mxu1 %v5502_v45 }
 0x186   :  { %741 = vmatmul.mubr.bf16.gmra.mrb[24].mxu1 %v646_v33 }
 0x187   :  { %750 = vmatprep.mubr.bf16.mxu1 %v5502_v45 }
 0x18e   :  { %751 = vmatmul.mubr.bf16.gmra.mrb[28].mxu1 %v647_v27 }
 0x18f   :  { %1658 = vmatprep.mubr.bf16.mxu1 %v5502_v45 }
 0x227   :  { %v682_v57 = vpop.f32.mrb[0].mxu1 }
 0x228   :  { %v761_v56 = vmax.f32 %v682_v57, 0.0  ;;  %v684_v9 = vpop.f32.mrb[1].mxu1 }
 0x229   :  { %v809_v13 = vmax.f32 %v684_v9, 0.0  ;;  %v686_v46 = vpop.f32.mrb[2].mxu1 }
 0x22a   :  { %v777_v23 = vmin.f32 %v761_v56, 1.0  ;;  %v762_v10 = vmax.f32 %v686_v46, 0.0  ;;  %v688_v40 = vpop.f32.mrb[3].mxu1 }
 0x22b   :  { %v825_v14 = vmin.f32 %v809_v13, 1.0  ;;  %v810_v54 = vmax.f32 %v688_v40, 0.0 }
 0x22c   :  { %v793_v41 = vmul.f32 %v777_v23, %v3574_v44  ;;  %v778_v11 = vmin.f32 %v762_v10, 1.0 }
 0x22d   :  { %v841_v21 = vmul.f32 %v825_v14, %v3576_v48  ;;  %v826_v18 = vmin.f32 %v810_v54, 1.0 }
 0x22e   :  { %v794_v62 = vmul.f32 %v778_v11, %v3574_v44 }
 0x22f   :  { %v857_v35 = vadd.f32 %v841_v21, %v793_v41  ;;  %v842_v1 = vmul.f32 %v826_v18, %v3576_v48 }
 0x231   :  { %v3850_v43 = vmax.f32 %v3752_v24, %v857_v35  ;;  %v858_v25 = vadd.f32 %v842_v1, %v794_v62  ;;  %v692_v16 = vpop.f32.mrb[4].mxu1 }
 0x232   :  { %v763_v20 = vmax.f32 %v692_v16, 0.0  ;;  %v694_v58 = vpop.f32.mrb[5].mxu1 }
 0x233   :  { %v889_v39 = vsub.f32 %v3752_v24, %v3850_v43  ;;  %v953_v15 = vsub.f32 %v857_v35, %v3850_v43  ;;  %v3856_v30 = vmax.f32 %v3756_v31, %v858_v25  ;;  %v811_v4 = vmax.f32 %v694_v58, 0.0  ;;  %v696_v50 = vpop.f32.mrb[6].mxu1 }
 0x234   :  { %v779_v36 = vmin.f32 %v763_v20, 1.0  ;;  %v764_v5 = vmax.f32 %v696_v50, 0.0  ;;  %v698_v59 = vpop.f32.mrb[7].mxu1 }
 0x235   :  { %v905_v2 = vmul.f32 100.0, %v889_v39  ;;  %v969_v55 = vmul.f32 100.0, %v953_v15  ;;  %v890_v26 = vsub.f32 %v3756_v31, %v3856_v30  ;;  %v954_v6 = vsub.f32 %v858_v25, %v3856_v30 }
 0x236   :  { %v795_v17 = vmul.f32 %v779_v36, %v3574_v44  ;;  %v827_v24 = vmin.f32 %v811_v4, 1.0  ;;  %v780_v7 = vmin.f32 %v764_v5, 1.0  ;;  %v812_v52 = vmax.f32 %v698_v59, 0.0 }
 0x237   :  { %v921_v49 = vmul.f32 1.442695, %v905_v2  ;;  %v985_v0 = vmul.f32 1.442695, %v969_v55  ;;  %v906_v53 = vmul.f32 100.0, %v890_v26  ;;  %v970_v60 = vmul.f32 100.0, %v954_v6 }
 0x238   :  { %v843_v33 = vmul.f32 %v827_v24, %v3576_v48  ;;  %v796_v22 = vmul.f32 %v780_v7, %v3574_v44  ;;  %v828_v32 = vmin.f32 %v812_v52, 1.0 }
 0x239   :  { %3009 = vpow2.f32 %v921_v49  ;;  %v923_v27 = vmul.f32 1.442695, %v906_v53  ;;  %v987_v57 = vmul.f32 1.442695, %v970_v60  ;;  %v702_v31 = vpop.f32.mrb[8].mxu1 }
 0x23a   :  { %3011 = vpow2.f32 %v985_v0  ;;  %v859_v56 = vadd.f32 %v843_v33, %v795_v17  ;;  %v844_v9 = vmul.f32 %v828_v32, %v3576_v48  ;;  %v765_v13 = vmax.f32 %v702_v31, 0.0  ;;  %v704_v46 = vpop.f32.mrb[9].mxu1 }
 0x23b   :  { %3013 = vpow2.f32 %v923_v27  ;;  %v813_v23 = vmax.f32 %v704_v46, 0.0  ;;  %v706_v10 = vpop.f32.mrb[10].mxu1 }
 0x23c   :  { %3015 = vpow2.f32 %v987_v57  ;;  %v3866_v40 = vmax.f32 %v3767_v42, %v859_v56  ;;  %v860_v14 = vadd.f32 %v844_v9, %v796_v22  ;;  %v781_v54 = vmin.f32 %v765_v13, 1.0  ;;  %v708_v41 = vpop.f32.mrb[11].mxu1 }
 0x23d   :  { %v829_v11 = vmin.f32 %v813_v23, 1.0  ;;  %v766_v21 = vmax.f32 %v706_v10, 0.0  ;;  %v814_v18 = vmax.f32 %v708_v41, 0.0 }
 0x23e   :  { %v891_v62 = vsub.f32 %v3767_v42, %v3866_v40  ;;  %v797_v35 = vmul.f32 %v781_v54, %v3574_v44  ;;  %v955_v20 = vsub.f32 %v859_v56, %v3866_v40  ;;  %v3874_v58 = vmax.f32 %v3769_v3, %v860_v14 }
 0x23f   :  { %v845_v1 = vmul.f32 %v829_v11, %v3576_v48  ;;  %v782_v25 = vmin.f32 %v766_v21, 1.0  ;;  %v830_v16 = vmin.f32 %v814_v18, 1.0 }
 0x240   :  { %v907_v36 = vmul.f32 100.0, %v891_v62  ;;  %v971_v52 = vmul.f32 100.0, %v955_v20  ;;  %v892_v49 = vsub.f32 %v3769_v3, %v3874_v58  ;;  %v956_v33 = vsub.f32 %v860_v14, %v3874_v58 }
 0x241   :  { %v861_v39 = vadd.f32 %v845_v1, %v797_v35  ;;  %v798_v15 = vmul.f32 %v782_v25, %v3574_v44  ;;  %v846_v4 = vmul.f32 %v830_v16, %v3576_v48  ;;  %v712_v50 = vpop.f32.mrb[12].mxu1 }
 0x242   :  { %v767_v59 = vmax.f32 %v712_v50, 0.0  ;;  %v714_v2 = vpop.f32.mrb[13].mxu1  ;;  %v925_v60 = vmul.f32 1.442695, %v907_v36  ;;  %v989_v9 = vmul.f32 1.442695, %v971_v52 }
 0x243   :  { %v3010_v5 = vpop.eup %3009  ;;  %v862_v42 = vadd.f32 %v846_v4, %v798_v15  ;;  %v3879_v26 = vmax.f32 %v3778_v28, %v861_v39  ;;  %v815_v6 = vmax.f32 %v714_v2, 0.0  ;;  %v716_v17 = vpop.f32.mrb[14].mxu1  ;;  %v908_v3 = vmul.f32 100.0, %v892_v49 }
 0x244   :  { %v3012_v55 = vpop.eup %3011  ;;  %v718_v0 = vpop.f32.mrb[15].mxu1  ;;  %v783_v22 = vmin.f32 %v767_v59, 1.0  ;;  %v972_v23 = vmul.f32 100.0, %v956_v33  ;;  %v768_v10 = vmax.f32 %v716_v17, 0.0 }
 0x245   :  { %v3014_v24 = vpop.eup %3013  ;;  %v1017_v7 = vadd.f32 %v3012_v55, %v3010_v5  ;;  %v831_v32 = vmin.f32 %v815_v6, 1.0  ;;  %v893_v57 = vsub.f32 %v3778_v28, %v3879_v26  ;;  %v3887_v31 = vmax.f32 %v3780_v12, %v862_v42 }
 0x246   :  { %v3016_v53 = vpop.eup %3015  ;;  %v799_v56 = vmul.f32 %v783_v22, %v3574_v44  ;;  %v816_v14 = vmax.f32 %v718_v0, 0.0  ;;  %v957_v41 = vsub.f32 %v861_v39, %v3879_v26  ;;  %v784_v25 = vmin.f32 %v768_v10, 1.0 }
 0x247   :  { %3017 = vlog2.f32 %v1017_v7  ;;  %v1018_v27 = vadd.f32 %v3016_v53, %v3014_v24  ;;  %v847_v13 = vmul.f32 %v831_v32, %v3576_v48  ;;  %v909_v62 = vmul.f32 100.0, %v893_v57 }
 0x248   :  { %v894_v35 = vsub.f32 %v3780_v12, %v3887_v31  ;;  %v958_v1 = vsub.f32 %v862_v42, %v3887_v31  ;;  %v832_v15 = vmin.f32 %v816_v14, 1.0  ;;  %v927_v36 = vmul.f32 1.442695, %v908_v3 }
 0x249   :  { %3019 = vlog2.f32 %v1018_v27  ;;  %v722_v46 = vpop.f32.mrb[16].mxu1  ;;  %v863_v11 = vadd.f32 %v847_v13, %v799_v56  ;;  %v800_v39 = vmul.f32 %v784_v25, %v3574_v44  ;;  %v991_v2 = vmul.f32 1.442695, %v972_v23 }
 0x24a   :  { %3021 = vpow2.f32 %v925_v60  ;;  %v724_v54 = vpop.f32.mrb[17].mxu1  ;;  %v769_v28 = vmax.f32 %v722_v46, 0.0  ;;  %v973_v55 = vmul.f32 100.0, %v957_v41  ;;  %v848_v42 = vmul.f32 %v832_v15, %v3576_v48 }
 0x24b   :  { %v817_v21 = vmax.f32 %v724_v54, 0.0  ;;  %v726_v18 = vpop.f32.mrb[18].mxu1  ;;  %v3896_v20 = vmax.f32 %v3794_v37, %v863_v11  ;;  %v929_v49 = vmul.f32 1.442695, %v909_v62  ;;  %v910_v0 = vmul.f32 100.0, %v894_v35 }
 0x24c   :  { %v728_v16 = vpop.f32.mrb[19].mxu1  ;;  %v785_v4 = vmin.f32 %v769_v28, 1.0  ;;  %v770_v5 = vmax.f32 %v726_v18, 0.0  ;;  %v974_v53 = vmul.f32 100.0, %v958_v1  ;;  %v864_v60 = vadd.f32 %v848_v42, %v800_v39 }
 0x24d   :  { %v833_v50 = vmin.f32 %v817_v21, 1.0  ;;  %v818_v59 = vmax.f32 %v728_v16, 0.0  ;;  %v895_v12 = vsub.f32 %v3794_v37, %v3896_v20  ;;  %v993_v3 = vmul.f32 1.442695, %v973_v55 }
 0x24e   :  { %v801_v6 = vmul.f32 %v785_v4, %v3574_v44  ;;  %v786_v24 = vmin.f32 %v770_v5, 1.0  ;;  %v959_v46 = vsub.f32 %v863_v11, %v3896_v20  ;;  %v3910_v23 = vmax.f32 %v3789_v8, %v864_v60 }
 0x24f   :  { %v849_v17 = vmul.f32 %v833_v50, %v3576_v48  ;;  %v834_v7 = vmin.f32 %v818_v59, 1.0  ;;  %v911_v13 = vmul.f32 100.0, %v895_v12  ;;  %3023 = vpow2.f32 %v989_v9 }
 0x250   :  { %v802_v27 = vmul.f32 %v786_v24, %v3574_v44  ;;  %3025 = vpow2.f32 %v927_v36  ;;  %v931_v18 = vmul.f32 1.442695, %v910_v0  ;;  %v995_v1 = vmul.f32 1.442695, %v974_v53 }
 0x251   :  { %v3018_v52 = vpop.eup %3017  ;;  %v732_v33 = vpop.f32.mrb[20].mxu1  ;;  %v3904_v32 = vadd.f32 %v849_v17, %v801_v6  ;;  %v850_v37 = vmul.f32 %v834_v7, %v3576_v48  ;;  %3027 = vpow2.f32 %v991_v2  ;;  %v896_v25 = vsub.f32 %v3789_v8, %v3910_v23 }
 0x252   :  { %v1034_v22 = vmul.f32 0.6931472, %v3018_v52  ;;  %v734_v57 = vpop.f32.mrb[21].mxu1  ;;  %v771_v35 = vmax.f32 %v732_v33, 0.0  ;;  %3029 = vpow2.f32 %v929_v49  ;;  %v933_v16 = vmul.f32 1.442695, %v911_v13 }
 0x253   :  { %v3020_v56 = vpop.eup %3019  ;;  %v736_v10 = vpop.f32.mrb[22].mxu1  ;;  %v3914_v28 = vadd.f32 %v850_v37, %v802_v27  ;;  %v3918_v62 = vmax.f32 %v3811_v38, %v3904_v32  ;;  %v975_v15 = vmul.f32 100.0, %v959_v46  ;;  %3031 = vpow2.f32 %v993_v3 }
 0x254   :  { %v3912_v14 = vpop.eup %3021  ;;  %v1065_v54 = vmul.f32 0.01, %v1034_v22  ;;  %v1036_v41 = vmul.f32 0.6931472, %v3020_v56  ;;  %v738_v21 = vpop.f32.mrb[23].mxu1  ;;  %v960_v50 = vsub.f32 %v864_v60, %v3910_v23  ;;  %3033 = vpow2.f32 %v931_v18 }
 0x255   :  { %v897_v36 = vsub.f32 %v3811_v38, %v3918_v62  ;;  %v787_v39 = vmin.f32 %v771_v35, 1.0  ;;  %3035 = vpow2.f32 %v995_v1  ;;  %v912_v2 = vmul.f32 100.0, %v896_v25 }
 0x256   :  { %v1066_v11 = vmul.f32 0.01, %v1036_v41  ;;  %v1081_v9 = vadd.f32 %v1065_v54, %v3850_v43  ;;  %3037 = vpow2.f32 %v933_v16  ;;  %v997_v55 = vmul.f32 1.442695, %v975_v15 }
 0x257   :  { %v3929_v43 = vmax.f32 %v3804_v51, %v3914_v28  ;;  %v976_v6 = vmul.f32 100.0, %v960_v50  ;;  %v961_v17 = vsub.f32 %v3904_v32, %v3918_v62  ;;  %v772_v38 = vmax.f32 %v736_v10, 0.0 }
 0x258   :  { %v1082_v4 = vadd.f32 %v1066_v11, %v3856_v30  ;;  %v819_v30 = vmax.f32 %v734_v57, 0.0  ;;  %v1097_v42 = vmax.f32 %v1081_v9, 0.0  ;;  %v913_v7 = vmul.f32 100.0, %v897_v36 }
 0x259   :  { %v742_v5 = vpop.f32.mrb[24].mxu1  ;;  %v803_v52 = vmul.f32 %v787_v39, %v3574_v44  ;;  %v820_v0 = vmax.f32 %v738_v21, 0.0  ;;  %v3934_v53 = vpop.eup %3023  ;;  %v935_v33 = vmul.f32 1.442695, %v912_v2  ;;  %v788_v22 = vmin.f32 %v772_v38, 1.0 }
 0x25a   :  { %v1098_v59 = vmax.f32 %v1082_v4, 0.0  ;;  %v744_v8 = vpop.f32.mrb[25].mxu1  ;;  %v835_v49 = vmin.f32 %v819_v30, 1.0  ;;  %v773_v27 = vmax.f32 %v742_v5, 0.0  ;;  %v3938_v37 = vpop.eup %3025  ;;  %v898_v57 = vsub.f32 %v3804_v51, %v3929_v43 }
 0x25b   :  { %v746_v12 = vpop.f32.mrb[26].mxu1  ;;  %v836_v3 = vmin.f32 %v820_v0, 1.0  ;;  %v821_v13 = vmax.f32 %v744_v8, 0.0  ;;  %v3943_v46 = vpop.eup %3027  ;;  %v3945_v10 = vmin.f32 %v1097_v42, 1.0  ;;  %v804_v54 = vmul.f32 %v788_v22, %v3574_v44 }
 0x25c   :  { %v748_v24 = vpop.f32.mrb[27].mxu1  ;;  %v3936_v60 = vmin.f32 %v1098_v59, 1.0  ;;  %v851_v56 = vmul.f32 %v835_v49, %v3576_v48  ;;  %v789_v41 = vmin.f32 %v773_v27, 1.0  ;;  %v774_v21 = vmax.f32 %v746_v12, 0.0  ;;  %v3948_v18 = vpop.eup %3029 }
 0x25d   :  { %v852_v11 = vmul.f32 %v836_v3, %v3576_v48  ;;  %v837_v1 = vmin.f32 %v821_v13, 1.0  ;;  %v822_v25 = vmax.f32 %v748_v24, 0.0  ;;  %v3951_v16 = vpop.eup %3031  ;;  %v962_v42 = vsub.f32 %v3914_v28, %v3929_v43 }
 0x25e   :  { %v867_v35 = vadd.f32 %v851_v56, %v803_v52  ;;  %v805_v15 = vmul.f32 %v789_v41, %v3574_v44  ;;  %v790_v9 = vmin.f32 %v774_v21, 1.0  ;;  %v1129_v50 = vpack.c.bf16 %v3936_v60, %v3945_v10  ;;  %v3956_v39 = vpop.eup %3033 }
 0x25f   :  { %v868_v59 = vadd.f32 %v852_v11, %v804_v54  ;;  %v853_v2 = vmul.f32 %v837_v1, %v3576_v48  ;;  %v838_v8 = vmin.f32 %v822_v25, 1.0  ;;  %v3962_v12 = vpop.eup %3035  ;;  %v999_v22 = vmul.f32 1.442695, %v976_v6 }
 0x260   :  { %v3959_v5 = vmax.f32 %v3823_v47, %v867_v35  ;;  %v806_v38 = vmul.f32 %v790_v9, %v3574_v44  ;;  %1170 = vmatmul.mubr.bf16.vlgmr.msra.gmra.mrb[32].mxu0 %v1129_v50  ;;  %v3967_v0 = vpop.eup %3037  ;;  %3039 = vpow2.f32 %v997_v55  ;;  %v914_v21 = vmul.f32 100.0, %v898_v57 }
 0x261   :  { %v752_v51 = vpop.f32.mrb[28].mxu1  ;;  %v3970_v27 = vmax.f32 %v3819_v34, %v868_v59  ;;  %v869_v56 = vadd.f32 %v853_v2, %v805_v15  ;;  %1179 = vmatprep.mubr.bf16.mxu0 %v5502_v45  ;;  %v854_v28 = vmul.f32 %v838_v8, %v3576_v48  ;;  %3041 = vpow2.f32 %v935_v33 }
 0x262   :  { %v775_v4 = vmax.f32 %v752_v51, 0.0  ;;  %v754_v36 = vpop.f32.mrb[29].mxu1  ;;  %v899_v13 = vsub.f32 %v3823_v47, %v3959_v5  ;;  %v963_v11 = vsub.f32 %v867_v35, %v3959_v5  ;;  %v978_v6 = vmul.f32 100.0, %v962_v42 }
 0x263   :  { %v756_v30 = vpop.f32.mrb[30].mxu1  ;;  %v823_v52 = vmax.f32 %v754_v36, 0.0  ;;  %v870_v1 = vadd.f32 %v854_v28, %v806_v38  ;;  %3043 = vpow2.f32 %v999_v22  ;;  %v937_v51 = vmul.f32 1.442695, %v913_v7 }
 0x264   :  { %v791_v24 = vmin.f32 %v775_v4, 1.0  ;;  %v758_v49 = vpop.f32.mrb[31].mxu1  ;;  %v776_v3 = vmax.f32 %v756_v30, 0.0  ;;  %v977_v47 = vmul.f32 100.0, %v961_v17  ;;  %v900_v15 = vsub.f32 %v3819_v34, %v3970_v27 }
 0x265   :  { %v839_v41 = vmin.f32 %v823_v52, 1.0  ;;  %v915_v9 = vmul.f32 100.0, %v899_v13  ;;  %v964_v55 = vsub.f32 %v868_v59, %v3970_v27  ;;  %v939_v33 = vmul.f32 1.442695, %v914_v21 }
 0x266   :  { %v807_v54 = vmul.f32 %v791_v24, %v3574_v44  ;;  %v792_v35 = vmin.f32 %v776_v3, 1.0  ;;  %v979_v4 = vmul.f32 100.0, %v963_v11  ;;  %v824_v50 = vmax.f32 %v758_v49, 0.0 }
 0x267   :  { %v855_v25 = vmul.f32 %v839_v41, %v3576_v48  ;;  %v1003_v36 = vmul.f32 1.442695, %v978_v6  ;;  %v1001_v2 = vmul.f32 1.442695, %v977_v47  ;;  %v916_v8 = vmul.f32 100.0, %v900_v15 }
 0x268   :  { %v3988_v7 = vmax.f32 %v3832_v19, %v869_v56  ;;  %v840_v32 = vmin.f32 %v824_v50, 1.0  ;;  %3045 = vpow2.f32 %v937_v51  ;;  %v941_v17 = vmul.f32 1.442695, %v915_v9 }
 0x269   :  { %v3985_v57 = vadd.f32 %v855_v25, %v807_v54  ;;  %v980_v30 = vmul.f32 100.0, %v964_v55  ;;  %v808_v34 = vmul.f32 %v792_v35, %v3574_v44  ;;  %3047 = vpow2.f32 %v939_v33 }
 0x26a   :  { %v1005_v59 = vmul.f32 1.442695, %v979_v4  ;;  %v3992_v42 = vmax.f32 %v3828_v63, %v870_v1  ;;  %v856_v38 = vmul.f32 %v840_v32, %v3576_v48  ;;  %3049 = vpow2.f32 %v1003_v36  ;;  %v3040_v52 = vpop.eup %3039 }
 0x26b   :  { %v1019_v24 = vadd.f32 %v3934_v53, %v3912_v14  ;;  %3051 = vpow2.f32 %v1001_v2  ;;  %v943_v49 = vmul.f32 1.442695, %v916_v8  ;;  %v901_v22 = vsub.f32 %v3832_v19, %v3988_v7  ;;  %v3042_v13 = vpop.eup %3041 }
 0x26c   :  { %v965_v3 = vsub.f32 %v869_v56, %v3988_v7  ;;  %3053 = vpow2.f32 %v941_v17  ;;  %v1007_v28 = vmul.f32 1.442695, %v980_v30  ;;  %v4002_v54 = vmax.f32 %v3840_v61, %v3985_v57 }
 0x26d   :  { %v872_v41 = vadd.f32 %v856_v38, %v808_v34  ;;  %v3044_v21 = vpop.eup %3043  ;;  %3055 = vpow2.f32 %v1005_v59  ;;  %v902_v14 = vsub.f32 %v3828_v63, %v3992_v42  ;;  %v1020_v53 = vadd.f32 %v3943_v46, %v3938_v37 }
 0x26e   :  { %v966_v19 = vsub.f32 %v870_v1, %v3992_v42  ;;  %3057 = vlog2.f32 %v1019_v24  ;;  %v1021_v56 = vadd.f32 %v3951_v16, %v3948_v18  ;;  %v917_v11 = vmul.f32 100.0, %v901_v22 }
 0x26f   :  { %3059 = vpow2.f32 %v943_v49  ;;  %v4012_v6 = vmax.f32 %v3837_v29, %v872_v41  ;;  %v1022_v25 = vadd.f32 %v3962_v12, %v3956_v39  ;;  %v981_v51 = vmul.f32 100.0, %v965_v3 }
 0x270   :  { %3061 = vpow2.f32 %v1007_v28  ;;  %v903_v63 = vsub.f32 %v3840_v61, %v4002_v54  ;;  %v1023_v37 = vadd.f32 %v3040_v52, %v3967_v0  ;;  %v918_v46 = vmul.f32 100.0, %v902_v14 }
 0x271   :  { %3063 = vlog2.f32 %v1020_v53  ;;  %v1024_v1 = vadd.f32 %v3044_v21, %v3042_v13  ;;  %v982_v18 = vmul.f32 100.0, %v966_v19  ;;  %v967_v16 = vsub.f32 %v3985_v57, %v4002_v54 }
 0x272   :  { %v3046_v47 = vpop.eup %3045  ;;  %3065 = vlog2.f32 %v1021_v56  ;;  %v945_v9 = vmul.f32 1.442695, %v917_v11  ;;  %v904_v39 = vsub.f32 %v3837_v29, %v4012_v6  ;;  %v1009_v55 = vmul.f32 1.442695, %v981_v51 }
 0x273   :  { %v3048_v15 = vpop.eup %3047  ;;  %3067 = vlog2.f32 %v1022_v25  ;;  %v919_v61 = vmul.f32 100.0, %v903_v63  ;;  %v947_v35 = vmul.f32 1.442695, %v918_v46  ;;  %v968_v33 = vsub.f32 %v872_v41, %v4012_v6 }
 0x274   :  { %v3050_v12 = vpop.eup %3049  ;;  %3069 = vlog2.f32 %v1023_v37  ;;  %v1011_v50 = vmul.f32 1.442695, %v982_v18  ;;  %v983_v36 = vmul.f32 100.0, %v967_v16  ;;  %v920_v2 = vmul.f32 100.0, %v904_v39 }
 0x275   :  { %v3052_v0 = vpop.eup %3051  ;;  %3071 = vlog2.f32 %v1024_v1  ;;  %v1026_v8 = vadd.f32 %v3050_v12, %v3048_v15  ;;  %v949_v29 = vmul.f32 1.442695, %v919_v61  ;;  %v984_v30 = vmul.f32 100.0, %v968_v33 }
 0x276   :  { %v3054_v4 = vpop.eup %3053  ;;  %3073 = vpow2.f32 %v945_v9  ;;  %v1025_v59 = vadd.f32 %v3052_v0, %v3046_v47  ;;  %v1013_v24 = vmul.f32 1.442695, %v983_v36  ;;  %v951_v49 = vmul.f32 1.442695, %v920_v2 }
 0x277   :  { %v3056_v57 = vpop.eup %3055  ;;  %3075 = vpow2.f32 %v1009_v55  ;;  %v1015_v41 = vmul.f32 1.442695, %v984_v30 }
 0x278   :  { %v3058_v32 = vpop.eup %3057  ;;  %3077 = vpow2.f32 %v947_v35  ;;  %v1027_v18 = vadd.f32 %v3056_v57, %v3054_v4 }
 0x279   :  { %v3060_v17 = vpop.eup %3059  ;;  %v1038_v34 = vmul.f32 0.6931472, %v3058_v32  ;;  %3079 = vpow2.f32 %v1011_v50 }
 0x27a   :  { %v3062_v38 = vpop.eup %3061  ;;  %3081 = vlog2.f32 %v1026_v8 }
 0x27b   :  { %v3064_v52 = vpop.eup %3063  ;;  %v1067_v22 = vmul.f32 0.01, %v1038_v34  ;;  %3083 = vpow2.f32 %v949_v29  ;;  %v1028_v51 = vadd.f32 %v3062_v38, %v3060_v17 }
 0x27c   :  { %v3066_v3 = vpop.eup %3065  ;;  %v1040_v13 = vmul.f32 0.6931472, %v3064_v52  ;;  %3085 = vlog2.f32 %v1025_v59 }
 0x27d   :  { %v3068_v28 = vpop.eup %3067  ;;  %v1083_v21 = vadd.f32 %v1067_v22, %v3866_v40  ;;  %v1042_v14 = vmul.f32 0.6931472, %v3066_v3  ;;  %3087 = vpow2.f32 %v1013_v24 }
 0x27e   :  { %v3070_v53 = vpop.eup %3069  ;;  %v1068_v19 = vmul.f32 0.01, %v1040_v13  ;;  %v1044_v56 = vmul.f32 0.6931472, %v3068_v28  ;;  %3089 = vpow2.f32 %v951_v49 }
 0x27f   :  { %v3072_v11 = vpop.eup %3071  ;;  %v1069_v25 = vmul.f32 0.01, %v1042_v14  ;;  %v1099_v37 = vmax.f32 %v1083_v21, 0.0  ;;  %3091 = vpow2.f32 %v1015_v41  ;;  %v1046_v39 = vmul.f32 0.6931472, %v3070_v53 }
 0x280   :  { %v1084_v63 = vadd.f32 %v1068_v19, %v3874_v58  ;;  %v1070_v46 = vmul.f32 0.01, %v1044_v56  ;;  %v1048_v1 = vmul.f32 0.6931472, %v3072_v11  ;;  %v3074_v47 = vpop.eup %3073  ;;  %3093 = vlog2.f32 %v1028_v51 }
 0x281   :  { %v3076_v16 = vpop.eup %3075  ;;  %v1085_v15 = vadd.f32 %v1069_v25, %v3879_v26  ;;  %v4028_v61 = vmin.f32 %v1099_v37, 1.0  ;;  %3095 = vlog2.f32 %v1027_v18  ;;  %v1071_v26 = vmul.f32 0.01, %v1046_v39 }
 0x282   :  { %v1100_v40 = vmax.f32 %v1084_v63, 0.0  ;;  %v1086_v9 = vadd.f32 %v1070_v46, %v3887_v31  ;;  %v3078_v12 = vpop.eup %3077  ;;  %v1072_v35 = vmul.f32 0.01, %v1048_v1  ;;  %v1029_v30 = vadd.f32 %v3076_v16, %v3074_v47 }
 0x283   :  { %v3080_v55 = vpop.eup %3079  ;;  %v1101_v36 = vmax.f32 %v1085_v15, 0.0  ;;  %v1087_v59 = vadd.f32 %v1071_v26, %v3896_v20 }
 0x284   :  { %v4030_v0 = vmin.f32 %v1100_v40, 1.0  ;;  %v1102_v58 = vmax.f32 %v1086_v9, 0.0  ;;  %v3082_v33 = vpop.eup %3081  ;;  %v1030_v31 = vadd.f32 %v3080_v55, %v3078_v12  ;;  %v1088_v32 = vadd.f32 %v1072_v35, %v3910_v23 }
 0x285   :  { %v3084_v50 = vpop.eup %3083  ;;  %v1052_v29 = vmul.f32 0.6931472, %v3082_v33  ;;  %v4038_v34 = vmin.f32 %v1101_v36, 1.0  ;;  %v1103_v23 = vmax.f32 %v1087_v59, 0.0 }
 0x286   :  { %v1130_v4 = vpack.c.bf16 %v4030_v0, %v4028_v61  ;;  %v3086_v57 = vpop.eup %3085  ;;  %v4034_v8 = vmin.f32 %v1102_v58, 1.0  ;;  %3097 = vlog2.f32 %v1030_v31  ;;  %v1104_v49 = vmax.f32 %v1088_v32, 0.0 }
 0x287   :  { %v3088_v2 = vpop.eup %3087  ;;  %v1050_v38 = vmul.f32 0.6931472, %v3086_v57  ;;  %v1074_v22 = vmul.f32 0.01, %v1052_v29  ;;  %3099 = vlog2.f32 %v1029_v30  ;;  %v4047_v19 = vmin.f32 %v1103_v23, 1.0 }
 0x288   :  { %1180 = vmatmul.mubr.bf16.gmra.mrb[36].mxu0 %v1130_v4  ;;  %v3090_v17 = vpop.eup %3089  ;;  %v1131_v52 = vpack.c.bf16 %v4034_v8, %v4038_v34  ;;  %v4043_v21 = vmin.f32 %v1104_v49, 1.0  ;;  %v1031_v53 = vadd.f32 %v3088_v2, %v3084_v50 }
 0x289   :  { %1189 = vmatprep.mubr.bf16.mxu0 %v5502_v45  ;;  %v3092_v24 = vpop.eup %3091  ;;  %v1073_v13 = vmul.f32 0.01, %v1050_v38  ;;  %v1090_v14 = vadd.f32 %v1074_v22, %v3929_v43 }
 0x28a   :  { %v3094_v3 = vpop.eup %3093  ;;  %v1032_v41 = vadd.f32 %v3092_v24, %v3090_v17  ;;  %v1132_v25 = vpack.c.bf16 %v4043_v21, %v4047_v19 }
 0x28b   :  { %v3096_v28 = vpop.eup %3095  ;;  %v1056_v20 = vmul.f32 0.6931472, %v3094_v3  ;;  %v1089_v56 = vadd.f32 %v1073_v13, %v3918_v62  ;;  %v1106_v51 = vmax.f32 %v1090_v14, 0.0 }
 0x28c   :  { %v1054_v11 = vmul.f32 0.6931472, %v3096_v28  ;;  %3101 = vlog2.f32 %v1032_v41 }
 0x28d   :  { %v1076_v63 = vmul.f32 0.01, %v1056_v20  ;;  %3103 = vlog2.f32 %v1031_v53  ;;  %v1105_v46 = vmax.f32 %v1089_v56, 0.0  ;;  %v4052_v47 = vmin.f32 %v1106_v51, 1.0 }
 0x28e   :  { %v1075_v1 = vmul.f32 0.01, %v1054_v11 }
 0x28f   :  { %v1092_v18 = vadd.f32 %v1076_v63, %v3970_v27  ;;  %v4056_v62 = vmin.f32 %v1105_v46, 1.0 }
 0x290   :  { %1190 = vmatmul.mubr.bf16.gmra.mrb[40].mxu0 %v1131_v52  ;;  %v3098_v37 = vpop.eup %3097  ;;  %v1091_v40 = vadd.f32 %v1075_v1, %v3959_v5 }
 0x291   :  { %1199 = vmatprep.mubr.bf16.mxu0 %v5502_v45  ;;  %v3100_v43 = vpop.eup %3099  ;;  %v1060_v16 = vmul.f32 0.6931472, %v3098_v37  ;;  %v1133_v9 = vpack.c.bf16 %v4052_v47, %v4056_v62  ;;  %v1108_v39 = vmax.f32 %v1092_v18, 0.0 }
 0x292   :  { %v1058_v15 = vmul.f32 0.6931472, %v3100_v43  ;;  %v1107_v58 = vmax.f32 %v1091_v40, 0.0 }
 0x293   :  { %v1078_v12 = vmul.f32 0.01, %v1060_v16  ;;  %v4061_v50 = vmin.f32 %v1108_v39, 1.0 }
 0x294   :  { %v1077_v35 = vmul.f32 0.01, %v1058_v15  ;;  %v4065_v36 = vmin.f32 %v1107_v58, 1.0 }
 0x295   :  { %v1094_v27 = vadd.f32 %v1078_v12, %v3992_v42 }
 0x296   :  { %v3102_v55 = vpop.eup %3101  ;;  %v1093_v5 = vadd.f32 %v1077_v35, %v3988_v7  ;;  %v1134_v57 = vpack.c.bf16 %v4061_v50, %v4065_v36 }
 0x297   :  { %v3104_v33 = vpop.eup %3103  ;;  %v1064_v4 = vmul.f32 0.6931472, %v3102_v55  ;;  %v1110_v31 = vmax.f32 %v1094_v27, 0.0 }
 0x298   :  { %1200 = vmatmul.mubr.bf16.gmra.mrb[44].mxu0 %v1132_v25  ;;  %v1062_v26 = vmul.f32 0.6931472, %v3104_v33  ;;  %v1109_v32 = vmax.f32 %v1093_v5, 0.0 }
 0x299   :  { %1209 = vmatprep.mubr.bf16.mxu0 %v5502_v45  ;;  %v1080_v2 = vmul.f32 0.01, %v1064_v4  ;;  %v4070_v17 = vmin.f32 %v1110_v31, 1.0 }
 0x29a   :  { %v1079_v29 = vmul.f32 0.01, %v1062_v26  ;;  %v4074_v30 = vmin.f32 %v1109_v32, 1.0 }
 0x29b   :  { %v1096_v42 = vadd.f32 %v1080_v2, %v4012_v6 }
 0x29c   :  { %v1095_v59 = vadd.f32 %v1079_v29, %v4002_v54  ;;  %v1135_v7 = vpack.c.bf16 %v4070_v17, %v4074_v30 }
 0x29d   :  { %v1112_v38 = vmax.f32 %v1096_v42, 0.0 }
 0x29e   :  { %v1111_v24 = vmax.f32 %v1095_v59, 0.0 }
 0x29f   :  { %v4079_v52 = vmin.f32 %v1112_v38, 1.0 }
 0x2a0   :  { %1210 = vmatmul.mubr.bf16.gmra.mrb[48].mxu0 %v1133_v9  ;;  %v4082_v49 = vmin.f32 %v1111_v24, 1.0 }
 0x2a1   :  { %1219 = vmatprep.mubr.bf16.mxu0 %v5502_v45 }
 0x2a2   :  { %v1136_v6 = vpack.c.bf16 %v4079_v52, %v4082_v49 }
 0x2a8   :  { %1220 = vmatmul.mubr.bf16.gmra.mrb[52].mxu0 %v1134_v57 }
 0x2a9   :  { %1229 = vmatprep.mubr.bf16.mxu0 %v5502_v45 }
 0x2b0   :  { %1230 = vmatmul.mubr.bf16.gmra.mrb[56].mxu0 %v1135_v7 }
 0x2b1   :  { %1239 = vmatprep.mubr.bf16.mxu0 %v5502_v45 }
 0x2b8   :  { %1240 = vmatmul.mubr.bf16.gmra.mrb[60].mxu0 %v1136_v6 }
 0x333   :  { %v1171_v22 = vpop.f32.mrb[32].mxu0 }
 0x334   :  { %v1250_v3 = vmax.f32 %v1171_v22, 0.0  ;;  %v1173_v23 = vpop.f32.mrb[33].mxu0 }
 0x335   :  { %v1298_v54 = vmax.f32 %v1173_v23, 0.0  ;;  %v1175_v13 = vpop.f32.mrb[34].mxu0 }
 0x336   :  { %v1266_v28 = vmin.f32 %v1250_v3, 1.0  ;;  %v1251_v41 = vmax.f32 %v1175_v13, 0.0  ;;  %v1177_v14 = vpop.f32.mrb[35].mxu0 }
 0x337   :  { %v1314_v20 = vmin.f32 %v1298_v54, 1.0  ;;  %v1299_v53 = vmax.f32 %v1177_v14, 0.0 }
 0x338   :  { %v1282_v56 = vmul.f32 %v1266_v28, %v3574_v44  ;;  %v1267_v11 = vmin.f32 %v1251_v41, 1.0 }
 0x339   :  { %v1330_v25 = vmul.f32 %v1314_v20, %v3576_v48  ;;  %v1315_v51 = vmin.f32 %v1299_v53, 1.0 }
 0x33a   :  { %v1283_v63 = vmul.f32 %v1267_v11, %v3574_v44 }
 0x33b   :  { %v1346_v37 = vadd.f32 %v1330_v25, %v1282_v56  ;;  %v1331_v46 = vmul.f32 %v1315_v51, %v3576_v48 }
 0x33d   :  { %v1362_v1 = vmax.f32 %v3945_v10, %v1346_v37  ;;  %v1347_v43 = vadd.f32 %v1331_v46, %v1283_v63 }
 0x33f   :  { %v1378_v18 = vsub.f32 %v3945_v10, %v1362_v1  ;;  %v1442_v16 = vsub.f32 %v1346_v37, %v1362_v1  ;;  %v1363_v40 = vmax.f32 %v3936_v60, %v1347_v43 }
 0x341   :  { %v1394_v15 = vmul.f32 100.0, %v1378_v18  ;;  %v1458_v9 = vmul.f32 100.0, %v1442_v16  ;;  %v1379_v39 = vsub.f32 %v3936_v60, %v1363_v40  ;;  %v1443_v12 = vsub.f32 %v1347_v43, %v1363_v40 }
 0x343   :  { %v1410_v55 = vmul.f32 1.442695, %v1394_v15  ;;  %v1474_v58 = vmul.f32 1.442695, %v1458_v9  ;;  %v1395_v35 = vmul.f32 100.0, %v1379_v39  ;;  %v1459_v33 = vmul.f32 100.0, %v1443_v12 }
 0x345   :  { %3105 = vpow2.f32 %v1410_v55  ;;  %v1412_v27 = vmul.f32 1.442695, %v1395_v35  ;;  %v1476_v4 = vmul.f32 1.442695, %v1459_v33 }
 0x346   :  { %3107 = vpow2.f32 %v1474_v58 }
 0x347   :  { %3109 = vpow2.f32 %v1412_v27 }
 0x348   :  { %3111 = vpow2.f32 %v1476_v4 }
 0x34f   :  { %v3106_v5 = vpop.eup %3105 }
 0x350   :  { %v3108_v10 = vpop.eup %3107 }
 0x351   :  { %v3110_v26 = vpop.eup %3109  ;;  %v1506_v57 = vadd.f32 %v3108_v10, %v3106_v5 }
 0x352   :  { %v3112_v31 = vpop.eup %3111 }
 0x353   :  { %3113 = vlog2.f32 %v1506_v57  ;;  %v1507_v2 = vadd.f32 %v3112_v31, %v3110_v26 }
 0x355   :  { %3115 = vlog2.f32 %v1507_v2 }
 0x35b   :  { %v1181_v32 = vpop.f32.mrb[36].mxu0 }
 0x35c   :  { %v1252_v42 = vmax.f32 %v1181_v32, 0.0  ;;  %v1183_v59 = vpop.f32.mrb[37].mxu0 }
 0x35d   :  { %v3114_v60 = vpop.eup %3113  ;;  %v1300_v38 = vmax.f32 %v1183_v59, 0.0  ;;  %v1185_v24 = vpop.f32.mrb[38].mxu0 }
 0x35e   :  { %v1523_v29 = vmul.f32 0.6931472, %v3114_v60  ;;  %v1268_v3 = vmin.f32 %v1252_v42, 1.0  ;;  %v1253_v23 = vmax.f32 %v1185_v24, 0.0  ;;  %v1187_v13 = vpop.f32.mrb[39].mxu0 }
 0x35f   :  { %v3116_v7 = vpop.eup %3115  ;;  %v1316_v54 = vmin.f32 %v1300_v38, 1.0  ;;  %v1301_v56 = vmax.f32 %v1187_v13, 0.0 }
 0x360   :  { %v1554_v6 = vmul.f32 0.01, %v1523_v29  ;;  %v1525_v22 = vmul.f32 0.6931472, %v3116_v7  ;;  %v1284_v14 = vmul.f32 %v1268_v3, %v3574_v44  ;;  %v1269_v20 = vmin.f32 %v1253_v23, 1.0 }
 0x361   :  { %v1332_v53 = vmul.f32 %v1316_v54, %v3576_v48  ;;  %v1317_v37 = vmin.f32 %v1301_v56, 1.0 }
 0x362   :  { %v1570_v28 = vadd.f32 %v1554_v6, %v1362_v1  ;;  %v1555_v41 = vmul.f32 0.01, %v1525_v22  ;;  %v1285_v63 = vmul.f32 %v1269_v20, %v3574_v44 }
 0x363   :  { %v1348_v51 = vadd.f32 %v1332_v53, %v1284_v14  ;;  %v1191_v46 = vpop.f32.mrb[40].mxu0  ;;  %v1333_v1 = vmul.f32 %v1317_v37, %v3576_v48 }
 0x364   :  { %v1586_v11 = vmax.f32 %v1570_v28, 0.0  ;;  %v1571_v25 = vadd.f32 %v1555_v41, %v1363_v40  ;;  %v1254_v18 = vmax.f32 %v1191_v46, 0.0  ;;  %v1193_v16 = vpop.f32.mrb[41].mxu0 }
 0x365   :  { %v4098_v15 = vmax.f32 %v4028_v61, %v1348_v51  ;;  %v1302_v9 = vmax.f32 %v1193_v16, 0.0  ;;  %v1195_v39 = vpop.f32.mrb[42].mxu0  ;;  %v1349_v4 = vadd.f32 %v1333_v1, %v1285_v63 }
 0x366   :  { %v1587_v43 = vmax.f32 %v1571_v25, 0.0  ;;  %v4101_v12 = vmin.f32 %v1586_v11, 1.0  ;;  %v1270_v40 = vmin.f32 %v1254_v18, 1.0  ;;  %v1255_v58 = vmax.f32 %v1195_v39, 0.0  ;;  %v1197_v35 = vpop.f32.mrb[43].mxu0 }
 0x367   :  { %v1380_v33 = vsub.f32 %v4028_v61, %v4098_v15  ;;  %v1444_v27 = vsub.f32 %v1348_v51, %v4098_v15  ;;  %v1318_v5 = vmin.f32 %v1302_v9, 1.0  ;;  %v1303_v57 = vmax.f32 %v1197_v35, 0.0 }
 0x368   :  { %v4103_v55 = vmin.f32 %v1587_v43, 1.0  ;;  %v1286_v10 = vmul.f32 %v1270_v40, %v3574_v44  ;;  %v1271_v26 = vmin.f32 %v1255_v58, 1.0  ;;  %v4112_v60 = vmax.f32 %v4030_v0, %v1349_v4 }
 0x369   :  { %v1396_v2 = vmul.f32 100.0, %v1380_v33  ;;  %v1334_v32 = vmul.f32 %v1318_v5, %v3576_v48  ;;  %v1319_v61 = vmin.f32 %v1303_v57, 1.0  ;;  %v1460_v42 = vmul.f32 100.0, %v1444_v27 }
 0x36a   :  { %v1618_v31 = vpack.c.bf16 %v4103_v55, %v4101_v12  ;;  %v1287_v29 = vmul.f32 %v1271_v26, %v3574_v44  ;;  %v1381_v59 = vsub.f32 %v4030_v0, %v4112_v60  ;;  %v1445_v7 = vsub.f32 %v1349_v4, %v4112_v60 }
 0x36b   :  { %v1201_v38 = vpop.f32.mrb[44].mxu0  ;;  %v1350_v24 = vadd.f32 %v1334_v32, %v1286_v10  ;;  %v1335_v6 = vmul.f32 %v1319_v61, %v3576_v48  ;;  %v1414_v23 = vmul.f32 1.442695, %v1396_v2  ;;  %v1478_v53 = vmul.f32 1.442695, %v1460_v42 }
 0x36c   :  { %1659 = vmatmul.mubr.bf16.vlgmr.msra.gmra.mrb[32].mxu1 %v1618_v31  ;;  %v1256_v22 = vmax.f32 %v1201_v38, 0.0  ;;  %v1203_v3 = vpop.f32.mrb[45].mxu0  ;;  %v1397_v28 = vmul.f32 100.0, %v1381_v59  ;;  %v1461_v56 = vmul.f32 100.0, %v1445_v7 }
 0x36d   :  { %1668 = vmatprep.mubr.bf16.mxu1 %v5502_v45  ;;  %v1304_v54 = vmax.f32 %v1203_v3, 0.0  ;;  %v1205_v13 = vpop.f32.mrb[46].mxu0  ;;  %v4122_v41 = vmax.f32 %v4038_v34, %v1350_v24  ;;  %v1351_v14 = vadd.f32 %v1335_v6, %v1287_v29  ;;  %3117 = vpow2.f32 %v1414_v23 }
 0x36e   :  { %v1272_v20 = vmin.f32 %v1256_v22, 1.0  ;;  %v1207_v0 = vpop.f32.mrb[47].mxu0  ;;  %v1257_v25 = vmax.f32 %v1205_v13, 0.0  ;;  %v1416_v1 = vmul.f32 1.442695, %v1397_v28  ;;  %3119 = vpow2.f32 %v1478_v53 }
 0x36f   :  { %v1320_v11 = vmin.f32 %v1304_v54, 1.0  ;;  %v1382_v51 = vsub.f32 %v4038_v34, %v4122_v41  ;;  %v1446_v63 = vsub.f32 %v1350_v24, %v4122_v41  ;;  %v4128_v37 = vmax.f32 %v4034_v8, %v1351_v14 }
 0x370   :  { %v1288_v46 = vmul.f32 %v1272_v20, %v3574_v44  ;;  %v1273_v18 = vmin.f32 %v1257_v25, 1.0  ;;  %v1305_v16 = vmax.f32 %v1207_v0, 0.0  ;;  %v1480_v27 = vmul.f32 1.442695, %v1461_v56 }
 0x371   :  { %v1336_v43 = vmul.f32 %v1320_v11, %v3576_v48  ;;  %v1398_v9 = vmul.f32 100.0, %v1382_v51  ;;  %v1383_v39 = vsub.f32 %v4034_v8, %v4128_v37  ;;  %v1462_v40 = vmul.f32 100.0, %v1446_v63 }
 0x372   :  { %v1447_v34 = vsub.f32 %v1351_v14, %v4128_v37  ;;  %v1321_v35 = vmin.f32 %v1305_v16, 1.0  ;;  %v1289_v4 = vmul.f32 %v1273_v18, %v3574_v44  ;;  %3121 = vpow2.f32 %v1416_v1 }
 0x373   :  { %v1352_v58 = vadd.f32 %v1336_v43, %v1288_v46  ;;  %v1211_v33 = vpop.f32.mrb[48].mxu0  ;;  %v1418_v10 = vmul.f32 1.442695, %v1398_v9  ;;  %v1399_v26 = vmul.f32 100.0, %v1383_v39  ;;  %v1482_v61 = vmul.f32 1.442695, %v1462_v40 }
 0x374   :  { %v1258_v5 = vmax.f32 %v1211_v33, 0.0  ;;  %v1337_v31 = vmul.f32 %v1321_v35, %v3576_v48  ;;  %v1213_v2 = vpop.f32.mrb[49].mxu0  ;;  %v1463_v42 = vmul.f32 100.0, %v1447_v34  ;;  %3123 = vpow2.f32 %v1480_v27 }
 0x375   :  { %v4137_v57 = vmax.f32 %v4047_v19, %v1352_v58  ;;  %v1306_v32 = vmax.f32 %v1213_v2, 0.0  ;;  %v1215_v29 = vpop.f32.mrb[50].mxu0  ;;  %3125 = vpow2.f32 %v1418_v10  ;;  %v1420_v3 = vmul.f32 1.442695, %v1399_v26 }
 0x376   :  { %v1274_v8 = vmin.f32 %v1258_v5, 1.0  ;;  %v1217_v38 = vpop.f32.mrb[51].mxu0  ;;  %v1353_v24 = vadd.f32 %v1337_v31, %v1289_v4  ;;  %v1259_v23 = vmax.f32 %v1215_v29, 0.0  ;;  %3127 = vpow2.f32 %v1482_v61 }
 0x377   :  { %v1384_v59 = vsub.f32 %v4047_v19, %v4137_v57  ;;  %v1448_v7 = vsub.f32 %v1352_v58, %v4137_v57  ;;  %v1322_v22 = vmin.f32 %v1306_v32, 1.0  ;;  %v1307_v14 = vmax.f32 %v1217_v38, 0.0  ;;  %v4148_v56 = vpop.eup %3117 }
 0x378   :  { %v1290_v6 = vmul.f32 %v1274_v8, %v3574_v44  ;;  %v4145_v13 = vmax.f32 %v4043_v21, %v1353_v24  ;;  %v1484_v19 = vmul.f32 1.442695, %v1463_v42  ;;  %v1275_v0 = vmin.f32 %v1259_v23, 1.0  ;;  %v4154_v9 = vpop.eup %3119 }
 0x379   :  { %v1400_v54 = vmul.f32 100.0, %v1384_v59  ;;  %v1338_v28 = vmul.f32 %v1322_v22, %v3576_v48  ;;  %v1464_v20 = vmul.f32 100.0, %v1448_v7  ;;  %v1323_v63 = vmin.f32 %v1307_v14, 1.0 }
 0x37a   :  { %v1385_v11 = vsub.f32 %v4043_v21, %v4145_v13  ;;  %v1449_v25 = vsub.f32 %v1353_v24, %v4145_v13  ;;  %3129 = vpow2.f32 %v1420_v3  ;;  %v1291_v43 = vmul.f32 %v1275_v0, %v3574_v44 }
 0x37b   :  { %v1221_v53 = vpop.f32.mrb[52].mxu0  ;;  %v1354_v51 = vadd.f32 %v1338_v28, %v1290_v6  ;;  %v1422_v39 = vmul.f32 1.442695, %v1400_v54  ;;  %v1339_v35 = vmul.f32 %v1323_v63, %v3576_v48  ;;  %3131 = vpow2.f32 %v1484_v19 }
 0x37c   :  { %v1223_v46 = vpop.f32.mrb[53].mxu0  ;;  %v1260_v18 = vmax.f32 %v1221_v53, 0.0  ;;  %v1401_v40 = vmul.f32 100.0, %v1385_v11  ;;  %v1465_v34 = vmul.f32 100.0, %v1449_v25  ;;  %v3122_v5 = vpop.eup %3121  ;;  %v1486_v10 = vmul.f32 1.442695, %v1464_v20 }
 0x37d   :  { %v1308_v16 = vmax.f32 %v1223_v46, 0.0  ;;  %v1225_v1 = vpop.f32.mrb[54].mxu0  ;;  %v4157_v58 = vmax.f32 %v4056_v62, %v1354_v51  ;;  %v1355_v2 = vadd.f32 %v1339_v35, %v1291_v43  ;;  %3133 = vpow2.f32 %v1422_v39 }
 0x37e   :  { %v1227_v21 = vpop.f32.mrb[55].mxu0  ;;  %v1276_v33 = vmin.f32 %v1260_v18, 1.0  ;;  %v1261_v4 = vmax.f32 %v1225_v1, 0.0  ;;  %v3124_v61 = vpop.eup %3123  ;;  %v1424_v42 = vmul.f32 1.442695, %v1401_v40  ;;  %3135 = vpow2.f32 %v1486_v10 }
 0x37f   :  { %v1324_v27 = vmin.f32 %v1308_v16, 1.0  ;;  %v1386_v26 = vsub.f32 %v4056_v62, %v4157_v58  ;;  %v1450_v31 = vsub.f32 %v1354_v51, %v4157_v58  ;;  %v1309_v7 = vmax.f32 %v1227_v21, 0.0  ;;  %v4165_v38 = vpop.eup %3125 }
 0x380   :  { %v1292_v8 = vmul.f32 %v1276_v33, %v3574_v44  ;;  %v1277_v29 = vmin.f32 %v1261_v4, 1.0  ;;  %v1488_v24 = vmul.f32 1.442695, %v1465_v34  ;;  %v4168_v22 = vmax.f32 %v4052_v47, %v1355_v2  ;;  %v4171_v14 = vpop.eup %3127 }
 0x381   :  { %v1340_v32 = vmul.f32 %v1324_v27, %v3576_v48  ;;  %v1402_v59 = vmul.f32 100.0, %v1386_v26  ;;  %v1466_v6 = vmul.f32 100.0, %v1450_v31  ;;  %v1325_v54 = vmin.f32 %v1309_v7, 1.0 }
 0x382   :  { %v1293_v23 = vmul.f32 %v1277_v29, %v3574_v44  ;;  %v1387_v20 = vsub.f32 %v4052_v47, %v4168_v22  ;;  %v1451_v0 = vsub.f32 %v1355_v2, %v4168_v22  ;;  %3137 = vpow2.f32 %v1424_v42 }
 0x383   :  { %v1356_v62 = vadd.f32 %v1340_v32, %v1292_v8  ;;  %v1231_v3 = vpop.f32.mrb[56].mxu0  ;;  %v1426_v19 = vmul.f32 1.442695, %v1402_v59  ;;  %v1341_v25 = vmul.f32 %v1325_v54, %v3576_v48  ;;  %3139 = vpow2.f32 %v1488_v24 }
 0x384   :  { %v1262_v28 = vmax.f32 %v1231_v3, 0.0  ;;  %v1233_v11 = vpop.f32.mrb[57].mxu0  ;;  %v4180_v43 = vpop.eup %3129  ;;  %v1490_v18 = vmul.f32 1.442695, %v1466_v6  ;;  %v1403_v16 = vmul.f32 100.0, %v1387_v20  ;;  %v1467_v39 = vmul.f32 100.0, %v1451_v0 }
 0x385   :  { %v4177_v53 = vmax.f32 %v4065_v36, %v1356_v62  ;;  %v1310_v63 = vmax.f32 %v1233_v11, 0.0  ;;  %v1235_v46 = vpop.f32.mrb[58].mxu0  ;;  %v1357_v34 = vadd.f32 %v1341_v25, %v1293_v23  ;;  %3141 = vpow2.f32 %v1426_v19  ;;  %v4186_v4 = vpop.eup %3131 }
 0x386   :  { %v1278_v51 = vmin.f32 %v1262_v28, 1.0  ;;  %v1237_v1 = vpop.f32.mrb[59].mxu0  ;;  %v1428_v35 = vmul.f32 1.442695, %v1403_v16  ;;  %v1263_v27 = vmax.f32 %v1235_v46, 0.0  ;;  %3143 = vpow2.f32 %v1490_v18 }
 0x387   :  { %v1388_v47 = vsub.f32 %v4065_v36, %v4177_v53  ;;  %v1452_v40 = vsub.f32 %v1356_v62, %v4177_v53  ;;  %v1326_v21 = vmin.f32 %v1310_v63, 1.0  ;;  %v4189_v26 = vmax.f32 %v4061_v50, %v1357_v34  ;;  %v4194_v42 = vpop.eup %3133 }
 0x388   :  { %v1294_v33 = vmul.f32 %v1278_v51, %v3574_v44  ;;  %v1311_v36 = vmax.f32 %v1237_v1, 0.0  ;;  %v1279_v2 = vmin.f32 %v1263_v27, 1.0  ;;  %v1508_v32 = vadd.f32 %v4154_v9, %v4148_v56  ;;  %v3136_v19 = vpop.eup %3135 }
 0x389   :  { %v1404_v10 = vmul.f32 100.0, %v1388_v47  ;;  %v1342_v31 = vmul.f32 %v1326_v21, %v3576_v48  ;;  %v1509_v29 = vadd.f32 %v3124_v61, %v3122_v5  ;;  %v1492_v59 = vmul.f32 1.442695, %v1467_v39 }
 0x38a   :  { %v1468_v7 = vmul.f32 100.0, %v1452_v40  ;;  %v1389_v24 = vsub.f32 %v4061_v50, %v4189_v26  ;;  %v1453_v6 = vsub.f32 %v1357_v34, %v4189_v26  ;;  %3145 = vpow2.f32 %v1428_v35 }
 0x38b   :  { %v1241_v8 = vpop.f32.mrb[60].mxu0  ;;  %v1358_v3 = vadd.f32 %v1342_v31, %v1294_v33  ;;  %v1295_v23 = vmul.f32 %v1279_v2, %v3574_v44  ;;  %v1327_v54 = vmin.f32 %v1311_v36, 1.0  ;;  %v1430_v20 = vmul.f32 1.442695, %v1404_v10 }
 0x38c   :  { %v1243_v62 = vpop.f32.mrb[61].mxu0  ;;  %v1405_v56 = vmul.f32 100.0, %v1389_v24  ;;  %v1469_v9 = vmul.f32 100.0, %v1453_v6  ;;  %v1264_v5 = vmax.f32 %v1241_v8, 0.0  ;;  %v3138_v51 = vpop.eup %3137  ;;  %3147 = vpow2.f32 %v1492_v59 }
 0x38d   :  { %v1245_v28 = vpop.f32.mrb[62].mxu0  ;;  %v4201_v0 = vmax.f32 %v4074_v30, %v1358_v3  ;;  %v1343_v50 = vmul.f32 %v1327_v54, %v3576_v48  ;;  %v1312_v11 = vmax.f32 %v1243_v62, 0.0  ;;  %v1494_v63 = vmul.f32 1.442695, %v1468_v7  ;;  %v3140_v16 = vpop.eup %3139 }
 0x38e   :  { %v1247_v61 = vpop.f32.mrb[63].mxu0  ;;  %v1265_v25 = vmax.f32 %v1245_v28, 0.0  ;;  %v1280_v46 = vmin.f32 %v1264_v5, 1.0  ;;  %v1432_v47 = vmul.f32 1.442695, %v1405_v56  ;;  %3149 = vpow2.f32 %v1430_v20 }
 0x38f   :  { %v1313_v18 = vmax.f32 %v1247_v61, 0.0  ;;  %v1390_v1 = vsub.f32 %v4074_v30, %v4201_v0  ;;  %v1359_v39 = vadd.f32 %v1343_v50, %v1295_v23  ;;  %v1328_v40 = vmin.f32 %v1312_v11, 1.0  ;;  %v3142_v33 = vpop.eup %3141 }
 0x390   :  { %v1296_v34 = vmul.f32 %v1280_v46, %v3574_v44  ;;  %v1281_v21 = vmin.f32 %v1265_v25, 1.0  ;;  %v1496_v27 = vmul.f32 1.442695, %v1469_v9  ;;  %v1454_v31 = vsub.f32 %v1358_v3, %v4201_v0  ;;  %v3144_v59 = vpop.eup %3143 }
 0x391   :  { %v1329_v35 = vmin.f32 %v1313_v18, 1.0  ;;  %v1406_v10 = vmul.f32 100.0, %v1390_v1  ;;  %v4209_v36 = vmax.f32 %v4070_v17, %v1359_v39  ;;  %v1344_v2 = vmul.f32 %v1328_v40, %v3576_v48 }
 0x392   :  { %v1297_v8 = vmul.f32 %v1281_v21, %v3574_v44  ;;  %3151 = vlog2.f32 %v1508_v32  ;;  %v1510_v6 = vadd.f32 %v4171_v14, %v4165_v38  ;;  %v1470_v32 = vmul.f32 100.0, %v1454_v31 }
 0x393   :  { %v1345_v30 = vmul.f32 %v1329_v35, %v3576_v48  ;;  %3153 = vpow2.f32 %v1432_v47  ;;  %v1391_v7 = vsub.f32 %v4070_v17, %v4209_v36  ;;  %v1455_v24 = vsub.f32 %v1359_v39, %v4209_v36 }
 0x394   :  { %v1434_v62 = vmul.f32 1.442695, %v1406_v10  ;;  %v1360_v3 = vadd.f32 %v1344_v2, %v1296_v34  ;;  %3155 = vlog2.f32 %v1509_v29  ;;  %v3146_v54 = vpop.eup %3145  ;;  %v1511_v38 = vadd.f32 %v4186_v4, %v4180_v43 }
 0x395   :  { %v1361_v23 = vadd.f32 %v1345_v30, %v1297_v8  ;;  %3157 = vpow2.f32 %v1496_v27  ;;  %v1407_v28 = vmul.f32 100.0, %v1391_v7  ;;  %v1471_v20 = vmul.f32 100.0, %v1455_v24 }
 0x396   :  { %3159 = vpow2.f32 %v1494_v63  ;;  %v4220_v56 = vmax.f32 %v4082_v49, %v1360_v3  ;;  %v3148_v14 = vpop.eup %3147  ;;  %v1512_v50 = vadd.f32 %v3136_v19, %v4194_v42  ;;  %v1513_v25 = vadd.f32 %v3140_v16, %v3138_v51 }
 0x397   :  { %v4223_v17 = vmax.f32 %v4079_v52, %v1361_v23  ;;  %v1436_v9 = vmul.f32 1.442695, %v1407_v28  ;;  %v1500_v5 = vmul.f32 1.442695, %v1471_v20  ;;  %3161 = vlog2.f32 %v1510_v6 }
 0x398   :  { %3163 = vpow2.f32 %v1434_v62  ;;  %v1392_v29 = vsub.f32 %v4082_v49, %v4220_v56  ;;  %v3150_v63 = vpop.eup %3149  ;;  %v1498_v46 = vmul.f32 1.442695, %v1470_v32  ;;  %v1456_v43 = vsub.f32 %v1360_v3, %v4220_v56 }
 0x399   :  { %v1393_v61 = vsub.f32 %v4079_v52, %v4223_v17  ;;  %3165 = vpow2.f32 %v1436_v9  ;;  %v1457_v11 = vsub.f32 %v1361_v23, %v4223_v17  ;;  %v1514_v19 = vadd.f32 %v3144_v59, %v3142_v33 }
 0x39a   :  { %3167 = vpow2.f32 %v1500_v5  ;;  %v1408_v18 = vmul.f32 100.0, %v1392_v29  ;;  %v1472_v51 = vmul.f32 100.0, %v1456_v43  ;;  %v1515_v21 = vadd.f32 %v3148_v14, %v3146_v54 }
 0x39b   :  { %3169 = vlog2.f32 %v1511_v38  ;;  %v1409_v47 = vmul.f32 100.0, %v1393_v61  ;;  %v1473_v39 = vmul.f32 100.0, %v1457_v11 }
 0x39c   :  { %v3152_v4 = vpop.eup %3151  ;;  %3171 = vlog2.f32 %v1512_v50  ;;  %v1438_v1 = vmul.f32 1.442695, %v1408_v18  ;;  %v1502_v62 = vmul.f32 1.442695, %v1472_v51 }
 0x39d   :  { %v3154_v49 = vpop.eup %3153  ;;  %v1527_v52 = vmul.f32 0.6931472, %v3152_v4  ;;  %3173 = vlog2.f32 %v1513_v25  ;;  %v1440_v27 = vmul.f32 1.442695, %v1409_v47  ;;  %v1504_v31 = vmul.f32 1.442695, %v1473_v39 }
 0x39e   :  { %v3156_v42 = vpop.eup %3155  ;;  %3175 = vpow2.f32 %v1498_v46 }
 0x39f   :  { %v3158_v40 = vpop.eup %3157  ;;  %v1529_v16 = vmul.f32 0.6931472, %v3156_v42  ;;  %v1556_v34 = vmul.f32 0.01, %v1527_v52  ;;  %3177 = vpow2.f32 %v1438_v1 }
 0x3a0   :  { %v3160_v35 = vpop.eup %3159  ;;  %3179 = vlog2.f32 %v1514_v19  ;;  %v1517_v24 = vadd.f32 %v3158_v40, %v3154_v49 }
 0x3a1   :  { %v3162_v10 = vpop.eup %3161  ;;  %v1557_v2 = vmul.f32 0.01, %v1529_v16  ;;  %v1572_v8 = vadd.f32 %v1556_v34, %v4098_v15  ;;  %3181 = vlog2.f32 %v1515_v21  ;;  %v1516_v54 = vadd.f32 %v3160_v35, %v3150_v63 }
 0x3a2   :  { %v3164_v30 = vpop.eup %3163  ;;  %v1531_v7 = vmul.f32 0.6931472, %v3162_v10  ;;  %3183 = vpow2.f32 %v1440_v27 }
 0x3a3   :  { %v3166_v6 = vpop.eup %3165  ;;  %v1573_v33 = vadd.f32 %v1557_v2, %v4112_v60  ;;  %v1588_v59 = vmax.f32 %v1572_v8, 0.0  ;;  %3185 = vpow2.f32 %v1504_v31 }
 0x3a4   :  { %v3168_v3 = vpop.eup %3167  ;;  %v1558_v23 = vmul.f32 0.01, %v1531_v7  ;;  %3187 = vlog2.f32 %v1517_v24 }
 0x3a5   :  { %v3170_v28 = vpop.eup %3169  ;;  %v1589_v20 = vmax.f32 %v1573_v33, 0.0  ;;  %3189 = vpow2.f32 %v1502_v62  ;;  %v4237_v38 = vmin.f32 %v1588_v59, 1.0  ;;  %v1519_v18 = vadd.f32 %v3168_v3, %v3166_v6 }
 0x3a6   :  { %v3172_v32 = vpop.eup %3171  ;;  %v1533_v9 = vmul.f32 0.6931472, %v3170_v28  ;;  %v1574_v15 = vadd.f32 %v1558_v23, %v4122_v41  ;;  %3191 = vlog2.f32 %v1516_v54 }
 0x3a7   :  { %v3174_v5 = vpop.eup %3173  ;;  %v4239_v14 = vmin.f32 %v1589_v20, 1.0  ;;  %v1535_v60 = vmul.f32 0.6931472, %v3172_v32  ;;  %3193 = vlog2.f32 %v1519_v18 }
 0x3a8   :  { %v3176_v29 = vpop.eup %3175  ;;  %v1559_v61 = vmul.f32 0.01, %v1533_v9  ;;  %v1537_v50 = vmul.f32 0.6931472, %v3174_v5  ;;  %v1590_v46 = vmax.f32 %v1574_v15, 0.0 }
 0x3a9   :  { %v1619_v11 = vpack.c.bf16 %v4239_v14, %v4237_v38  ;;  %v1560_v25 = vmul.f32 0.01, %v1535_v60  ;;  %v3178_v43 = vpop.eup %3177  ;;  %v1518_v1 = vadd.f32 %v3176_v29, %v3164_v30 }
 0x3aa   :  { %v1575_v63 = vadd.f32 %v1559_v61, %v4128_v37  ;;  %v1561_v41 = vmul.f32 0.01, %v1537_v50  ;;  %v3180_v4 = vpop.eup %3179  ;;  %v4247_v40 = vmin.f32 %v1590_v46, 1.0 }
 0x3ab   :  { %1669 = vmatmul.mubr.bf16.gmra.mrb[36].mxu1 %v1619_v11  ;;  %v3182_v39 = vpop.eup %3181  ;;  %v1576_v52 = vadd.f32 %v1560_v25, %v4137_v57  ;;  %v1539_v42 = vmul.f32 0.6931472, %v3180_v4  ;;  %3195 = vlog2.f32 %v1518_v1 }
 0x3ac   :  { %1678 = vmatprep.mubr.bf16.mxu1 %v5502_v45  ;;  %v1591_v47 = vmax.f32 %v1575_v63, 0.0  ;;  %v1577_v49 = vadd.f32 %v1561_v41, %v4145_v13  ;;  %v3184_v19 = vpop.eup %3183  ;;  %v1541_v51 = vmul.f32 0.6931472, %v3182_v39 }
 0x3ad   :  { %v3186_v16 = vpop.eup %3185  ;;  %v1592_v10 = vmax.f32 %v1576_v52, 0.0  ;;  %v1562_v31 = vmul.f32 0.01, %v1539_v42 }
 0x3ae   :  { %v4249_v37 = vmin.f32 %v1591_v47, 1.0  ;;  %v1593_v34 = vmax.f32 %v1577_v49, 0.0  ;;  %v3188_v21 = vpop.eup %3187  ;;  %v1563_v27 = vmul.f32 0.01, %v1541_v51  ;;  %v1521_v2 = vadd.f32 %v3186_v16, %v3184_v19 }
 0x3af   :  { %v3190_v13 = vpop.eup %3189  ;;  %v1545_v7 = vmul.f32 0.6931472, %v3188_v21  ;;  %v4257_v6 = vmin.f32 %v1592_v10, 1.0  ;;  %v1578_v62 = vadd.f32 %v1562_v31, %v4157_v58 }
 0x3b0   :  { %v1620_v35 = vpack.c.bf16 %v4249_v37, %v4247_v40  ;;  %v3192_v57 = vpop.eup %3191  ;;  %v4253_v8 = vmin.f32 %v1593_v34, 1.0  ;;  %v1579_v30 = vadd.f32 %v1563_v27, %v4168_v22  ;;  %v1520_v24 = vadd.f32 %v3190_v13, %v3178_v43 }
 0x3b1   :  { %v1543_v33 = vmul.f32 0.6931472, %v3192_v57  ;;  %3197 = vlog2.f32 %v1521_v2  ;;  %v1565_v23 = vmul.f32 0.01, %v1545_v7  ;;  %v3194_v54 = vpop.eup %3193  ;;  %v1594_v28 = vmax.f32 %v1578_v62, 0.0 }
 0x3b2   :  { %v1621_v59 = vpack.c.bf16 %v4253_v8, %v4257_v6  ;;  %v1595_v3 = vmax.f32 %v1579_v30, 0.0  ;;  %3199 = vlog2.f32 %v1520_v24  ;;  %v1549_v15 = vmul.f32 0.6931472, %v3194_v54 }
 0x3b3   :  { %1679 = vmatmul.mubr.bf16.gmra.mrb[40].mxu1 %v1620_v35  ;;  %v1564_v20 = vmul.f32 0.01, %v1543_v33  ;;  %v1581_v9 = vadd.f32 %v1565_v23, %v4189_v26  ;;  %v4266_v58 = vmin.f32 %v1594_v28, 1.0 }
 0x3b4   :  { %1688 = vmatprep.mubr.bf16.mxu1 %v5502_v45  ;;  %v4262_v32 = vmin.f32 %v1595_v3, 1.0  ;;  %v1567_v50 = vmul.f32 0.01, %v1549_v15 }
 0x3b5   :  { %v3196_v22 = vpop.eup %3195  ;;  %v1580_v5 = vadd.f32 %v1564_v20, %v4177_v53  ;;  %v1597_v61 = vmax.f32 %v1581_v9, 0.0 }
 0x3b6   :  { %v1547_v60 = vmul.f32 0.6931472, %v3196_v22  ;;  %v1622_v29 = vpack.c.bf16 %v4262_v32, %v4266_v58  ;;  %v1583_v26 = vadd.f32 %v1567_v50, %v4209_v36 }
 0x3b7   :  { %v1596_v25 = vmax.f32 %v1580_v5, 0.0  ;;  %v4271_v41 = vmin.f32 %v1597_v61, 1.0 }
 0x3b8   :  { %v1566_v63 = vmul.f32 0.01, %v1547_v60  ;;  %v1599_v49 = vmax.f32 %v1583_v26, 0.0 }
 0x3b9   :  { %v4275_v43 = vmin.f32 %v1596_v25, 1.0 }
 0x3ba   :  { %v1582_v53 = vadd.f32 %v1566_v63, %v4201_v0  ;;  %v4280_v42 = vmin.f32 %v1599_v49, 1.0 }
 0x3bb   :  { %1689 = vmatmul.mubr.bf16.gmra.mrb[44].mxu1 %v1621_v59  ;;  %v3198_v11 = vpop.eup %3197  ;;  %v1623_v47 = vpack.c.bf16 %v4271_v41, %v4275_v43 }
 0x3bc   :  { %1698 = vmatprep.mubr.bf16.mxu1 %v5502_v45  ;;  %v3200_v46 = vpop.eup %3199  ;;  %v1553_v18 = vmul.f32 0.6931472, %v3198_v11  ;;  %v1598_v39 = vmax.f32 %v1582_v53, 0.0 }
 0x3bd   :  { %v1551_v4 = vmul.f32 0.6931472, %v3200_v46 }
 0x3be   :  { %v1569_v1 = vmul.f32 0.01, %v1553_v18  ;;  %v4284_v19 = vmin.f32 %v1598_v39, 1.0  ;;  %v2123_v39 = vld [vmem:[%s5457_s3] sm:$0x1] }
 0x3bf   :  { %v1568_v52 = vmul.f32 0.01, %v1551_v4  ;;  %vm2124_vm0 = vcmp.gt.f32.partialorder %v2123_v39, 0.0 }
 0x3c0   :  { %v1585_v36 = vadd.f32 %v1569_v1, %v4223_v17  ;;  %v1624_v0 = vpack.c.bf16 %v4280_v42, %v4284_v19 }
 0x3c1   :  { %v1584_v51 = vadd.f32 %v1568_v52, %v4220_v56 }
 0x3c2   :  { %v1601_v16 = vmax.f32 %v1585_v36, 0.0 }
 0x3c3   :  { %1699 = vmatmul.mubr.bf16.gmra.mrb[48].mxu1 %v1622_v29  ;;  %v1600_v34 = vmax.f32 %v1584_v51, 0.0 }
 0x3c4   :  { %1708 = vmatprep.mubr.bf16.mxu1 %v5502_v45  ;;  %v4289_v21 = vmin.f32 %v1601_v16, 1.0 }
 0x3c5   :  { %v4292_v35 = vmin.f32 %v1600_v34, 1.0  ;;  %v2125_v34 = vsel %vm2124_vm0, 1, %v5502_v45 }
 0x3c7   :  { %v1625_v17 = vpack.c.bf16 %v4289_v21, %v4292_v35 }
 0x3cb   :  { %1709 = vmatmul.mubr.bf16.gmra.mrb[52].mxu1 %v1623_v47 }
 0x3cc   :  { %1718 = vmatprep.mubr.bf16.mxu1 %v5502_v45 }
 0x3d3   :  { %1719 = vmatmul.mubr.bf16.gmra.mrb[56].mxu1 %v1624_v0 }
 0x3d4   :  { %1728 = vmatprep.mubr.bf16.mxu1 %v5502_v45 }
 0x3db   :  { %1729 = vmatmul.mubr.bf16.gmra.mrb[60].mxu1 %v1625_v17 }
 0x43f   :  { %v1660_v27 = vpop.f32.mrb[32].mxu1 }
 0x440   :  { %v1739_v13 = vmax.f32 %v1660_v27, 0.0  ;;  %v1662_v10 = vpop.f32.mrb[33].mxu1 }
 0x441   :  { %v1787_v56 = vmax.f32 %v1662_v10, 0.0  ;;  %v1664_v31 = vpop.f32.mrb[34].mxu1 }
 0x442   :  { %v1755_v57 = vmin.f32 %v1739_v13, 1.0  ;;  %v1740_v2 = vmax.f32 %v1664_v31, 0.0  ;;  %v1666_v30 = vpop.f32.mrb[35].mxu1 }
 0x443   :  { %v1803_v7 = vmin.f32 %v1787_v56, 1.0  ;;  %v1788_v24 = vmax.f32 %v1666_v30, 0.0 }
 0x444   :  { %v1771_v62 = vmul.f32 %v1755_v57, %v3574_v44  ;;  %v1756_v33 = vmin.f32 %v1740_v2, 1.0 }
 0x445   :  { %v1819_v59 = vmul.f32 %v1803_v7, %v3576_v48  ;;  %v1804_v3 = vmin.f32 %v1788_v24, 1.0 }
 0x446   :  { %v1772_v23 = vmul.f32 %v1756_v33, %v3574_v44 }
 0x447   :  { %v1835_v54 = vadd.f32 %v1819_v59, %v1771_v62  ;;  %v1820_v28 = vmul.f32 %v1804_v3, %v3576_v48 }
 0x449   :  { %v1851_v20 = vmax.f32 %v4101_v12, %v1835_v54  ;;  %v1836_v22 = vadd.f32 %v1820_v28, %v1772_v23 }
 0x44b   :  { %v1867_v9 = vsub.f32 %v4101_v12, %v1851_v20  ;;  %v1931_v15 = vsub.f32 %v1835_v54, %v1851_v20  ;;  %v1852_v5 = vmax.f32 %v4103_v55, %v1836_v22 }
 0x44d   :  { %v1883_v60 = vmul.f32 100.0, %v1867_v9  ;;  %v1947_v29 = vmul.f32 100.0, %v1931_v15  ;;  %v1868_v61 = vsub.f32 %v4103_v55, %v1852_v5  ;;  %v1932_v50 = vsub.f32 %v1836_v22, %v1852_v5 }
 0x44e   :  { %v2126_v55 = vlaneseq }
 0x44f   :  { %v1899_v11 = vmul.f32 1.442695, %v1883_v60  ;;  %v1963_v25 = vmul.f32 1.442695, %v1947_v29  ;;  %v1884_v63 = vmul.f32 100.0, %v1868_v61  ;;  %v1948_v46 = vmul.f32 100.0, %v1932_v50 }
 0x450   :  { %v2127_v52 = vshrl.u32 %v2126_v55, 7 }
 0x451   :  { %3201 = vpow2.f32 %v1899_v11  ;;  %v1901_v26 = vmul.f32 1.442695, %v1884_v63  ;;  %v1965_v18 = vmul.f32 1.442695, %v1948_v46 }
 0x452   :  { %3203 = vpow2.f32 %v1963_v25  ;;  %v2128_v0 = vsub.s32 0, %v2127_v52 }
 0x453   :  { %3205 = vpow2.f32 %v1901_v26 }
 0x454   :  { %3207 = vpow2.f32 %v1965_v18  ;;  %v4309_v56 = vrot.slane %v2125_v34, %v2128_v0 }
 0x456   :  { %vm2130_vm1 = vcmp.eq.s32.totalorder %v4309_v56, 1 }
 0x45b   :  { %v3202_v53 = vpop.eup %3201 }
 0x45c   :  { %v3204_v12 = vpop.eup %3203 }
 0x45d   :  { %v3206_v4 = vpop.eup %3205  ;;  %v1995_v47 = vadd.f32 %v3204_v12, %v3202_v53 }
 0x45e   :  { %v3208_v49 = vpop.eup %3207 }
 0x45f   :  { %3209 = vlog2.f32 %v1995_v47  ;;  %v1996_v1 = vadd.f32 %v3208_v49, %v3206_v4 }
 0x461   :  { %3211 = vlog2.f32 %v1996_v1 }
 0x469   :  { %v3210_v36 = vpop.eup %3209 }
 0x46a   :  { %v2012_v51 = vmul.f32 0.6931472, %v3210_v36 }
 0x46b   :  { %v3212_v16 = vpop.eup %3211 }
 0x46c   :  { %v2043_v17 = vmul.f32 0.01, %v2012_v51  ;;  %v2014_v27 = vmul.f32 0.6931472, %v3212_v16 }
 0x46e   :  { %v2059_v13 = vadd.f32 %v2043_v17, %v1851_v20  ;;  %v2044_v10 = vmul.f32 0.01, %v2014_v27 }
 0x470   :  { %v2075_v31 = vmax.f32 %v2059_v13, 0.0  ;;  %v2060_v57 = vadd.f32 %v2044_v10, %v1852_v5 }
 0x472   :  { %v2076_v2 = vmax.f32 %v2060_v57, 0.0  ;;  %v4311_v30 = vmin.f32 %v2075_v31, 1.0 }
 0x474   :  { %2197 = vmax.xlane.f32.xlu0 %v4311_v30  ;;  %2107 = vst [vmem:[%s5458_s4] sm:$0xff] %v4311_v30  ;;  %v4319_v45 = vmin.f32 %v2076_v2, 1.0  ;;  %vm2131_vm2 = vcmp.gt.f32.partialorder %v4311_v30, 0.2 }
 0x475   :  { %vm2147_vm3 = vmand %vm2130_vm1, %vm2131_vm2 }
 0x476   :  { %2108 = vst [vmem:[%s5458_s4 + $0x8] sm:$0xff] %v4319_v45  ;;  %vm2132_vm4 = vcmp.gt.f32.partialorder %v4319_v45, 0.2  ;;  %v2163_v7 = vsel %vm2147_vm3, %v4311_v30, 0.0 }
 0x477   :  { %vm2148_vm5 = vmand %vm2130_vm1, %vm2132_vm4  ;;  %2179 = vst [vmem:[%s5459_s5] sm:$0xff] %v2163_v7 }
 0x478   :  { %2199 = vmax.xlane.f32.xlu0 %v4319_v45  ;;  %v4337_v24 = vsel %vm2148_vm5, %v4319_v45, 0.0 }
 0x479   :  { %2487 = vmax.xlane.f32.xlu1 %v4337_v24  ;;  %2180 = vst [vmem:[%s5459_s5 + $0x8] sm:$0xff] %v4337_v24 }
 0x47c   :  { %2485 = vmax.xlane.f32.xlu0 %v2163_v7 }
 0x47e   :  { %v1670_v62 = vpop.f32.mrb[36].mxu1 }
 0x47f   :  { %v1741_v33 = vmax.f32 %v1670_v62, 0.0  ;;  %v1672_v59 = vpop.f32.mrb[37].mxu1 }
 0x480   :  { %v1789_v3 = vmax.f32 %v1672_v59, 0.0  ;;  %v1674_v23 = vpop.f32.mrb[38].mxu1 }
 0x481   :  { %v1757_v54 = vmin.f32 %v1741_v33, 1.0  ;;  %v1742_v28 = vmax.f32 %v1674_v23, 0.0  ;;  %v1676_v20 = vpop.f32.mrb[39].mxu1 }
 0x482   :  { %v1805_v22 = vmin.f32 %v1789_v3, 1.0  ;;  %v1790_v9 = vmax.f32 %v1676_v20, 0.0 }
 0x483   :  { %v1773_v15 = vmul.f32 %v1757_v54, %v3574_v44  ;;  %v1758_v5 = vmin.f32 %v1742_v28, 1.0 }
 0x484   :  { %v1821_v60 = vmul.f32 %v1805_v22, %v3576_v48  ;;  %v1806_v29 = vmin.f32 %v1790_v9, 1.0 }
 0x485   :  { %v1774_v61 = vmul.f32 %v1758_v5, %v3574_v44 }
 0x486   :  { %v1837_v50 = vadd.f32 %v1821_v60, %v1773_v15  ;;  %v1822_v11 = vmul.f32 %v1806_v29, %v3576_v48  ;;  %v1680_v25 = vpop.f32.mrb[40].mxu1 }
 0x487   :  { %v1743_v63 = vmax.f32 %v1680_v25, 0.0  ;;  %v1682_v46 = vpop.f32.mrb[41].mxu1 }
 0x488   :  { %v4349_v26 = vmax.f32 %v4237_v38, %v1837_v50  ;;  %v1838_v18 = vadd.f32 %v1822_v11, %v1774_v61  ;;  %v1791_v53 = vmax.f32 %v1682_v46, 0.0  ;;  %v1684_v12 = vpop.f32.mrb[42].mxu1 }
 0x489   :  { %v1759_v4 = vmin.f32 %v1743_v63, 1.0  ;;  %v1744_v47 = vmax.f32 %v1684_v12, 0.0  ;;  %v1686_v49 = vpop.f32.mrb[43].mxu1 }
 0x48a   :  { %v1869_v1 = vsub.f32 %v4237_v38, %v4349_v26  ;;  %v1933_v39 = vsub.f32 %v1837_v50, %v4349_v26  ;;  %v4355_v52 = vmax.f32 %v4239_v14, %v1838_v18  ;;  %v1807_v36 = vmin.f32 %v1791_v53, 1.0 }
 0x48b   :  { %v1775_v51 = vmul.f32 %v1759_v4, %v3574_v44  ;;  %v1760_v0 = vmin.f32 %v1744_v47, 1.0  ;;  %v1792_v16 = vmax.f32 %v1686_v49, 0.0 }
 0x48c   :  { %v1885_v34 = vmul.f32 100.0, %v1869_v1  ;;  %v1949_v17 = vmul.f32 100.0, %v1933_v39  ;;  %v1870_v27 = vsub.f32 %v4239_v14, %v4355_v52  ;;  %v1934_v13 = vsub.f32 %v1838_v18, %v4355_v52 }
 0x48d   :  { %v1823_v10 = vmul.f32 %v1807_v36, %v3576_v48  ;;  %v1776_v38 = vmul.f32 %v1760_v0, %v3574_v44  ;;  %v1808_v31 = vmin.f32 %v1792_v16, 1.0 }
 0x48e   :  { %v1903_v57 = vmul.f32 1.442695, %v1885_v34  ;;  %v1967_v2 = vmul.f32 1.442695, %v1949_v17  ;;  %v1886_v7 = vmul.f32 100.0, %v1870_v27  ;;  %v1950_v62 = vmul.f32 100.0, %v1934_v13 }
 0x48f   :  { %v1839_v33 = vadd.f32 %v1823_v10, %v1775_v51  ;;  %v1824_v59 = vmul.f32 %v1808_v31, %v3576_v48  ;;  %v1690_v3 = vpop.f32.mrb[44].mxu1 }
 0x490   :  { %3213 = vpow2.f32 %v1903_v57  ;;  %v1905_v23 = vmul.f32 1.442695, %v1886_v7  ;;  %v1969_v54 = vmul.f32 1.442695, %v1950_v62  ;;  %v1745_v28 = vmax.f32 %v1690_v3, 0.0  ;;  %v1692_v14 = vpop.f32.mrb[45].mxu1 }
 0x491   :  { %3215 = vpow2.f32 %v1967_v2  ;;  %v4365_v20 = vmax.f32 %v4247_v40, %v1839_v33  ;;  %v1840_v22 = vadd.f32 %v1824_v59, %v1776_v38  ;;  %v1793_v9 = vmax.f32 %v1692_v14, 0.0  ;;  %v1694_v15 = vpop.f32.mrb[46].mxu1 }
 0x492   :  { %3217 = vpow2.f32 %v1905_v23  ;;  %v1761_v5 = vmin.f32 %v1745_v28, 1.0  ;;  %v1746_v60 = vmax.f32 %v1694_v15, 0.0  ;;  %v1696_v29 = vpop.f32.mrb[47].mxu1 }
 0x493   :  { %3219 = vpow2.f32 %v1969_v54  ;;  %v1871_v61 = vsub.f32 %v4247_v40, %v4365_v20  ;;  %v1935_v50 = vsub.f32 %v1839_v33, %v4365_v20  ;;  %v4371_v11 = vmax.f32 %v4249_v37, %v1840_v22 }
 0x494   :  { %v1777_v25 = vmul.f32 %v1761_v5, %v3574_v44  ;;  %v1809_v63 = vmin.f32 %v1793_v9, 1.0  ;;  %v1762_v46 = vmin.f32 %v1746_v60, 1.0  ;;  %v1794_v18 = vmax.f32 %v1696_v29, 0.0 }
 0x495   :  { %v1887_v53 = vmul.f32 100.0, %v1871_v61  ;;  %v1951_v12 = vmul.f32 100.0, %v1935_v50  ;;  %v1872_v4 = vsub.f32 %v4249_v37, %v4371_v11  ;;  %v1936_v47 = vsub.f32 %v1840_v22, %v4371_v11 }
 0x496   :  { %v1825_v49 = vmul.f32 %v1809_v63, %v3576_v48  ;;  %v1778_v40 = vmul.f32 %v1762_v46, %v3574_v44  ;;  %v1810_v1 = vmin.f32 %v1794_v18, 1.0  ;;  %v1700_v39 = vpop.f32.mrb[48].mxu1 }
 0x497   :  { %v1907_v36 = vmul.f32 1.442695, %v1887_v53  ;;  %v1971_v51 = vmul.f32 1.442695, %v1951_v12  ;;  %v1888_v0 = vmul.f32 100.0, %v1872_v4  ;;  %v1952_v16 = vmul.f32 100.0, %v1936_v47 }
 0x498   :  { %v1841_v34 = vadd.f32 %v1825_v49, %v1777_v25  ;;  %v1826_v17 = vmul.f32 %v1810_v1, %v3576_v48  ;;  %v1747_v27 = vmax.f32 %v1700_v39, 0.0  ;;  %v1702_v13 = vpop.f32.mrb[49].mxu1 }
 0x499   :  { %3221 = vpow2.f32 %v1907_v36  ;;  %v1909_v10 = vmul.f32 1.442695, %v1888_v0  ;;  %v1973_v37 = vmul.f32 1.442695, %v1952_v16  ;;  %v1795_v38 = vmax.f32 %v1702_v13, 0.0  ;;  %v1704_v31 = vpop.f32.mrb[50].mxu1 }
 0x49a   :  { %v3214_v57 = vpop.eup %3213  ;;  %3223 = vpow2.f32 %v1971_v51  ;;  %v4381_v2 = vmax.f32 %v4257_v6, %v1841_v34  ;;  %v1842_v7 = vadd.f32 %v1826_v17, %v1778_v40  ;;  %v1763_v62 = vmin.f32 %v1747_v27, 1.0  ;;  %v1706_v33 = vpop.f32.mrb[51].mxu1 }
 0x49b   :  { %v3216_v59 = vpop.eup %3215  ;;  %3225 = vpow2.f32 %v1909_v10  ;;  %v1811_v3 = vmin.f32 %v1795_v38, 1.0  ;;  %v1748_v23 = vmax.f32 %v1704_v31, 0.0  ;;  %v1796_v54 = vmax.f32 %v1706_v33, 0.0 }
 0x49c   :  { %v3218_v28 = vpop.eup %3217  ;;  %v1997_v14 = vadd.f32 %v3216_v59, %v3214_v57  ;;  %3227 = vpow2.f32 %v1973_v37  ;;  %v1873_v22 = vsub.f32 %v4257_v6, %v4381_v2  ;;  %v1937_v9 = vsub.f32 %v1841_v34, %v4381_v2 }
 0x49d   :  { %v3220_v15 = vpop.eup %3219  ;;  %v4387_v5 = vmax.f32 %v4253_v8, %v1842_v7  ;;  %v1779_v60 = vmul.f32 %v1763_v62, %v3574_v44  ;;  %v1827_v29 = vmul.f32 %v1811_v3, %v3576_v48  ;;  %v1764_v61 = vmin.f32 %v1748_v23, 1.0 }
 0x49e   :  { %3229 = vlog2.f32 %v1997_v14  ;;  %v1998_v50 = vadd.f32 %v3220_v15, %v3218_v28  ;;  %v1889_v25 = vmul.f32 100.0, %v1873_v22  ;;  %v1953_v63 = vmul.f32 100.0, %v1937_v9  ;;  %v1710_v46 = vpop.f32.mrb[52].mxu1 }
 0x49f   :  { %v1874_v18 = vsub.f32 %v4253_v8, %v4387_v5  ;;  %v1938_v6 = vsub.f32 %v1842_v7, %v4387_v5  ;;  %v1843_v53 = vadd.f32 %v1827_v29, %v1779_v60  ;;  %v1780_v12 = vmul.f32 %v1764_v61, %v3574_v44  ;;  %v1712_v4 = vpop.f32.mrb[53].mxu1 }
 0x4a0   :  { %3231 = vlog2.f32 %v1998_v50  ;;  %v1911_v47 = vmul.f32 1.442695, %v1889_v25  ;;  %v1975_v49 = vmul.f32 1.442695, %v1953_v63  ;;  %v1812_v40 = vmin.f32 %v1796_v54, 1.0  ;;  %v1714_v1 = vpop.f32.mrb[54].mxu1 }
 0x4a1   :  { %v1890_v39 = vmul.f32 100.0, %v1874_v18  ;;  %v1954_v36 = vmul.f32 100.0, %v1938_v6  ;;  %v4396_v51 = vmax.f32 %v4266_v58, %v1843_v53  ;;  %v1749_v0 = vmax.f32 %v1710_v46, 0.0  ;;  %v1716_v16 = vpop.f32.mrb[55].mxu1 }
 0x4a2   :  { %3233 = vpow2.f32 %v1911_v47  ;;  %v1828_v8 = vmul.f32 %v1812_v40, %v3576_v48  ;;  %v1797_v34 = vmax.f32 %v1712_v4, 0.0  ;;  %v1750_v17 = vmax.f32 %v1714_v1, 0.0 }
 0x4a3   :  { %v3222_v27 = vpop.eup %3221  ;;  %3235 = vpow2.f32 %v1975_v49  ;;  %v1913_v13 = vmul.f32 1.442695, %v1890_v39  ;;  %v1977_v10 = vmul.f32 1.442695, %v1954_v36  ;;  %v1875_v37 = vsub.f32 %v4266_v58, %v4396_v51 }
 0x4a4   :  { %v3224_v38 = vpop.eup %3223  ;;  %v1939_v31 = vsub.f32 %v1843_v53, %v4396_v51  ;;  %v1844_v57 = vadd.f32 %v1828_v8, %v1780_v12  ;;  %v1765_v7 = vmin.f32 %v1749_v0, 1.0  ;;  %v1813_v62 = vmin.f32 %v1797_v34, 1.0 }
 0x4a5   :  { %v3226_v33 = vpop.eup %3225  ;;  %v1999_v59 = vadd.f32 %v3224_v38, %v3222_v27  ;;  %3237 = vpow2.f32 %v1913_v13  ;;  %v1891_v3 = vmul.f32 100.0, %v1875_v37  ;;  %v1766_v23 = vmin.f32 %v1750_v17, 1.0 }
 0x4a6   :  { %v3228_v54 = vpop.eup %3227  ;;  %3239 = vpow2.f32 %v1977_v10  ;;  %v1955_v28 = vmul.f32 100.0, %v1939_v31  ;;  %v4403_v14 = vmax.f32 %v4262_v32, %v1844_v57  ;;  %v1781_v22 = vmul.f32 %v1765_v7, %v3574_v44  ;;  %v1720_v58 = vpop.f32.mrb[56].mxu1 }
 0x4a7   :  { %3241 = vlog2.f32 %v1999_v59  ;;  %v2000_v9 = vadd.f32 %v3228_v54, %v3226_v33  ;;  %v1915_v15 = vmul.f32 1.442695, %v1891_v3  ;;  %v1829_v60 = vmul.f32 %v1813_v62, %v3576_v48  ;;  %v1722_v29 = vpop.f32.mrb[57].mxu1 }
 0x4a8   :  { %v3230_v61 = vpop.eup %3229  ;;  %v1979_v50 = vmul.f32 1.442695, %v1955_v28  ;;  %v1876_v25 = vsub.f32 %v4262_v32, %v4403_v14  ;;  %v1940_v63 = vsub.f32 %v1844_v57, %v4403_v14  ;;  %v1782_v46 = vmul.f32 %v1766_v23, %v3574_v44  ;;  %v1724_v18 = vpop.f32.mrb[58].mxu1 }
 0x4a9   :  { %v2016_v6 = vmul.f32 0.6931472, %v3230_v61  ;;  %3243 = vlog2.f32 %v2000_v9  ;;  %v1845_v53 = vadd.f32 %v1829_v60, %v1781_v22  ;;  %v1798_v12 = vmax.f32 %v1716_v16, 0.0  ;;  %v4411_v4 = vpop.f32.mrb[59].mxu1 }
 0x4aa   :  { %v3232_v47 = vpop.eup %3231  ;;  %3245 = vpow2.f32 %v1915_v15  ;;  %v1892_v49 = vmul.f32 100.0, %v1876_v25  ;;  %v1956_v40 = vmul.f32 100.0, %v1940_v63  ;;  %v1751_v1 = vmax.f32 %v1720_v58, 0.0 }
 0x4ab   :  { %v2045_v39 = vmul.f32 0.01, %v2016_v6  ;;  %v2018_v36 = vmul.f32 0.6931472, %v3232_v47  ;;  %3247 = vpow2.f32 %v1979_v50  ;;  %v4414_v32 = vmax.f32 %v4275_v43, %v1845_v53 }
 0x4ac   :  { %v3234_v0 = vpop.eup %3233  ;;  %v1917_v8 = vmul.f32 1.442695, %v1892_v49  ;;  %v1981_v34 = vmul.f32 1.442695, %v1956_v40  ;;  %v1814_v17 = vmin.f32 %v1798_v12, 1.0  ;;  %v1767_v27 = vmin.f32 %v1751_v1, 1.0 }
 0x4ad   :  { %v3236_v13 = vpop.eup %3235  ;;  %v4417_v16 = vadd.f32 %v2045_v39, %v4349_v26  ;;  %v2046_v10 = vmul.f32 0.01, %v2018_v36  ;;  %v1877_v37 = vsub.f32 %v4275_v43, %v4414_v32  ;;  %v1941_v38 = vsub.f32 %v1845_v53, %v4414_v32 }
 0x4ae   :  { %v2001_v31 = vadd.f32 %v3236_v13, %v3234_v0  ;;  %3249 = vpow2.f32 %v1917_v8  ;;  %v1830_v57 = vmul.f32 %v1814_v17, %v3576_v48  ;;  %v1783_v7 = vmul.f32 %v1767_v27, %v3574_v44  ;;  %v1730_v62 = vpop.f32.mrb[60].mxu1 }
 0x4af   :  { %v3238_v33 = vpop.eup %3237  ;;  %v2077_v59 = vmax.f32 %v4417_v16, 0.0  ;;  %v4426_v3 = vadd.f32 %v2046_v10, %v4355_v52  ;;  %3251 = vpow2.f32 %v1981_v34  ;;  %v1893_v26 = vmul.f32 100.0, %v1877_v37  ;;  %v1732_v23 = vpop.f32.mrb[61].mxu1 }
 0x4b0   :  { %v3240_v54 = vpop.eup %3239  ;;  %3253 = vlog2.f32 %v2001_v31  ;;  %v1957_v43 = vmul.f32 100.0, %v1941_v38  ;;  %v1846_v28 = vadd.f32 %v1830_v57, %v1782_v46  ;;  %v1799_v22 = vmax.f32 %v1722_v29, 0.0  ;;  %v4428_v58 = vpop.f32.mrb[62].mxu1 }
 0x4b1   :  { %v3242_v9 = vpop.eup %3241  ;;  %v2078_v15 = vmax.f32 %v4426_v3, 0.0  ;;  %v2002_v60 = vadd.f32 %v3240_v54, %v3238_v33  ;;  %v1919_v61 = vmul.f32 1.442695, %v1893_v26  ;;  %v1752_v50 = vmax.f32 %v1724_v18, 0.0  ;;  %v4431_v25 = vpop.f32.mrb[63].mxu1 }
 0x4b2   :  { %v2020_v52 = vmul.f32 0.6931472, %v3242_v9  ;;  %v1983_v63 = vmul.f32 1.442695, %v1957_v43  ;;  %v4434_v6 = vmax.f32 %v4271_v41, %v1846_v28  ;;  %v1815_v53 = vmin.f32 %v1799_v22, 1.0 }
 0x4b3   :  { %v3244_v12 = vpop.eup %3243  ;;  %3255 = vlog2.f32 %v2002_v60  ;;  %v1768_v46 = vmin.f32 %v1752_v50, 1.0  ;;  %v1800_v29 = vmax.f32 %v4411_v4, 0.0  ;;  %v1753_v47 = vmax.f32 %v1730_v62, 0.0 }
 0x4b4   :  { %v3246_v49 = vpop.eup %3245  ;;  %v2047_v40 = vmul.f32 0.01, %v2020_v52  ;;  %v2022_v1 = vmul.f32 0.6931472, %v3244_v12  ;;  %3257 = vpow2.f32 %v1919_v61  ;;  %v1878_v18 = vsub.f32 %v4271_v41, %v4434_v6 }
 0x4b5   :  { %v3248_v39 = vpop.eup %3247  ;;  %3259 = vpow2.f32 %v1983_v63  ;;  %v1942_v36 = vsub.f32 %v1846_v28, %v4434_v6  ;;  %v1831_v0 = vmul.f32 %v1815_v53, %v3576_v48  ;;  %v1784_v8 = vmul.f32 %v1768_v46, %v3574_v44 }
 0x4b6   :  { %v4443_v34 = vadd.f32 %v2047_v40, %v4365_v20  ;;  %v2048_v4 = vmul.f32 0.01, %v2022_v1  ;;  %v2003_v17 = vadd.f32 %v3248_v39, %v3246_v49  ;;  %v1894_v27 = vmul.f32 100.0, %v1878_v18 }
 0x4b7   :  { %v1958_v13 = vmul.f32 100.0, %v1942_v36  ;;  %v1847_v10 = vadd.f32 %v1831_v0, %v1783_v7  ;;  %v1816_v37 = vmin.f32 %v1800_v29, 1.0  ;;  %v1769_v38 = vmin.f32 %v1753_v47, 1.0 }
 0x4b8   :  { %v3250_v31 = vpop.eup %3249  ;;  %v2079_v41 = vmax.f32 %v4443_v34, 0.0  ;;  %v4447_v57 = vadd.f32 %v2048_v4, %v4371_v11  ;;  %3261 = vlog2.f32 %v2003_v17  ;;  %v1921_v62 = vmul.f32 1.442695, %v1894_v27 }
 0x4b9   :  { %v3252_v33 = vpop.eup %3251  ;;  %v1985_v26 = vmul.f32 1.442695, %v1958_v13  ;;  %v4450_v20 = vmax.f32 %v4284_v19, %v1847_v10  ;;  %v1832_v54 = vmul.f32 %v1816_v37, %v3576_v48  ;;  %v1785_v43 = vmul.f32 %v1769_v38, %v3574_v44 }
 0x4ba   :  { %v3254_v7 = vpop.eup %3253  ;;  %v2080_v28 = vmax.f32 %v4447_v57, 0.0  ;;  %v2004_v22 = vadd.f32 %v3252_v33, %v3250_v31  ;;  %3263 = vpow2.f32 %v1921_v62  ;;  %v1801_v9 = vmax.f32 %v1732_v23, 0.0 }
 0x4bb   :  { %v2024_v60 = vmul.f32 0.6931472, %v3254_v7  ;;  %3265 = vpow2.f32 %v1985_v26  ;;  %v1879_v11 = vsub.f32 %v4284_v19, %v4450_v20  ;;  %v1943_v61 = vsub.f32 %v1847_v10, %v4450_v20 }
 0x4bc   :  { %3267 = vlog2.f32 %v2004_v22  ;;  %v1848_v50 = vadd.f32 %v1832_v54, %v1784_v8  ;;  %v1817_v52 = vmin.f32 %v1801_v9, 1.0  ;;  %v1754_v63 = vmax.f32 %v4428_v58, 0.0 }
 0x4bd   :  { %v3256_v53 = vpop.eup %3255  ;;  %v2049_v12 = vmul.f32 0.01, %v2024_v60  ;;  %v1895_v46 = vmul.f32 100.0, %v1879_v11  ;;  %v1959_v29 = vmul.f32 100.0, %v1943_v61  ;;  %v1802_v47 = vmax.f32 %v4431_v25, 0.0 }
 0x4be   :  { %v3258_v49 = vpop.eup %3257  ;;  %v2026_v23 = vmul.f32 0.6931472, %v3256_v53  ;;  %v4461_v40 = vmax.f32 %v4280_v42, %v1848_v50  ;;  %v1833_v19 = vmul.f32 %v1817_v52, %v3576_v48  ;;  %v1770_v1 = vmin.f32 %v1754_v63, 1.0 }
 0x4bf   :  { %v3260_v18 = vpop.eup %3259  ;;  %v4465_v39 = vadd.f32 %v2049_v12, %v4381_v2  ;;  %v1923_v36 = vmul.f32 1.442695, %v1895_v46  ;;  %v1987_v58 = vmul.f32 1.442695, %v1959_v29  ;;  %v1818_v0 = vmin.f32 %v1802_v47, 1.0 }
 0x4c0   :  { %v2050_v8 = vmul.f32 0.01, %v2026_v23  ;;  %v2005_v4 = vadd.f32 %v3260_v18, %v3258_v49  ;;  %v1880_v25 = vsub.f32 %v4280_v42, %v4461_v40  ;;  %v1944_v17 = vsub.f32 %v1848_v50, %v4461_v40 }
 0x4c1   :  { %v2081_v27 = vmax.f32 %v4465_v39, 0.0  ;;  %3269 = vpow2.f32 %v1923_v36  ;;  %v1849_v13 = vadd.f32 %v1833_v19, %v1785_v43  ;;  %v1786_v10 = vmul.f32 %v1770_v1, %v3574_v44 }
 0x4c2   :  { %v3262_v37 = vpop.eup %3261  ;;  %v4473_v2 = vadd.f32 %v2050_v8, %v4387_v5  ;;  %3271 = vlog2.f32 %v2005_v4  ;;  %v1896_v38 = vmul.f32 100.0, %v1880_v25  ;;  %v1960_v31 = vmul.f32 100.0, %v1944_v17 }
 0x4c3   :  { %v2028_v62 = vmul.f32 0.6931472, %v3262_v37  ;;  %3273 = vpow2.f32 %v1987_v58  ;;  %v4476_v33 = vmax.f32 %v4292_v35, %v1849_v13  ;;  %v1834_v42 = vmul.f32 %v1818_v0, %v3576_v48 }
 0x4c4   :  { %v3264_v26 = vpop.eup %3263  ;;  %v2082_v54 = vmax.f32 %v4473_v2, 0.0  ;;  %v1925_v43 = vmul.f32 1.442695, %v1896_v38  ;;  %v1989_v7 = vmul.f32 1.442695, %v1960_v31  ;;  %v4482_v44 = vmin.f32 %v2077_v59, 1.0 }
 0x4c5   :  { %v3266_v5 = vpop.eup %3265  ;;  %v2051_v22 = vmul.f32 0.01, %v2028_v62  ;;  %v1881_v9 = vsub.f32 %v4292_v35, %v4476_v33  ;;  %v1945_v60 = vsub.f32 %v1849_v13, %v4476_v33  ;;  %v1850_v11 = vadd.f32 %v1834_v42, %v1786_v10 }
 0x4c6   :  { %v3268_v61 = vpop.eup %3267  ;;  %v2006_v50 = vadd.f32 %v3266_v5, %v3264_v26  ;;  %3275 = vpow2.f32 %v1925_v43  ;;  %2201 = vmax.xlane.f32.xlu1 %v4482_v44  ;;  %2109 = vst [vmem:[%s5458_s4 + $0x10] sm:$0xff] %v4482_v44  ;;  %vm2133_vm6 = vcmp.gt.f32.partialorder %v4482_v44, 0.2  ;;  %v4495_v48 = vmin.f32 %v2078_v15, 1.0 }
 0x4c7   :  { %v2067_v35 = vadd.f32 %v2051_v22, %v4396_v51  ;;  %v2030_v16 = vmul.f32 0.6931472, %v3268_v61  ;;  %3277 = vpow2.f32 %v1989_v7  ;;  %v1897_v59 = vmul.f32 100.0, %v1881_v9  ;;  %vm2149_vm7 = vmand %vm2130_vm1, %vm2133_vm6 }
 0x4c8   :  { %3279 = vlog2.f32 %v2006_v50  ;;  %v1961_v52 = vmul.f32 100.0, %v1945_v60  ;;  %v4501_v63 = vmax.f32 %v4289_v21, %v1850_v11  ;;  %v4504_v53 = vsel %vm2149_vm7, %v4482_v44, 0.0  ;;  %2110 = vst [vmem:[%s5458_s4 + $0x18] sm:$0xff] %v4495_v48 }
 0x4c9   :  { %v2083_v51 = vmax.f32 %v2067_v35, 0.0  ;;  %v2052_v3 = vmul.f32 0.01, %v2030_v16  ;;  %v1927_v15 = vmul.f32 1.442695, %v1897_v59  ;;  %2489 = vmax.xlane.f32.xlu0 %v4504_v53  ;;  %2181 = vst [vmem:[%s5459_s5 + $0x10] sm:$0xff] %v4504_v53 }
 0x4ca   :  { %v4517_v12 = vmin.f32 %v2079_v41, 1.0  ;;  %v1991_v46 = vmul.f32 1.442695, %v1961_v52  ;;  %v1882_v29 = vsub.f32 %v4289_v21, %v4501_v63  ;;  %v1946_v47 = vsub.f32 %v1850_v11, %v4501_v63  ;;  %2203 = vmax.xlane.f32.xlu1 %v4495_v48 }
 0x4cb   :  { %vm2134_vm8 = vcmp.gt.f32.partialorder %v4495_v48, 0.2  ;;  %v3270_v49 = vpop.eup %3269  ;;  %v2068_v23 = vadd.f32 %v2052_v3, %v4403_v14  ;;  %3281 = vpow2.f32 %v1927_v15  ;;  %v4534_v21 = vmin.f32 %v2080_v28, 1.0 }
 0x4cc   :  { %2111 = vst [vmem:[%s5458_s4 + $0x20] sm:$0xff] %v4517_v12  ;;  %vm2150_vm9 = vmand %vm2130_vm1, %vm2134_vm8  ;;  %vm2135_vm10 = vcmp.gt.f32.partialorder %v4517_v12, 0.2  ;;  %v3272_v34 = vpop.eup %3271  ;;  %3283 = vpow2.f32 %v1991_v46  ;;  %v1898_v41 = vmul.f32 100.0, %v1882_v29  ;;  %v1962_v19 = vmul.f32 100.0, %v1946_v47 }
 0x4cd   :  { %v4537_v14 = vsel %vm2150_vm9, %v4495_v48, 0.0  ;;  %vm2151_vm11 = vmand %vm2130_vm1, %vm2135_vm10  ;;  %v3274_v1 = vpop.eup %3273  ;;  %v2084_v18 = vmax.f32 %v2068_v23, 0.0  ;;  %v2032_v36 = vmul.f32 0.6931472, %v3272_v34  ;;  %2205 = vmax.xlane.f32.xlu0 %v4517_v12  ;;  %2112 = vst [vmem:[%s5458_s4 + $0x28] sm:$0xff] %v4534_v21  ;;  %v4555_v28 = vmin.f32 %v2081_v27, 1.0 }
 0x4ce   :  { %2182 = vst [vmem:[%s5459_s5 + $0x18] sm:$0xff] %v4537_v14  ;;  %v4547_v57 = vsel %vm2151_vm11, %v4517_v12, 0.0  ;;  %v2007_v58 = vadd.f32 %v3274_v1, %v3270_v49  ;;  %v1929_v0 = vmul.f32 1.442695, %v1898_v41  ;;  %v1993_v8 = vmul.f32 1.442695, %v1962_v19  ;;  %2491 = vmax.xlane.f32.xlu1 %v4537_v14 }
 0x4cf   :  { %2183 = vst [vmem:[%s5459_s5 + $0x20] sm:$0xff] %v4547_v57  ;;  %vm2136_vm12 = vcmp.gt.f32.partialorder %v4534_v21, 0.2  ;;  %v2053_v4 = vmul.f32 0.01, %v2032_v36  ;;  %2113 = vst [vmem:[%s5458_s4 + $0x30] sm:$0xff] %v4555_v28 }
 0x4d0   :  { %vm2152_vm13 = vmand %vm2130_vm1, %vm2136_vm12  ;;  %vm2137_vm14 = vcmp.gt.f32.partialorder %v4555_v28, 0.2  ;;  %v4572_v39 = vmin.f32 %v2082_v54, 1.0  ;;  %v4574_v25 = vmin.f32 %v2083_v51, 1.0  ;;  %v3276_v17 = vpop.eup %3275  ;;  %3285 = vlog2.f32 %v2007_v58 }
 0x4d1   :  { %v4577_v27 = vsel %vm2152_vm13, %v4534_v21, 0.0  ;;  %vm2153_vm15 = vmand %vm2130_vm1, %vm2137_vm14  ;;  %v4581_v13 = vmin.f32 %v2084_v18, 1.0  ;;  %v3278_v10 = vpop.eup %3277  ;;  %v2069_v37 = vadd.f32 %v2053_v4, %v4414_v32  ;;  %3287 = vpow2.f32 %v1929_v0  ;;  %2493 = vmax.xlane.f32.xlu0 %v4547_v57 }
 0x4d2   :  { %2184 = vst [vmem:[%s5459_s5 + $0x28] sm:$0xff] %v4577_v27  ;;  %v4590_v2 = vsel %vm2153_vm15, %v4555_v28, 0.0  ;;  %2114 = vst [vmem:[%s5458_s4 + $0x38] sm:$0xff] %v4572_v39  ;;  %vm2138_vm0 = vcmp.gt.f32.partialorder %v4572_v39, 0.2  ;;  %v3280_v32 = vpop.eup %3279  ;;  %v2008_v38 = vadd.f32 %v3278_v10, %v3276_v17  ;;  %3289 = vpow2.f32 %v1993_v8  ;;  %2207 = vmax.xlane.f32.xlu1 %v4534_v21 }
 0x4d3   :  { %2115 = vst [vmem:[%s5458_s4 + $0x40] sm:$0xff] %v4574_v25  ;;  %2185 = vst [vmem:[%s5459_s5 + $0x30] sm:$0xff] %v4590_v2  ;;  %vm2139_vm3 = vcmp.gt.f32.partialorder %v4574_v25, 0.2  ;;  %vm2140_vm4 = vcmp.gt.f32.partialorder %v4581_v13, 0.2 }
 0x4d4   :  { %vm2154_vm2 = vmand %vm2130_vm1, %vm2138_vm0  ;;  %2116 = vst [vmem:[%s5458_s4 + $0x48] sm:$0xff] %v4581_v13  ;;  %v2085_v31 = vmax.f32 %v2069_v37, 0.0  ;;  %v2034_v62 = vmul.f32 0.6931472, %v3280_v32  ;;  %3291 = vlog2.f32 %v2008_v38 }
 0x4d5   :  { %v4615_v42 = vsel %vm2154_vm2, %v4572_v39, 0.0  ;;  %vm2155_vm5 = vmand %vm2130_vm1, %vm2139_vm3  ;;  %v3282_v54 = vpop.eup %3281  ;;  %2209 = vmax.xlane.f32.xlu0 %v4555_v28 }
 0x4d6   :  { %2186 = vst [vmem:[%s5459_s5 + $0x38] sm:$0xff] %v4615_v42  ;;  %v4624_v26 = vsel %vm2155_vm5, %v4574_v25, 0.0  ;;  %vm2156_vm6 = vmand %vm2130_vm1, %vm2140_vm4  ;;  %v2054_v43 = vmul.f32 0.01, %v2034_v62  ;;  %v4633_v7 = vmin.f32 %v2085_v31, 1.0  ;;  %v3284_v22 = vpop.eup %3283  ;;  %2495 = vmax.xlane.f32.xlu1 %v4577_v27  ;;  %v4761_v31 = vand.u32 127, %v2126_v55 }
 0x4d7   :  { %2187 = vst [vmem:[%s5459_s5 + $0x40] sm:$0xff] %v4624_v26  ;;  %v4636_v5 = vsel %vm2156_vm6, %v4581_v13, 0.0  ;;  %v2009_v60 = vadd.f32 %v3284_v22, %v3282_v54 }
 0x4d8   :  { %2188 = vst [vmem:[%s5459_s5 + $0x48] sm:$0xff] %v4636_v5  ;;  %v2070_v9 = vadd.f32 %v2054_v43, %v4434_v6  ;;  %2117 = vst [vmem:[%s5458_s4 + $0x50] sm:$0xff] %v4633_v7  ;;  %vm2141_vm7 = vcmp.gt.f32.partialorder %v4633_v7, 0.2 }
 0x4d9   :  { %vm2157_vm8 = vmand %vm2130_vm1, %vm2141_vm7  ;;  %3293 = vlog2.f32 %v2009_v60  ;;  %2497 = vmax.xlane.f32.xlu0 %v4590_v2 }
 0x4da   :  { %v2086_v11 = vmax.f32 %v2070_v9, 0.0  ;;  %v4653_v61 = vsel %vm2157_vm8, %v4633_v7, 0.0  ;;  %v3286_v50 = vpop.eup %3285  ;;  %2211 = vmax.xlane.f32.xlu1 %v4572_v39 }
 0x4db   :  { %2189 = vst [vmem:[%s5459_s5 + $0x50] sm:$0xff] %v4653_v61  ;;  %v3288_v6 = vpop.eup %3287  ;;  %v2036_v35 = vmul.f32 0.6931472, %v3286_v50 }
 0x4dc   :  { %v4660_v16 = vmin.f32 %v2086_v11, 1.0  ;;  %v3290_v59 = vpop.eup %3289 }
 0x4dd   :  { %v2055_v52 = vmul.f32 0.01, %v2036_v35  ;;  %v2010_v51 = vadd.f32 %v3290_v59, %v3288_v6  ;;  %2213 = vmax.xlane.f32.xlu0 %v4574_v25 }
 0x4de   :  { %2118 = vst [vmem:[%s5458_s4 + $0x58] sm:$0xff] %v4660_v16  ;;  %vm2142_vm9 = vcmp.gt.f32.partialorder %v4660_v16, 0.2  ;;  %v3292_v3 = vpop.eup %3291  ;;  %2499 = vmax.xlane.f32.xlu1 %v4615_v42 }
 0x4df   :  { %vm2158_vm10 = vmand %vm2130_vm1, %vm2142_vm9  ;;  %v2071_v15 = vadd.f32 %v2055_v52, %v4450_v20  ;;  %v2038_v46 = vmul.f32 0.6931472, %v3292_v3  ;;  %3295 = vlog2.f32 %v2010_v51 }
 0x4e0   :  { %v4673_v29 = vsel %vm2158_vm10, %v4660_v16, 0.0 }
 0x4e1   :  { %2190 = vst [vmem:[%s5459_s5 + $0x58] sm:$0xff] %v4673_v29  ;;  %v2087_v47 = vmax.f32 %v2071_v15, 0.0  ;;  %v2056_v49 = vmul.f32 0.01, %v2038_v46  ;;  %2501 = vmax.xlane.f32.xlu0 %v4624_v26 }
 0x4e2   :  { %2215 = vmax.xlane.f32.xlu1 %v4581_v13 }
 0x4e3   :  { %v3294_v23 = vpop.eup %3293  ;;  %v2072_v34 = vadd.f32 %v2056_v49, %v4461_v40  ;;  %v4682_v20 = vmin.f32 %v2087_v47, 1.0 }
 0x4e4   :  { %v2040_v41 = vmul.f32 0.6931472, %v3294_v23 }
 0x4e5   :  { %v2088_v19 = vmax.f32 %v2072_v34, 0.0  ;;  %2217 = vmax.xlane.f32.xlu0 %v4633_v7  ;;  %2119 = vst [vmem:[%s5458_s4 + $0x60] sm:$0xff] %v4682_v20  ;;  %vm2143_vm11 = vcmp.gt.f32.partialorder %v4682_v20, 0.2 }
 0x4e6   :  { %v2057_v1 = vmul.f32 0.01, %v2040_v41  ;;  %2503 = vmax.xlane.f32.xlu1 %v4636_v5  ;;  %vm2159_vm12 = vmand %vm2130_vm1, %vm2143_vm11 }
 0x4e7   :  { %v4694_v40 = vsel %vm2159_vm12, %v4682_v20, 0.0  ;;  %v4696_v18 = vmin.f32 %v2088_v19, 1.0 }
 0x4e8   :  { %v2073_v36 = vadd.f32 %v2057_v1, %v4476_v33  ;;  %2191 = vst [vmem:[%s5459_s5 + $0x60] sm:$0xff] %v4694_v40 }
 0x4e9   :  { %v3296_v58 = vpop.eup %3295  ;;  %2505 = vmax.xlane.f32.xlu0 %v4653_v61  ;;  %2120 = vst [vmem:[%s5458_s4 + $0x68] sm:$0xff] %v4696_v18  ;;  %vm2144_vm13 = vcmp.gt.f32.partialorder %v4696_v18, 0.2 }
 0x4ea   :  { %v2089_v0 = vmax.f32 %v2073_v36, 0.0  ;;  %v2042_v8 = vmul.f32 0.6931472, %v3296_v58  ;;  %2219 = vmax.xlane.f32.xlu1 %v4660_v16  ;;  %vm2160_vm14 = vmand %vm2130_vm1, %vm2144_vm13 }
 0x4eb   :  { %v4713_v33 = vsel %vm2160_vm14, %v4696_v18, 0.0 }
 0x4ec   :  { %v2058_v4 = vmul.f32 0.01, %v2042_v8  ;;  %v4715_v17 = vmin.f32 %v2089_v0, 1.0  ;;  %2192 = vst [vmem:[%s5459_s5 + $0x68] sm:$0xff] %v4713_v33 }
 0x4ed   :  { %2221 = vmax.xlane.f32.xlu0 %v4682_v20 }
 0x4ee   :  { %v2074_v10 = vadd.f32 %v2058_v4, %v4501_v63  ;;  %2507 = vmax.xlane.f32.xlu1 %v4673_v29  ;;  %2121 = vst [vmem:[%s5458_s4 + $0x70] sm:$0xff] %v4715_v17  ;;  %vm2145_vm15 = vcmp.gt.f32.partialorder %v4715_v17, 0.2 }
 0x4ef   :  { %vm2161_vm0 = vmand %vm2130_vm1, %vm2145_vm15 }
 0x4f0   :  { %v2090_v37 = vmax.f32 %v2074_v10, 0.0  ;;  %v4732_v32 = vsel %vm2161_vm0, %v4715_v17, 0.0 }
 0x4f1   :  { %2509 = vmax.xlane.f32.xlu0 %v4694_v40  ;;  %2193 = vst [vmem:[%s5459_s5 + $0x70] sm:$0xff] %v4732_v32 }
 0x4f2   :  { %v4739_v63 = vmin.f32 %v2090_v37, 1.0  ;;  %2223 = vmax.xlane.f32.xlu1 %v4696_v18 }
 0x4f4   :  { %2122 = vst [vmem:[%s5458_s4 + $0x78] sm:$0xff] %v4739_v63  ;;  %vm2146_vm2 = vcmp.gt.f32.partialorder %v4739_v63, 0.2 }
 0x4f5   :  { %2225 = vmax.xlane.f32.xlu0 %v4715_v17  ;;  %vm2162_vm3 = vmand %vm2130_vm1, %vm2146_vm2 }
 0x4f6   :  { %2511 = vmax.xlane.f32.xlu1 %v4713_v33  ;;  %v4752_v38 = vsel %vm2162_vm3, %v4739_v63, 0.0 }
 0x4f7   :  { %2194 = vst [vmem:[%s5459_s5 + $0x78] sm:$0xff] %v4752_v38 }
 0x4f9   :  { %2513 = vmax.xlane.f32.xlu0 %v4732_v32 }
 0x4fa   :  { %2227 = vmax.xlane.f32.xlu1 %v4739_v63 }
 0x4fe   :  { %2515 = vmax.xlane.f32.xlu1 %v4752_v38 }
 0x501   :  { %v2198_v62 = vpop.xlane.xlu0 %2197 }
 0x502   :  { %vm2229_vm1 = vcmp.ge.f32.partialorder %v4311_v30, %v2198_v62 }
 0x503   :  { %v4766_v56 = vsel %vm2229_vm1, %v4761_v31, 128 }
 0x504   :  { %v2262_v54 = vshra.s32 %v4766_v56, 16 }
 0x505   :  { %v2200_v43 = vpop.xlane.xlu0 %2199 }
 0x506   :  { %vm2230_vm4 = vcmp.ge.f32.partialorder %v4319_v45, %v2200_v43  ;;  %v4770_v22 = vpop.xlane.xlu1 %2487  ;;  %v4772_v9 = vcvt.s32.f32 %v2262_v54 }
 0x507   :  { %5507 = vst [vmem:[#allocation5_spill] sm:$0xff] %v4770_v22  ;;  %v4775_v55 = vsel %vm2230_vm4, %v4761_v31, 128  ;;  %vm2518_vm5 = vcmp.ge.f32.partialorder %v4337_v24, %v4770_v22  ;;  %vm2774_vm6 = vcmp.gt.f32.partialorder %v4770_v22, 0.0  ;;  %v3300_v24 = vld [vmem:[%s5459_s5] sm:$0xff] }
 0x508   :  { %v2790_v30 = vsel %vm2774_vm6, %v4770_v22, %v2200_v43  ;;  %2265 = vmin.xlane.f32.xlu0 %v4772_v9  ;;  %v2276_v45 = vshra.s32 %v4775_v55, 16  ;;  %v4786_v60 = vsel %vm2518_vm5, %v4761_v31, 128 }
 0x509   :  { %2822 = vst [vmem:[%s5460_s6 + $0x8] sm:$0xff] %v2790_v30  ;;  %v4791_v11 = vpop.xlane.xlu0 %2485  ;;  %v2564_v6 = vshra.s32 %v4786_v60, 16 }
 0x50a   :  { %5508 = vst [vmem:[#allocation6_spill] sm:$0xff] %v4791_v11  ;;  %vm2517_vm7 = vcmp.ge.f32.partialorder %v3300_v24, %v4791_v11  ;;  %vm2773_vm8 = vcmp.gt.f32.partialorder %v4791_v11, 0.0  ;;  %v4798_v50 = vcvt.s32.f32 %v2276_v45 }
 0x50b   :  { %v2789_v35 = vsel %vm2773_vm8, %v4791_v11, %v2198_v62  ;;  %v4805_v59 = vsel %vm2517_vm7, %v4761_v31, 128  ;;  %v4814_v3 = vcvt.s32.f32 %v2564_v6 }
 0x50c   :  { %2821 = vst [vmem:[%s5460_s6] sm:$0xff] %v2789_v35  ;;  %2279 = vmin.xlane.f32.xlu1 %v4798_v50  ;;  %v2550_v52 = vshra.s32 %v4805_v59, 16 }
 0x50e   :  { %v4812_v51 = vcvt.s32.f32 %v2550_v52 }
 0x510   :  { %2553 = vmin.xlane.f32.xlu0 %v4812_v51  ;;  %2567 = vmin.xlane.f32.xlu1 %v4814_v3 }
 0x553   :  { %v2202_v15 = vpop.xlane.xlu1 %2201 }
 0x554   :  { %vm2231_vm9 = vcmp.ge.f32.partialorder %v4482_v44, %v2202_v15 }
 0x555   :  { %v4820_v46 = vsel %vm2231_vm9, %v4761_v31, 128 }
 0x556   :  { %v4822_v47 = vpop.xlane.xlu0 %2489  ;;  %v2290_v49 = vshra.s32 %v4820_v46, 16 }
 0x557   :  { %5509 = vst [vmem:[#allocation8_spill] sm:$0xff] %v4822_v47  ;;  %vm2519_vm10 = vcmp.ge.f32.partialorder %v4504_v53, %v4822_v47  ;;  %vm2775_vm11 = vcmp.gt.f32.partialorder %v4822_v47, 0.0  ;;  %v2204_v23 = vpop.xlane.xlu1 %2203 }
 0x558   :  { %v2791_v34 = vsel %vm2775_vm11, %v4822_v47, %v2202_v15  ;;  %vm2232_vm12 = vcmp.ge.f32.partialorder %v4495_v48, %v2204_v23  ;;  %v4832_v44 = vcvt.s32.f32 %v2290_v49  ;;  %v4835_v41 = vsel %vm2519_vm10, %v4761_v31, 128 }
 0x559   :  { %2823 = vst [vmem:[%s5460_s6 + $0x10] sm:$0xff] %v2791_v34  ;;  %v4841_v53 = vsel %vm2232_vm12, %v4761_v31, 128  ;;  %v2578_v19 = vshra.s32 %v4835_v41, 16 }
 0x55a   :  { %v2206_v1 = vpop.xlane.xlu0 %2205  ;;  %2293 = vmin.xlane.f32.xlu0 %v4832_v44  ;;  %v2304_v36 = vshra.s32 %v4841_v53, 16 }
 0x55b   :  { %vm2233_vm13 = vcmp.ge.f32.partialorder %v4517_v12, %v2206_v1  ;;  %v4847_v48 = vpop.xlane.xlu1 %2491  ;;  %v4849_v58 = vcvt.s32.f32 %v2578_v19 }
 0x55c   :  { %5510 = vst [vmem:[#allocation7_spill] sm:$0xff] %v4847_v48  ;;  %v4852_v0 = vsel %vm2233_vm13, %v4761_v31, 128  ;;  %vm2520_vm14 = vcmp.ge.f32.partialorder %v4537_v14, %v4847_v48  ;;  %vm2776_vm15 = vcmp.gt.f32.partialorder %v4847_v48, 0.0  ;;  %v4857_v8 = vcvt.s32.f32 %v2304_v36 }
 0x55d   :  { %v2792_v4 = vsel %vm2776_vm15, %v4847_v48, %v2204_v23  ;;  %v4863_v12 = vsel %vm2520_vm14, %v4761_v31, 128  ;;  %v2318_v10 = vshra.s32 %v4852_v0, 16 }
 0x55e   :  { %2824 = vst [vmem:[%s5460_s6 + $0x18] sm:$0xff] %v2792_v4  ;;  %v4869_v37 = vpop.xlane.xlu0 %2493  ;;  %2307 = vmin.xlane.f32.xlu1 %v4857_v8  ;;  %2581 = vmin.xlane.f32.xlu0 %v4849_v58  ;;  %v2592_v14 = vshra.s32 %v4863_v12, 16 }
 0x55f   :  { %5511 = vst [vmem:[#allocation9_spill] sm:$0xff] %v4869_v37  ;;  %vm2521_vm0 = vcmp.ge.f32.partialorder %v4547_v57, %v4869_v37  ;;  %vm2777_vm2 = vcmp.gt.f32.partialorder %v4869_v37, 0.0  ;;  %v2208_v62 = vpop.xlane.xlu1 %2207  ;;  %v4877_v54 = vcvt.s32.f32 %v2318_v10 }
 0x560   :  { %v2793_v43 = vsel %vm2777_vm2, %v4869_v37, %v2206_v1  ;;  %vm2234_vm3 = vcmp.ge.f32.partialorder %v4534_v21, %v2208_v62  ;;  %v4883_v30 = vcvt.s32.f32 %v2592_v14  ;;  %v4886_v45 = vsel %vm2521_vm0, %v4761_v31, 128 }
 0x561   :  { %2825 = vst [vmem:[%s5460_s6 + $0x20] sm:$0xff] %v2793_v43  ;;  %v4892_v57 = vsel %vm2234_vm3, %v4761_v31, 128  ;;  %v2606_v24 = vshra.s32 %v4886_v45, 16 }
 0x562   :  { %v2210_v6 = vpop.xlane.xlu0 %2209  ;;  %2595 = vmin.xlane.f32.xlu1 %v4883_v30  ;;  %2321 = vmin.xlane.f32.xlu0 %v4877_v54  ;;  %v2332_v21 = vshra.s32 %v4892_v57, 16 }
 0x563   :  { %vm2235_vm1 = vcmp.ge.f32.partialorder %v4555_v28, %v2210_v6  ;;  %v4899_v35 = vpop.xlane.xlu1 %2495  ;;  %v4901_v52 = vcvt.s32.f32 %v2606_v24 }
 0x564   :  { %5512 = vst [vmem:[#allocation10_spill] sm:$0xff] %v4899_v35  ;;  %v4904_v15 = vsel %vm2235_vm1, %v4761_v31, 128  ;;  %vm2522_vm4 = vcmp.ge.f32.partialorder %v4577_v27, %v4899_v35  ;;  %vm2778_vm5 = vcmp.gt.f32.partialorder %v4899_v35, 0.0  ;;  %v4909_v49 = vcvt.s32.f32 %v2332_v21 }
 0x565   :  { %v2794_v23 = vsel %vm2778_vm5, %v4899_v35, %v2208_v62  ;;  %v4915_v28 = vsel %vm2522_vm4, %v4761_v31, 128  ;;  %v2346_v34 = vshra.s32 %v4904_v15, 16 }
 0x566   :  { %2826 = vst [vmem:[%s5460_s6 + $0x28] sm:$0xff] %v2794_v23  ;;  %v4921_v19 = vpop.xlane.xlu0 %2497  ;;  %2335 = vmin.xlane.f32.xlu1 %v4909_v49  ;;  %2609 = vmin.xlane.f32.xlu0 %v4901_v52  ;;  %v2620_v27 = vshra.s32 %v4915_v28, 16 }
 0x567   :  { %5513 = vst [vmem:[#allocation11_spill] sm:$0xff] %v4921_v19  ;;  %vm2523_vm7 = vcmp.ge.f32.partialorder %v4590_v2, %v4921_v19  ;;  %vm2779_vm9 = vcmp.gt.f32.partialorder %v4921_v19, 0.0  ;;  %v2212_v1 = vpop.xlane.xlu1 %2211  ;;  %v4929_v36 = vcvt.s32.f32 %v2346_v34 }
 0x568   :  { %v2795_v4 = vsel %vm2779_vm9, %v4921_v19, %v2210_v6  ;;  %vm2236_vm10 = vcmp.ge.f32.partialorder %v4572_v39, %v2212_v1  ;;  %v4935_v10 = vcvt.s32.f32 %v2620_v27  ;;  %v4938_v14 = vsel %vm2523_vm7, %v4761_v31, 128 }
 0x569   :  { %2827 = vst [vmem:[%s5460_s6 + $0x30] sm:$0xff] %v2795_v4  ;;  %v4944_v2 = vsel %vm2236_vm10, %v4761_v31, 128  ;;  %v2634_v62 = vshra.s32 %v4938_v14, 16 }
 0x56a   :  { %v2214_v43 = vpop.xlane.xlu0 %2213  ;;  %2623 = vmin.xlane.f32.xlu1 %v4935_v10  ;;  %2349 = vmin.xlane.f32.xlu0 %v4929_v36  ;;  %v2360_v39 = vshra.s32 %v4944_v2, 16 }
 0x56b   :  { %vm2237_vm12 = vcmp.ge.f32.partialorder %v4574_v25, %v2214_v43  ;;  %v4951_v24 = vpop.xlane.xlu1 %2499  ;;  %v4953_v6 = vcvt.s32.f32 %v2634_v62 }
 0x56c   :  { %5514 = vst [vmem:[#allocation12_spill] sm:$0xff] %v4951_v24  ;;  %v4956_v21 = vsel %vm2237_vm12, %v4761_v31, 128  ;;  %vm2524_vm13 = vcmp.ge.f32.partialorder %v4615_v42, %v4951_v24  ;;  %vm2780_vm14 = vcmp.gt.f32.partialorder %v4951_v24, 0.0  ;;  %v4961_v23 = vcvt.s32.f32 %v2360_v39 }
 0x56d   :  { %v2796_v34 = vsel %vm2780_vm14, %v4951_v24, %v2212_v1  ;;  %v4967_v25 = vsel %vm2524_vm13, %v4761_v31, 128  ;;  %v2374_v27 = vshra.s32 %v4956_v21, 16 }
 0x56e   :  { %2828 = vst [vmem:[%s5460_s6 + $0x38] sm:$0xff] %v2796_v34  ;;  %v4973_v4 = vpop.xlane.xlu0 %2501  ;;  %2363 = vmin.xlane.f32.xlu1 %v4961_v23  ;;  %2637 = vmin.xlane.f32.xlu0 %v4953_v6  ;;  %v2648_v42 = vshra.s32 %v4967_v25, 16 }
 0x56f   :  { %5515 = vst [vmem:[#allocation13_spill] sm:$0xff] %v4973_v4  ;;  %vm2525_vm0 = vcmp.ge.f32.partialorder %v4624_v26, %v4973_v4  ;;  %vm2781_vm3 = vcmp.gt.f32.partialorder %v4973_v4, 0.0  ;;  %v2216_v1 = vpop.xlane.xlu1 %2215  ;;  %v4981_v62 = vcvt.s32.f32 %v2374_v27 }
 0x570   :  { %v2797_v39 = vsel %vm2781_vm3, %v4973_v4, %v2214_v43  ;;  %vm2238_vm1 = vcmp.ge.f32.partialorder %v4581_v13, %v2216_v1  ;;  %v4987_v34 = vcvt.s32.f32 %v2648_v42  ;;  %v4990_v24 = vsel %vm2525_vm0, %v4761_v31, 128 }
 0x571   :  { %2829 = vst [vmem:[%s5460_s6 + $0x40] sm:$0xff] %v2797_v39  ;;  %v4996_v26 = vsel %vm2238_vm1, %v4761_v31, 128  ;;  %v2662_v27 = vshra.s32 %v4990_v24, 16 }
 0x572   :  { %v2218_v19 = vpop.xlane.xlu0 %2217  ;;  %2651 = vmin.xlane.f32.xlu1 %v4987_v34  ;;  %2377 = vmin.xlane.f32.xlu0 %v4981_v62  ;;  %v2388_v13 = vshra.s32 %v4996_v26, 16 }
 0x573   :  { %vm2239_vm4 = vcmp.ge.f32.partialorder %v4633_v7, %v2218_v19  ;;  %v5003_v43 = vpop.xlane.xlu1 %2503  ;;  %v5005_v42 = vcvt.s32.f32 %v2662_v27 }
 0x574   :  { %5516 = vst [vmem:[#allocation14_spill] sm:$0xff] %v5003_v43  ;;  %v5008_v39 = vsel %vm2239_vm4, %v4761_v31, 128  ;;  %vm2526_vm7 = vcmp.ge.f32.partialorder %v4636_v5, %v5003_v43  ;;  %vm2782_vm10 = vcmp.gt.f32.partialorder %v5003_v43, 0.0  ;;  %v5013_v4 = vcvt.s32.f32 %v2388_v13 }
 0x575   :  { %v2798_v35 = vsel %vm2782_vm10, %v5003_v43, %v2216_v1  ;;  %v5019_v7 = vsel %vm2526_vm7, %v4761_v31, 128  ;;  %v2402_v27 = vshra.s32 %v5008_v39, 16 }
 0x576   :  { %2830 = vst [vmem:[%s5460_s6 + $0x48] sm:$0xff] %v2798_v35  ;;  %v5025_v37 = vpop.xlane.xlu0 %2505  ;;  %2391 = vmin.xlane.f32.xlu1 %v5013_v4  ;;  %2665 = vmin.xlane.f32.xlu0 %v5005_v42  ;;  %v2676_v5 = vshra.s32 %v5019_v7, 16 }
 0x577   :  { %5517 = vst [vmem:[#allocation15_spill] sm:$0xff] %v5025_v37  ;;  %vm2527_vm12 = vcmp.ge.f32.partialorder %v4653_v61, %v5025_v37  ;;  %vm2783_vm13 = vcmp.gt.f32.partialorder %v5025_v37, 0.0  ;;  %v2220_v1 = vpop.xlane.xlu1 %2219  ;;  %v5033_v13 = vcvt.s32.f32 %v2402_v27 }
 0x578   :  { %v2799_v35 = vsel %vm2783_vm13, %v5025_v37, %v2218_v19  ;;  %vm2240_vm0 = vcmp.ge.f32.partialorder %v4660_v16, %v2220_v1  ;;  %v5039_v43 = vcvt.s32.f32 %v2676_v5  ;;  %v5042_v48 = vsel %vm2527_vm12, %v4761_v31, 128 }
 0x579   :  { %2831 = vst [vmem:[%s5460_s6 + $0x50] sm:$0xff] %v2799_v35  ;;  %v5048_v61 = vsel %vm2240_vm0, %v4761_v31, 128  ;;  %v2690_v27 = vshra.s32 %v5042_v48, 16 }
 0x57a   :  { %v2222_v47 = vpop.xlane.xlu0 %2221  ;;  %2679 = vmin.xlane.f32.xlu1 %v5039_v43  ;;  %2405 = vmin.xlane.f32.xlu0 %v5033_v13  ;;  %v2416_v16 = vshra.s32 %v5048_v61, 16 }
 0x57b   :  { %vm2241_vm1 = vcmp.ge.f32.partialorder %v4682_v20, %v2222_v47  ;;  %v5055_v19 = vpop.xlane.xlu1 %2507  ;;  %v5057_v5 = vcvt.s32.f32 %v2690_v27 }
 0x57c   :  { %5518 = vst [vmem:[#allocation16_spill] sm:$0xff] %v5055_v19  ;;  %v5060_v35 = vsel %vm2241_vm1, %v4761_v31, 128  ;;  %vm2528_vm4 = vcmp.ge.f32.partialorder %v4673_v29, %v5055_v19  ;;  %vm2784_vm7 = vcmp.gt.f32.partialorder %v5055_v19, 0.0  ;;  %v5065_v37 = vcvt.s32.f32 %v2416_v16 }
 0x57d   :  { %5519 = vst [vmem:[#allocation17_spill] sm:$0xff] %v5057_v5  ;;  %v2800_v22 = vsel %vm2784_vm7, %v5055_v19, %v2220_v1  ;;  %v5071_v20 = vsel %vm2528_vm4, %v4761_v31, 128  ;;  %v2430_v27 = vshra.s32 %v5060_v35, 16 }
 0x57e   :  { %5520 = vst [vmem:[#allocation18_spill] sm:$0xff] %v5065_v37  ;;  %2832 = vst [vmem:[%s5460_s6 + $0x58] sm:$0xff] %v2800_v22  ;;  %v5077_v11 = vpop.xlane.xlu0 %2509  ;;  %2419 = vmin.xlane.f32.xlu1 %v5065_v37  ;;  %2693 = vmin.xlane.f32.xlu0 %v5057_v5  ;;  %v2704_v29 = vshra.s32 %v5071_v20, 16 }
 0x57f   :  { %5521 = vst [vmem:[#allocation19_spill] sm:$0xff] %v5077_v11  ;;  %vm2529_vm12 = vcmp.ge.f32.partialorder %v4694_v40, %v5077_v11  ;;  %vm5497_vm0 = vcmp.gt.f32.partialorder %v5077_v11, 0.0  ;;  %v2224_v1 = vpop.xlane.xlu1 %2223  ;;  %v5085_v16 = vcvt.s32.f32 %v2430_v27 }
 0x580   :  { %v2801_v22 = vsel %vm5497_vm0, %v5077_v11, %v2222_v47  ;;  %vm2242_vm1 = vcmp.ge.f32.partialorder %v4696_v18, %v2224_v1  ;;  %v5091_v19 = vcvt.s32.f32 %v2704_v29  ;;  %v5094_v5 = vsel %vm2529_vm12, %v4761_v31, 128 }
 0x581   :  { %5522 = vst [vmem:[#allocation20_spill] sm:$0xff] %v5085_v16  ;;  %2833 = vst [vmem:[%s5460_s6 + $0x60] sm:$0xff] %v2801_v22  ;;  %v5100_v40 = vsel %vm2242_vm1, %v4761_v31, 128  ;;  %v2718_v27 = vshra.s32 %v5094_v5, 16 }
 0x582   :  { %5523 = vst [vmem:[#allocation21_spill] sm:$0xff] %v5091_v19  ;;  %v2226_v37 = vpop.xlane.xlu0 %2225  ;;  %2707 = vmin.xlane.f32.xlu1 %v5091_v19  ;;  %2433 = vmin.xlane.f32.xlu0 %v5085_v16  ;;  %v2444_v18 = vshra.s32 %v5100_v40, 16 }
 0x583   :  { %vm2243_vm4 = vcmp.ge.f32.partialorder %v4715_v17, %v2226_v37  ;;  %v5107_v47 = vpop.xlane.xlu1 %2511  ;;  %v5109_v29 = vcvt.s32.f32 %v2718_v27 }
 0x584   :  { %5524 = vst [vmem:[#allocation22_spill] sm:$0xff] %v5107_v47  ;;  %v5112_v22 = vsel %vm2243_vm4, %v4761_v31, 128  ;;  %vm2530_vm12 = vcmp.ge.f32.partialorder %v4713_v33, %v5107_v47  ;;  %vm5485_vm1 = vcmp.gt.f32.partialorder %v5107_v47, 0.0  ;;  %v5117_v11 = vcvt.s32.f32 %v2444_v18 }
 0x585   :  { %5525 = vst [vmem:[#allocation23_spill] sm:$0xff] %v5109_v29  ;;  %v2802_v16 = vsel %vm5485_vm1, %v5107_v47, %v2224_v1  ;;  %v5123_v17 = vsel %vm2530_vm12, %v4761_v31, 128  ;;  %v2458_v27 = vshra.s32 %v5112_v22, 16 }
 0x586   :  { %2834 = vst [vmem:[%s5460_s6 + $0x68] sm:$0xff] %v2802_v16  ;;  %v5129_v19 = vpop.xlane.xlu0 %2513  ;;  %2447 = vmin.xlane.f32.xlu1 %v5117_v11  ;;  %2721 = vmin.xlane.f32.xlu0 %v5109_v29  ;;  %v2732_v33 = vshra.s32 %v5123_v17, 16 }
 0x587   :  { %5526 = vst [vmem:[#allocation24_spill] sm:$0xff] %v5129_v19  ;;  %vm2531_vm4 = vcmp.ge.f32.partialorder %v4732_v32, %v5129_v19  ;;  %vm5488_vm12 = vcmp.gt.f32.partialorder %v5129_v19, 0.0  ;;  %v2228_v1 = vpop.xlane.xlu1 %2227  ;;  %v5137_v18 = vcvt.s32.f32 %v2458_v27 }
 0x588   :  { %v2803_v16 = vsel %vm5488_vm12, %v5129_v19, %v2226_v37  ;;  %vm2244_vm1 = vcmp.ge.f32.partialorder %v4739_v63, %v2228_v1  ;;  %v5143_v47 = vcvt.s32.f32 %v2732_v33  ;;  %v5146_v29 = vsel %vm2531_vm4, %v4761_v31, 128 }
 0x589   :  { %5527 = vst [vmem:[#allocation25_spill] sm:$0xff] %v5137_v18  ;;  %2835 = vst [vmem:[%s5460_s6 + $0x70] sm:$0xff] %v2803_v16  ;;  %v5152_v32 = vsel %vm2244_vm1, %v4761_v31, 128  ;;  %v2746_v27 = vshra.s32 %v5146_v29, 16 }
 0x58a   :  { %5528 = vst [vmem:[#allocation26_spill] sm:$0xff] %v5143_v47  ;;  %2735 = vmin.xlane.f32.xlu1 %v5143_v47  ;;  %2461 = vmin.xlane.f32.xlu0 %v5137_v18  ;;  %v2472_v63 = vshra.s32 %v5152_v32, 16  ;;  %v2261_v18 = vand.u32 65535, %v4766_v56 }
 0x58b   :  { %v5158_v37 = vpop.xlane.xlu1 %2515  ;;  %v5165_v16 = vcvt.s32.f32 %v2746_v27 }
 0x58c   :  { %5529 = vst [vmem:[#allocation27_spill] sm:$0xff] %v5158_v37  ;;  %vm2532_vm4 = vcmp.ge.f32.partialorder %v4752_v38, %v5158_v37  ;;  %vm5496_vm12 = vcmp.gt.f32.partialorder %v5158_v37, 0.0  ;;  %v5163_v33 = vcvt.s32.f32 %v2472_v63 }
 0x58d   :  { %5531 = vst [vmem:[#allocation29_spill] sm:$0xff] %v5165_v16  ;;  %v2804_v19 = vsel %vm5496_vm12, %v5158_v37, %v2228_v1  ;;  %v5171_v47 = vsel %vm2532_vm4, %v4761_v31, 128  ;;  %v2263_v1 = vcvt.s32.f32 %v2261_v18  ;;  %v2275_v31 = vand.u32 65535, %v4775_v55 }
 0x58e   :  { %5530 = vst [vmem:[#allocation28_spill] sm:$0xff] %v5163_v33  ;;  %2836 = vst [vmem:[%s5460_s6 + $0x78] sm:$0xff] %v2804_v19  ;;  %2475 = vmin.xlane.f32.xlu1 %v5163_v33  ;;  %2749 = vmin.xlane.f32.xlu0 %v5165_v16  ;;  %v2760_v38 = vshra.s32 %v5171_v47, 16  ;;  %v2549_v16 = vand.u32 65535, %v4805_v59 }
 0x58f   :  { %v2277_v37 = vcvt.s32.f32 %v2275_v31  ;;  %v2303_v31 = vand.u32 65535, %v4841_v53 }
 0x590   :  { %v5180_v27 = vcvt.s32.f32 %v2760_v38  ;;  %v2563_v38 = vand.u32 65535, %v4786_v60  ;;  %v2551_v33 = vcvt.s32.f32 %v2549_v16  ;;  %v2289_v60 = vand.u32 65535, %v4820_v46 }
 0x591   :  { %v2577_v16 = vand.u32 65535, %v4835_v41  ;;  %v2591_v46 = vand.u32 65535, %v4863_v12  ;;  %v2331_v12 = vand.u32 65535, %v4892_v57  ;;  %v2619_v57 = vand.u32 65535, %v4915_v28 }
 0x592   :  { %5532 = vst [vmem:[#allocation30_spill] sm:$0xff] %v5180_v27  ;;  %2763 = vmin.xlane.f32.xlu1 %v5180_v27  ;;  %v2359_v28 = vand.u32 65535, %v4944_v2  ;;  %v2647_v2 = vand.u32 65535, %v4967_v25  ;;  %v2387_v25 = vand.u32 65535, %v4996_v26  ;;  %v2675_v26 = vand.u32 65535, %v5019_v7 }
 0x593   :  { %v2415_v7 = vand.u32 65535, %v5048_v61  ;;  %v2703_v61 = vand.u32 65535, %v5071_v20  ;;  %v2443_v20 = vand.u32 65535, %v5100_v40  ;;  %v2731_v40 = vand.u32 65535, %v5123_v17 }
 0x594   :  { %v2471_v17 = vand.u32 65535, %v5152_v32  ;;  %v2759_v32 = vand.u32 65535, %v5171_v47 }
 0x595   :  { %v5182_v63 = vpop.xlane.xlu0 %2265 }
 0x596   :  { %vm2267_vm1 = vcmp.eq.f32.partialorder %v4772_v9, %v5182_v63  ;;  %v2565_v9 = vcvt.s32.f32 %v2563_v38  ;;  %v2579_v38 = vcvt.s32.f32 %v2577_v16  ;;  %v2272_v47 = vcvt.f32.s32 %v5182_v63 }
 0x597   :  { %v2268_v56 = vsel %vm2267_vm1, %v2263_v1, inf }
 0x598   :  { %2269 = vmin.xlane.f32.xlu0 %v2268_v56 }
 0x599   :  { %v5188_v19 = vpop.xlane.xlu1 %2279 }
 0x59a   :  { %vm2281_vm4 = vcmp.eq.f32.partialorder %v4798_v50, %v5188_v19 }
 0x59b   :  { %v2282_v18 = vsel %vm2281_vm4, %v2277_v37, inf  ;;  %v2291_v37 = vcvt.s32.f32 %v2289_v60 }
 0x59c   :  { %2283 = vmin.xlane.f32.xlu1 %v2282_v18  ;;  %v2317_v18 = vand.u32 65535, %v4852_v0  ;;  %v2605_v0 = vand.u32 65535, %v4886_v45  ;;  %v2345_v45 = vand.u32 65535, %v4904_v15  ;;  %v2633_v15 = vand.u32 65535, %v4938_v14 }
 0x59d   :  { %v5194_v55 = vpop.xlane.xlu0 %2553  ;;  %v5196_v27 = vpop.xlane.xlu1 %2567  ;;  %v2373_v14 = vand.u32 65535, %v4956_v21  ;;  %v2661_v21 = vand.u32 65535, %v4990_v24  ;;  %v2401_v24 = vand.u32 65535, %v5008_v39  ;;  %v2689_v39 = vand.u32 65535, %v5042_v48 }
 0x59e   :  { %vm2555_vm1 = vcmp.eq.f32.partialorder %v4812_v51, %v5194_v55  ;;  %vm2569_vm12 = vcmp.eq.f32.partialorder %v4814_v3, %v5196_v27  ;;  %v2607_v16 = vcvt.s32.f32 %v2605_v0  ;;  %v2649_v0 = vcvt.s32.f32 %v2647_v2 }
 0x59f   :  { %v2556_v59 = vsel %vm2555_vm1, %v2551_v33, inf  ;;  %v2570_v1 = vsel %vm2569_vm12, %v2565_v9, inf  ;;  %v2305_v33 = vcvt.s32.f32 %v2303_v31  ;;  %v2333_v31 = vcvt.s32.f32 %v2331_v12 }
 0x5a0   :  { %2557 = vmin.xlane.f32.xlu0 %v2556_v59  ;;  %2571 = vmin.xlane.f32.xlu1 %v2570_v1  ;;  %v2593_v59 = vcvt.s32.f32 %v2591_v46  ;;  %v2319_v1 = vcvt.s32.f32 %v2317_v18  ;;  %v2347_v46 = vcvt.s32.f32 %v2345_v45  ;;  %v2429_v48 = vand.u32 65535, %v5060_v35 }
 0x5a1   :  { %v2717_v35 = vand.u32 65535, %v5094_v5  ;;  %v2457_v5 = vand.u32 65535, %v5112_v22  ;;  %v2745_v22 = vand.u32 65535, %v5146_v29  ;;  %v5540_v29 = vld [vmem:[#allocation28_spill] sm:$0xff] }
 0x5e7   :  { %v5203_v50 = vpop.xlane.xlu0 %2293 }
 0x5e8   :  { %vm2295_vm4 = vcmp.eq.f32.partialorder %v4832_v44, %v5203_v50 }
 0x5e9   :  { %v2296_v51 = vsel %vm2295_vm4, %v2291_v37, inf }
 0x5ea   :  { %2297 = vmin.xlane.f32.xlu0 %v2296_v51 }
 0x5eb   :  { %v5209_v56 = vpop.xlane.xlu1 %2307  ;;  %v5211_v3 = vpop.xlane.xlu0 %2581 }
 0x5ec   :  { %vm2309_vm12 = vcmp.eq.f32.partialorder %v4857_v8, %v5209_v56  ;;  %vm2583_vm1 = vcmp.eq.f32.partialorder %v4849_v58, %v5211_v3 }
 0x5ed   :  { %v2310_v41 = vsel %vm2309_vm12, %v2305_v33, inf  ;;  %v2584_v44 = vsel %vm2583_vm1, %v2579_v38, inf  ;;  %v2621_v38 = vcvt.s32.f32 %v2619_v57  ;;  %v2663_v57 = vcvt.s32.f32 %v2661_v21 }
 0x5ee   :  { %2311 = vmin.xlane.f32.xlu1 %v2310_v41  ;;  %2585 = vmin.xlane.f32.xlu0 %v2584_v44  ;;  %v2361_v44 = vcvt.s32.f32 %v2359_v28 }
 0x5ef   :  { %v5219_v53 = vpop.xlane.xlu1 %2595  ;;  %v5221_v9 = vpop.xlane.xlu0 %2321 }
 0x5f0   :  { %vm2597_vm4 = vcmp.eq.f32.partialorder %v4883_v30, %v5219_v53  ;;  %vm2323_vm0 = vcmp.eq.f32.partialorder %v4877_v54, %v5221_v9 }
 0x5f1   :  { %v2598_v58 = vsel %vm2597_vm4, %v2593_v59, inf  ;;  %v2324_v8 = vsel %vm2323_vm0, %v2319_v1, inf  ;;  %v2635_v59 = vcvt.s32.f32 %v2633_v15  ;;  %v2417_v15 = vcvt.s32.f32 %v2415_v7  ;;  %v5538_v7 = vld [vmem:[#allocation26_spill] sm:$0xff] }
 0x5f2   :  { %2599 = vmin.xlane.f32.xlu1 %v2598_v58  ;;  %2325 = vmin.xlane.f32.xlu0 %v2324_v8  ;;  %v2375_v58 = vcvt.s32.f32 %v2373_v14  ;;  %v2705_v14 = vcvt.s32.f32 %v2703_v61  ;;  %v2747_v61 = vcvt.s32.f32 %v2745_v22 }
 0x5f3   :  { %v5229_v60 = vpop.xlane.xlu1 %2335  ;;  %v5231_v37 = vpop.xlane.xlu0 %2609 }
 0x5f4   :  { %vm2337_vm12 = vcmp.eq.f32.partialorder %v4909_v49, %v5229_v60  ;;  %vm2611_vm1 = vcmp.eq.f32.partialorder %v4901_v52, %v5231_v37 }
 0x5f5   :  { %v2338_v54 = vsel %vm2337_vm12, %v2333_v31, inf  ;;  %v2612_v30 = vsel %vm2611_vm1, %v2607_v16, inf  ;;  %v2389_v16 = vcvt.s32.f32 %v2387_v25 }
 0x5f6   :  { %2339 = vmin.xlane.f32.xlu1 %v2338_v54  ;;  %2613 = vmin.xlane.f32.xlu0 %v2612_v30  ;;  %v2677_v30 = vcvt.s32.f32 %v2675_v26 }
 0x5f7   :  { %v5239_v51 = vpop.xlane.xlu1 %2623  ;;  %v5241_v33 = vpop.xlane.xlu0 %2349 }
 0x5f8   :  { %vm2625_vm0 = vcmp.eq.f32.partialorder %v4935_v10, %v5239_v51  ;;  %vm2351_vm4 = vcmp.eq.f32.partialorder %v4929_v36, %v5241_v33 }
 0x5f9   :  { %v2626_v52 = vsel %vm2625_vm0, %v2621_v38, inf  ;;  %v2352_v49 = vsel %vm2351_vm4, %v2347_v46, inf  ;;  %v2403_v38 = vcvt.s32.f32 %v2401_v24 }
 0x5fa   :  { %2627 = vmin.xlane.f32.xlu1 %v2626_v52  ;;  %2353 = vmin.xlane.f32.xlu0 %v2352_v49  ;;  %v2691_v52 = vcvt.s32.f32 %v2689_v39  ;;  %v5533_v49 = vld [vmem:[#allocation18_spill] sm:$0xff] }
 0x5fb   :  { %v5249_v18 = vpop.xlane.xlu1 %2363  ;;  %v5251_v41 = vpop.xlane.xlu0 %2637 }
 0x5fc   :  { %vm2365_vm12 = vcmp.eq.f32.partialorder %v4961_v23, %v5249_v18  ;;  %vm2639_vm1 = vcmp.eq.f32.partialorder %v4953_v6, %v5251_v41 }
 0x5fd   :  { %v2366_v36 = vsel %vm2365_vm12, %v2361_v44, inf  ;;  %v2640_v10 = vsel %vm2639_vm1, %v2635_v59, inf }
 0x5fe   :  { %2367 = vmin.xlane.f32.xlu1 %v2366_v36  ;;  %2641 = vmin.xlane.f32.xlu0 %v2640_v10  ;;  %v2431_v36 = vcvt.s32.f32 %v2429_v48  ;;  %v5535_v10 = vld [vmem:[#allocation21_spill] sm:$0xff] }
 0x5ff   :  { %v5259_v1 = vpop.xlane.xlu1 %2651  ;;  %v5261_v12 = vpop.xlane.xlu0 %2377  ;;  %v5541_v48 = vld [vmem:[#allocation29_spill] sm:$0xff] }
 0x600   :  { %vm2653_vm0 = vcmp.eq.f32.partialorder %v4987_v34, %v5259_v1  ;;  %vm2379_vm4 = vcmp.eq.f32.partialorder %v4981_v62, %v5261_v12 }
 0x601   :  { %v2654_v6 = vsel %vm2653_vm0, %v2649_v0, inf  ;;  %v2380_v23 = vsel %vm2379_vm4, %v2375_v58, inf  ;;  %v5536_v0 = vld [vmem:[#allocation20_spill] sm:$0xff] }
 0x602   :  { %2655 = vmin.xlane.f32.xlu1 %v2654_v6  ;;  %2381 = vmin.xlane.f32.xlu0 %v2380_v23  ;;  %v2445_v23 = vcvt.s32.f32 %v2443_v20  ;;  %v2286_v20 = vcvt.f32.s32 %v5188_v19 }
 0x603   :  { %v5269_v8 = vpop.xlane.xlu1 %2391  ;;  %v5271_v31 = vpop.xlane.xlu0 %2665 }
 0x604   :  { %vm2393_vm12 = vcmp.eq.f32.partialorder %v5013_v4, %v5269_v8  ;;  %vm2667_vm1 = vcmp.eq.f32.partialorder %v5005_v42, %v5271_v31 }
 0x605   :  { %v2394_v62 = vsel %vm2393_vm12, %v2389_v16, inf  ;;  %v2668_v34 = vsel %vm2667_vm1, %v2663_v57, inf  ;;  %v2719_v16 = vcvt.s32.f32 %v2717_v35  ;;  %v5537_v57 = vld [vmem:[#allocation23_spill] sm:$0xff] }
 0x606   :  { %2395 = vmin.xlane.f32.xlu1 %v2394_v62  ;;  %2669 = vmin.xlane.f32.xlu0 %v2668_v34 }
 0x607   :  { %v5279_v45 = vpop.xlane.xlu1 %2679  ;;  %v5281_v54 = vpop.xlane.xlu0 %2405 }
 0x608   :  { %vm2681_vm0 = vcmp.eq.f32.partialorder %v5039_v43, %v5279_v45  ;;  %vm2407_vm4 = vcmp.eq.f32.partialorder %v5033_v13, %v5281_v54  ;;  %v5534_v43 = vld [vmem:[#allocation17_spill] sm:$0xff] }
 0x609   :  { %v2682_v4 = vsel %vm2681_vm0, %v2677_v30, inf  ;;  %v2408_v42 = vsel %vm2407_vm4, %v2403_v38, inf  ;;  %v2733_v30 = vcvt.s32.f32 %v2731_v40  ;;  %v2459_v38 = vcvt.s32.f32 %v2457_v5 }
 0x60a   :  { %2683 = vmin.xlane.f32.xlu1 %v2682_v4  ;;  %2409 = vmin.xlane.f32.xlu0 %v2408_v42  ;;  %v2287_v40 = vshll.u32 %v2286_v20, 16 }
 0x60b   :  { %v5289_v46 = vpop.xlane.xlu1 %2419  ;;  %v5291_v28 = vpop.xlane.xlu0 %2693 }
 0x60c   :  { %vm2421_vm12 = vcmp.eq.f32.partialorder %v5533_v49, %v5289_v46  ;;  %vm2695_vm1 = vcmp.eq.f32.partialorder %v5534_v43, %v5291_v28 }
 0x60d   :  { %v2422_v13 = vsel %vm2421_vm12, %v2417_v15, inf  ;;  %v2696_v44 = vsel %vm2695_vm1, %v2691_v52, inf  ;;  %v2473_v52 = vcvt.s32.f32 %v2471_v17 }
 0x60e   :  { %2423 = vmin.xlane.f32.xlu1 %v2422_v13  ;;  %2697 = vmin.xlane.f32.xlu0 %v2696_v44  ;;  %v2761_v44 = vcvt.s32.f32 %v2759_v32  ;;  %v2314_v32 = vcvt.f32.s32 %v5209_v56 }
 0x60f   :  { %v5299_v59 = vpop.xlane.xlu1 %2707  ;;  %v5301_v2 = vpop.xlane.xlu0 %2433 }
 0x610   :  { %vm2709_vm0 = vcmp.eq.f32.partialorder %v5535_v10, %v5299_v59  ;;  %vm2435_vm4 = vcmp.eq.f32.partialorder %v5536_v0, %v5301_v2  ;;  %v2560_v0 = vcvt.f32.s32 %v5194_v55 }
 0x611   :  { %v2710_v58 = vsel %vm2709_vm0, %v2705_v14, inf  ;;  %v2436_v25 = vsel %vm2435_vm4, %v2431_v36, inf  ;;  %v5542_v14 = vld [vmem:[#allocation30_spill] sm:$0xff] }
 0x612   :  { %2711 = vmin.xlane.f32.xlu1 %v2710_v58  ;;  %2437 = vmin.xlane.f32.xlu0 %v2436_v25  ;;  %v2574_v58 = vcvt.f32.s32 %v5196_v27 }
 0x613   :  { %v5309_v21 = vpop.xlane.xlu1 %2447  ;;  %v5311_v6 = vpop.xlane.xlu0 %2721 }
 0x614   :  { %vm2449_vm12 = vcmp.eq.f32.partialorder %v5117_v11, %v5309_v21  ;;  %vm2723_vm1 = vcmp.eq.f32.partialorder %v5537_v57, %v5311_v6  ;;  %v5539_v11 = vld [vmem:[#allocation25_spill] sm:$0xff] }
 0x615   :  { %v2450_v26 = vsel %vm2449_vm12, %v2445_v23, inf  ;;  %v2724_v24 = vsel %vm2723_vm1, %v2719_v16, inf  ;;  %v2273_v16 = vshll.u32 %v2272_v47, 16 }
 0x616   :  { %2451 = vmin.xlane.f32.xlu1 %v2450_v26  ;;  %2725 = vmin.xlane.f32.xlu0 %v2724_v24  ;;  %v2561_v26 = vshll.u32 %v2560_v0, 16  ;;  %v2575_v24 = vshll.u32 %v2574_v58, 16 }
 0x617   :  { %v5319_v62 = vpop.xlane.xlu1 %2735  ;;  %v5321_v34 = vpop.xlane.xlu0 %2461 }
 0x618   :  { %vm2737_vm0 = vcmp.eq.f32.partialorder %v5538_v7, %v5319_v62  ;;  %vm2463_vm4 = vcmp.eq.f32.partialorder %v5539_v11, %v5321_v34 }
 0x619   :  { %v2738_v39 = vsel %vm2737_vm0, %v2733_v30, inf  ;;  %v2464_v4 = vsel %vm2463_vm4, %v2459_v38, inf }
 0x61a   :  { %2739 = vmin.xlane.f32.xlu1 %v2738_v39  ;;  %2465 = vmin.xlane.f32.xlu0 %v2464_v4  ;;  %v2300_v4 = vcvt.f32.s32 %v5203_v50 }
 0x61b   :  { %v5329_v42 = vpop.xlane.xlu1 %2475  ;;  %v5331_v15 = vpop.xlane.xlu0 %2749 }
 0x61c   :  { %vm2477_vm12 = vcmp.eq.f32.partialorder %v5540_v29, %v5329_v42  ;;  %vm2751_vm1 = vcmp.eq.f32.partialorder %v5541_v48, %v5331_v15 }
 0x61d   :  { %v2478_v49 = vsel %vm2477_vm12, %v2473_v52, inf  ;;  %v2752_v43 = vsel %vm2751_vm1, %v2747_v61, inf  ;;  %v2588_v52 = vcvt.f32.s32 %v5211_v3  ;;  %v2616_v3 = vcvt.f32.s32 %v5231_v37 }
 0x61e   :  { %2479 = vmin.xlane.f32.xlu1 %v2478_v49  ;;  %2753 = vmin.xlane.f32.xlu0 %v2752_v43  ;;  %v2301_v49 = vshll.u32 %v2300_v4, 16 }
 0x61f   :  { %v5338_v13 = vpop.xlane.xlu1 %2763  ;;  %v2589_v43 = vshll.u32 %v2588_v52, 16 }
 0x620   :  { %vm2765_vm0 = vcmp.eq.f32.partialorder %v5542_v14, %v5338_v13 }
 0x621   :  { %v2766_v36 = vsel %vm2765_vm0, %v2761_v44, inf  ;;  %v2602_v44 = vcvt.f32.s32 %v5219_v53 }
 0x622   :  { %2767 = vmin.xlane.f32.xlu1 %v2766_v36 }
 0x623   :  { %v2603_v58 = vshll.u32 %v2602_v44, 16 }
 0x625   :  { %v2270_v35 = vpop.xlane.xlu0 %2269 }
 0x626   :  { %v2271_v25 = vcvt.f32.s32 %v2270_v35  ;;  %v2315_v35 = vshll.u32 %v2314_v32, 16 }
 0x628   :  { %v2274_v17 = vadd.s32 %v2273_v16, %v2271_v25  ;;  %v2672_v25 = vcvt.f32.s32 %v5271_v31  ;;  %v2756_v31 = vcvt.f32.s32 %v5331_v15  ;;  %v5557_v15 = vld [vmem:[#allocation22_spill] sm:$0xff] }
 0x629   :  { %v2284_v10 = vpop.xlane.xlu1 %2283 }
 0x62a   :  { %v2285_v23 = vcvt.f32.s32 %v2284_v10  ;;  %v2328_v10 = vcvt.f32.s32 %v5221_v9 }
 0x62c   :  { %v2288_v63 = vadd.s32 %v2287_v40, %v2285_v23 }
 0x62d   :  { %v2558_v5 = vpop.xlane.xlu0 %2557  ;;  %v2572_v57 = vpop.xlane.xlu1 %2571 }
 0x62e   :  { %v2559_v30 = vcvt.f32.s32 %v2558_v5  ;;  %v2573_v38 = vcvt.f32.s32 %v2572_v57  ;;  %v2329_v5 = vshll.u32 %v2328_v10, 16  ;;  %v2342_v57 = vcvt.f32.s32 %v5229_v60 }
 0x630   :  { %v2562_v22 = vadd.s32 %v2561_v26, %v2559_v30  ;;  %v2576_v19 = vadd.s32 %v2575_v24, %v2573_v38  ;;  %v2617_v24 = vshll.u32 %v2616_v3, 16  ;;  %v2630_v30 = vcvt.f32.s32 %v5239_v51 }
 0x631   :  { %v2343_v7 = vshll.u32 %v2342_v57, 16  ;;  %v2398_v57 = vcvt.f32.s32 %v5269_v8 }
 0x632   :  { %v2805_v11 = vsel %vm2773_vm8, %v2562_v22, %v2274_v17  ;;  %v2806_v27 = vsel %vm2774_vm6, %v2576_v19, %v2288_v63  ;;  %vm5558_vm8 = vcmp.gt.f32.partialorder %v5557_v15, 0.0 }
 0x633   :  { %2837 = vst [vmem:[%s5461_s7] sm:$0xff] %v2805_v11  ;;  %2838 = vst [vmem:[%s5461_s7 + $0x8] sm:$0xff] %v2806_v27  ;;  %v2356_v11 = vcvt.f32.s32 %v5241_v33  ;;  %v2631_v27 = vshll.u32 %v2630_v30, 16 }
 0x677   :  { %v2298_v39 = vpop.xlane.xlu0 %2297 }
 0x678   :  { %v2299_v61 = vcvt.f32.s32 %v2298_v39  ;;  %v2644_v39 = vcvt.f32.s32 %v5251_v41 }
 0x67a   :  { %v2302_v36 = vadd.s32 %v2301_v49, %v2299_v61  ;;  %v2370_v49 = vcvt.f32.s32 %v5249_v18  ;;  %v2645_v44 = vshll.u32 %v2644_v39, 16 }
 0x67b   :  { %v2312_v29 = vpop.xlane.xlu1 %2311  ;;  %v2586_v48 = vpop.xlane.xlu0 %2585 }
 0x67c   :  { %v2587_v14 = vcvt.f32.s32 %v2586_v48  ;;  %v2313_v47 = vcvt.f32.s32 %v2312_v29  ;;  %v2357_v48 = vshll.u32 %v2356_v11, 16 }
 0x67e   :  { %v2590_v20 = vadd.s32 %v2589_v43, %v2587_v14  ;;  %v2316_v53 = vadd.s32 %v2315_v35, %v2313_v47  ;;  %v2658_v14 = vcvt.f32.s32 %v5259_v1 }
 0x67f   :  { %v2600_v0 = vpop.xlane.xlu1 %2599  ;;  %v2326_v50 = vpop.xlane.xlu0 %2325 }
 0x680   :  { %v2807_v56 = vsel %vm2775_vm11, %v2590_v20, %v2302_v36  ;;  %v2601_v23 = vcvt.f32.s32 %v2600_v0  ;;  %v2327_v40 = vcvt.f32.s32 %v2326_v50  ;;  %v2371_v0 = vshll.u32 %v2370_v49, 16 }
 0x681   :  { %2839 = vst [vmem:[%s5461_s7 + $0x10] sm:$0xff] %v2807_v56  ;;  %v2384_v50 = vcvt.f32.s32 %v5261_v12  ;;  %v2659_v3 = vshll.u32 %v2658_v14, 16 }
 0x682   :  { %v2604_v16 = vadd.s32 %v2603_v58, %v2601_v23  ;;  %v2330_v63 = vadd.s32 %v2329_v5, %v2327_v40 }
 0x683   :  { %v2340_v9 = vpop.xlane.xlu1 %2339  ;;  %v2614_v26 = vpop.xlane.xlu0 %2613  ;;  %v2385_v5 = vshll.u32 %v2384_v50, 16 }
 0x684   :  { %v2808_v38 = vsel %vm2776_vm15, %v2604_v16, %v2316_v53  ;;  %v2615_v17 = vcvt.f32.s32 %v2614_v26  ;;  %v2341_v22 = vcvt.f32.s32 %v2340_v9  ;;  %v2673_v26 = vshll.u32 %v2672_v25, 16 }
 0x685   :  { %2840 = vst [vmem:[%s5461_s7 + $0x18] sm:$0xff] %v2808_v38  ;;  %v2454_v25 = vcvt.f32.s32 %v5309_v21 }
 0x686   :  { %v2618_v19 = vadd.s32 %v2617_v24, %v2615_v17  ;;  %v2344_v61 = vadd.s32 %v2343_v7, %v2341_v22  ;;  %v2686_v24 = vcvt.f32.s32 %v5279_v45  ;;  %v2399_v22 = vshll.u32 %v2398_v57, 16 }
 0x687   :  { %v2628_v60 = vpop.xlane.xlu1 %2627  ;;  %v2354_v55 = vpop.xlane.xlu0 %2353 }
 0x688   :  { %v2809_v4 = vsel %vm2777_vm2, %v2618_v19, %v2330_v63  ;;  %v2629_v52 = vcvt.f32.s32 %v2628_v60  ;;  %v2355_v29 = vcvt.f32.s32 %v2354_v55  ;;  %v2412_v19 = vcvt.f32.s32 %v5281_v54 }
 0x689   :  { %2841 = vst [vmem:[%s5461_s7 + $0x20] sm:$0xff] %v2809_v4  ;;  %v2687_v11 = vshll.u32 %v2686_v24, 16  ;;  %v2700_v60 = vcvt.f32.s32 %v5291_v28 }
 0x68a   :  { %v2632_v32 = vadd.s32 %v2631_v27, %v2629_v52  ;;  %v2358_v20 = vadd.s32 %v2357_v48, %v2355_v29  ;;  %v2413_v52 = vshll.u32 %v2412_v19, 16  ;;  %v2714_v48 = vcvt.f32.s32 %v5299_v59 }
 0x68b   :  { %v2368_v33 = vpop.xlane.xlu1 %2367  ;;  %v2642_v43 = vpop.xlane.xlu0 %2641  ;;  %v2701_v29 = vshll.u32 %v2700_v60, 16  ;;  %v2482_v19 = vcvt.f32.s32 %v5329_v42  ;;  %v5559_v42 = vld [vmem:[#allocation24_spill] sm:$0xff] }
 0x68c   :  { %v2810_v36 = vsel %vm2778_vm5, %v2632_v32, %v2344_v61  ;;  %v2643_v47 = vcvt.f32.s32 %v2642_v43  ;;  %v2369_v35 = vcvt.f32.s32 %v2368_v33  ;;  %v2426_v61 = vcvt.f32.s32 %v5289_v46 }
 0x68d   :  { %2842 = vst [vmem:[%s5461_s7 + $0x28] sm:$0xff] %v2810_v36  ;;  %v2440_v36 = vcvt.f32.s32 %v5301_v2  ;;  %vm5560_vm11 = vcmp.gt.f32.partialorder %v5559_v42, 0.0 }
 0x68e   :  { %v2646_v10 = vadd.s32 %v2645_v44, %v2643_v47  ;;  %v2372_v53 = vadd.s32 %v2371_v0, %v2369_v35  ;;  %v2427_v41 = vshll.u32 %v2426_v61, 16  ;;  %v2728_v35 = vcvt.f32.s32 %v5311_v6 }
 0x68f   :  { %v2656_v18 = vpop.xlane.xlu1 %2655  ;;  %v2382_v58 = vpop.xlane.xlu0 %2381 }
 0x690   :  { %v2811_v56 = vsel %vm2779_vm9, %v2646_v10, %v2358_v20  ;;  %v2657_v23 = vcvt.f32.s32 %v2656_v18  ;;  %v2383_v40 = vcvt.f32.s32 %v2382_v58  ;;  %v2715_v20 = vshll.u32 %v2714_v48, 16 }
 0x691   :  { %2843 = vst [vmem:[%s5461_s7 + $0x30] sm:$0xff] %v2811_v56  ;;  %v2729_v56 = vshll.u32 %v2728_v35, 16 }
 0x692   :  { %v2660_v16 = vadd.s32 %v2659_v3, %v2657_v23  ;;  %v2386_v38 = vadd.s32 %v2385_v5, %v2383_v40  ;;  %v2441_v3 = vshll.u32 %v2440_v36, 16  ;;  %v2742_v23 = vcvt.f32.s32 %v5319_v62  ;;  %v5555_v62 = vld [vmem:[#allocation19_spill] sm:$0xff] }
 0x693   :  { %v2396_v12 = vpop.xlane.xlu1 %2395  ;;  %v2670_v9 = vpop.xlane.xlu0 %2669  ;;  %vm5556_vm6 = vcmp.gt.f32.partialorder %v5555_v62, 0.0 }
 0x694   :  { %v2812_v30 = vsel %vm2780_vm14, %v2660_v16, %v2372_v53  ;;  %v2671_v37 = vcvt.f32.s32 %v2670_v9  ;;  %v2397_v17 = vcvt.f32.s32 %v2396_v12  ;;  %v2455_v12 = vshll.u32 %v2454_v25, 16 }
 0x695   :  { %2844 = vst [vmem:[%s5461_s7 + $0x38] sm:$0xff] %v2812_v30  ;;  %v2468_v9 = vcvt.f32.s32 %v5321_v34  ;;  %v2743_v24 = vshll.u32 %v2742_v23, 16 }
 0x696   :  { %v2674_v63 = vadd.s32 %v2673_v26, %v2671_v37  ;;  %v2400_v39 = vadd.s32 %v2399_v22, %v2397_v17 }
 0x697   :  { %v2684_v8 = vpop.xlane.xlu1 %2683  ;;  %v2410_v7 = vpop.xlane.xlu0 %2409  ;;  %v2469_v22 = vshll.u32 %v2468_v9, 16 }
 0x698   :  { %v2813_v55 = vsel %vm2781_vm3, %v2674_v63, %v2386_v38  ;;  %v2685_v27 = vcvt.f32.s32 %v2684_v8  ;;  %v2411_v4 = vcvt.f32.s32 %v2410_v7  ;;  %v2757_v7 = vshll.u32 %v2756_v31, 16 }
 0x699   :  { %2845 = vst [vmem:[%s5461_s7 + $0x40] sm:$0xff] %v2813_v55 }
 0x69a   :  { %v2688_v51 = vadd.s32 %v2687_v11, %v2685_v27  ;;  %v2414_v43 = vadd.s32 %v2413_v52, %v2411_v4  ;;  %v2770_v11 = vcvt.f32.s32 %v5338_v13  ;;  %v2483_v4 = vshll.u32 %v2482_v19, 16 }
 0x69b   :  { %v2424_v54 = vpop.xlane.xlu1 %2423  ;;  %v2698_v32 = vpop.xlane.xlu0 %2697 }
 0x69c   :  { %v2814_v49 = vsel %vm2782_vm10, %v2688_v51, %v2400_v39  ;;  %v2699_v33 = vcvt.f32.s32 %v2698_v32  ;;  %v2425_v44 = vcvt.f32.s32 %v2424_v54  ;;  %v2771_v52 = vshll.u32 %v2770_v11, 16 }
 0x69d   :  { %2846 = vst [vmem:[%s5461_s7 + $0x48] sm:$0xff] %v2814_v49 }
 0x69e   :  { %v2702_v14 = vadd.s32 %v2701_v29, %v2699_v33  ;;  %v2428_v50 = vadd.s32 %v2427_v41, %v2425_v44  ;;  %v5561_v29 = vld [vmem:[#allocation27_spill] sm:$0xff] }
 0x69f   :  { %v2712_v46 = vpop.xlane.xlu1 %2711  ;;  %v2438_v47 = vpop.xlane.xlu0 %2437  ;;  %vm5562_vm15 = vcmp.gt.f32.partialorder %v5561_v29, 0.0 }
 0x6a0   :  { %v2815_v10 = vsel %vm2783_vm13, %v2702_v14, %v2414_v43  ;;  %v2713_v0 = vcvt.f32.s32 %v2712_v46  ;;  %v2439_v58 = vcvt.f32.s32 %v2438_v47 }
 0x6a1   :  { %2847 = vst [vmem:[%s5461_s7 + $0x50] sm:$0xff] %v2815_v10 }
 0x6a2   :  { %v2716_v18 = vadd.s32 %v2715_v20, %v2713_v0  ;;  %v2442_v40 = vadd.s32 %v2441_v3, %v2439_v58 }
 0x6a3   :  { %v2452_v2 = vpop.xlane.xlu1 %2451  ;;  %v2726_v1 = vpop.xlane.xlu0 %2725 }
 0x6a4   :  { %v2816_v53 = vsel %vm2784_vm7, %v2716_v18, %v2428_v50  ;;  %v2727_v16 = vcvt.f32.s32 %v2726_v1  ;;  %v2453_v5 = vcvt.f32.s32 %v2452_v2 }
 0x6a5   :  { %2848 = vst [vmem:[%s5461_s7 + $0x58] sm:$0xff] %v2816_v53 }
 0x6a6   :  { %v2730_v57 = vadd.s32 %v2729_v56, %v2727_v16  ;;  %v2456_v38 = vadd.s32 %v2455_v12, %v2453_v5 }
 0x6a7   :  { %v2740_v21 = vpop.xlane.xlu1 %2739  ;;  %v2466_v26 = vpop.xlane.xlu0 %2465 }
 0x6a8   :  { %v2817_v30 = vsel %vm5556_vm6, %v2730_v57, %v2442_v40  ;;  %v2741_v37 = vcvt.f32.s32 %v2740_v21  ;;  %v2467_v63 = vcvt.f32.s32 %v2466_v26 }
 0x6a9   :  { %2849 = vst [vmem:[%s5461_s7 + $0x60] sm:$0xff] %v2817_v30 }
 0x6aa   :  { %v2744_v17 = vadd.s32 %v2743_v24, %v2741_v37  ;;  %v2470_v55 = vadd.s32 %v2469_v22, %v2467_v63 }
 0x6ab   :  { %v2480_v34 = vpop.xlane.xlu1 %2479  ;;  %v2754_v8 = vpop.xlane.xlu0 %2753 }
 0x6ac   :  { %v2818_v60 = vsel %vm5558_vm8, %v2744_v17, %v2456_v38  ;;  %v2755_v45 = vcvt.f32.s32 %v2754_v8  ;;  %v2481_v27 = vcvt.f32.s32 %v2480_v34 }
 0x6ad   :  { %2850 = vst [vmem:[%s5461_s7 + $0x68] sm:$0xff] %v2818_v60 }
 0x6ae   :  { %v2758_v39 = vadd.s32 %v2757_v7, %v2755_v45  ;;  %v2484_v13 = vadd.s32 %v2483_v4, %v2481_v27 }
 0x6af   :  { %v2768_v51 = vpop.xlane.xlu1 %2767 }
 0x6b0   :  { %v2819_v61 = vsel %vm5560_vm11, %v2758_v39, %v2470_v55  ;;  %v2769_v54 = vcvt.f32.s32 %v2768_v51 }
 0x6b1   :  { %2851 = vst [vmem:[%s5461_s7 + $0x70] sm:$0xff] %v2819_v61 }
 0x6b2   :  { %v2772_v32 = vadd.s32 %v2771_v52, %v2769_v54 }
 0x6b4   :  { %v2820_v48 = vsel %vm5562_vm15, %v2772_v32, %v2484_v13 }
 0x6b5   :  { %2852 = vst [vmem:[%s5461_s7 + $0x78] sm:$0xff] %v2820_v48 }
 0x6b6   :  { %2869 = vsyncpa [#allocation3], 1 }

</bundles_post_ra>
